<compile_context>
chip_gen: v6e
topology: v6e:2x2x1
jax: 0.10.0
libtpu: 0.0.40
codegen_flags: <defaults>
</compile_context>

<pallas_src>
import functools
import math

import jax
import jax.numpy as jnp
from jax import lax
from jax.experimental import pallas as pl
from jax.experimental.pallas import tpu as pltpu

# Operand dtype of the big (TR,TC)@(TC,H) aggregation matmul.  f32 keeps
# bit-fidelity with the PyTorch reference; set to jnp.bfloat16 on v6e/v7x for
# ~2x MXU throughput (accumulation stays f32 via preferred_element_type).
MXU_DTYPE = jnp.float32
ADJ_DTYPE = jnp.bfloat16      # 0/1 mask: bf16 is lossless, halves N^2 HBM reads
NEG_SLOPE = 0.05              # LeakyReLU slope of the reference GATLayer
MASK_VAL = -1e30              # non-edge logit (exp -> 0 exactly)
VMEM_LIMIT = 32 * 1024 * 1024  # explicit scoped-VMEM budget (fits v5e..v7x)


def _round_up(x, m):
    return ((x + m - 1) // m) * m


# ----------------------------------------------------------------------------
# Projection kernel:  Wx = x @ W,  e_src = a_src.Wx + b,  e_dst = a_dst.Wx
# ----------------------------------------------------------------------------
def _proj_kernel(x_ref, w_ref, asrc_ref, adst_ref, b_ref,
                 wx_ref, es_ref, ed_ref):
    # Linear(n_feat, n_hidden, bias=False)
    wx = jnp.dot(x_ref[...], w_ref[...], preferred_element_type=jnp.float32)
    wx_ref[...] = wx
    # e_src[i] = a_src . Wx_i + bias   (VPU reduce, already (TR,1) oriented)
    es_ref[...] = jnp.sum(wx * asrc_ref[...], axis=1, keepdims=True) + b_ref[0, 0]
    # e_dst[j] = a_dst . Wx_j          laid out lane-major as a (1, TR) row
    ed_ref[...] = lax.dot_general(adst_ref[...], wx, (((1,), (1,)), ((), ())),
                                  preferred_element_type=jnp.float32)


# ----------------------------------------------------------------------------
# Attention / aggregation kernel (flash-style running sum over column tiles)
# ----------------------------------------------------------------------------
def _make_attn_kernel(with_alpha):
    def kernel(es_ref, ed_ref, wx_ref, adj_ref, out_ref, *rest):
        if with_alpha:
            alpha_ref, acc_ref, den_ref = rest
            p = pl.program_id(1)
            k = pl.program_id(2)
            nk = pl.num_programs(2)
        else:
            acc_ref, den_ref = rest
            k = pl.program_id(1)
            nk = pl.num_programs(1)

        # e_ij = LeakyReLU(a_src.Wx_i + a_dst.Wx_j + b); only edges survive.
        s = es_ref[...] + ed_ref[...]                   # (TR,1)+(1,TC) -> (TR,TC)
        s = jnp.where(s > 0, s, NEG_SLOPE * s)          # LeakyReLU(0.05)
        s = jnp.where(adj_ref[...] > 0, s, MASK_VAL)    # mask BEFORE exp (no NaN)
        h = jnp.exp(s)                                  # EUP; exp(-1e30) == 0

        def phase0():
            @pl.when(k == 0)
            def _init():
                acc_ref[...] = jnp.zeros_like(acc_ref)
                den_ref[...] = jnp.zeros_like(den_ref)

            acc_ref[...] += jnp.dot(h.astype(MXU_DTYPE),
                                    wx_ref[...].astype(MXU_DTYPE),
                                    preferred_element_type=jnp.float32)
            den_ref[...] += jnp.sum(h, axis=1, keepdims=True)

            @pl.when(k == nk - 1)
            def _finalize():
                inv = pl.reciprocal(den_ref[...], approx=True)
                # ReLU fused here: both GAT layers are followed by ReLU in GNN.
                out_ref[...] = jnp.maximum(acc_ref[...] * inv, 0.0)

        if with_alpha:
            pl.when(p == 0)(phase0)

            @pl.when(p == 1)
            def _write_alpha():
                # Second sweep: denominator is final -> stream normalized alpha.
                alpha_ref[...] = h * pl.reciprocal(den_ref[...], approx=True)
        else:
            phase0()

    return kernel


def gat_layer(x, adj, w, a_src, a_dst, a_bias, *, tr, tc, with_alpha):
    npad, fpad = x.shape
    hpad = w.shape[1]
    r, c = npad // tr, npad // tc

    # ---- pass 1: projection + per-node attention terms -----------------------
    wx, e_src, e_dst = pl.pallas_call(
        _proj_kernel,
        out_shape=(jax.ShapeDtypeStruct((npad, hpad), jnp.float32),
                   jax.ShapeDtypeStruct((npad, 1), jnp.float32),
                   jax.ShapeDtypeStruct((1, npad), jnp.float32)),
        grid=(r,),
        in_specs=[pl.BlockSpec((tr, fpad), lambda i: (i, 0)),
                  pl.BlockSpec((fpad, hpad), lambda i: (0, 0)),
                  pl.BlockSpec((1, hpad), lambda i: (0, 0)),
                  pl.BlockSpec((1, hpad), lambda i: (0, 0)),
                  pl.BlockSpec(memory_space=pltpu.MemorySpace.SMEM)],   # bias scalar
        out_specs=(pl.BlockSpec((tr, hpad), lambda i: (i, 0)),
                   pl.BlockSpec((tr, 1), lambda i: (i, 0)),
                   pl.BlockSpec((1, tr), lambda i: (0, i))),
        compiler_params=pltpu.CompilerParams(
            dimension_semantics=("parallel",),
            vmem_limit_bytes=VMEM_LIMIT),
    )(x, w, a_src, a_dst, a_bias)

    # ---- pass 2: tiled masked softmax + aggregation ---------------------------
    adj_bytes = jnp.dtype(ADJ_DTYPE).itemsize
    if with_alpha:
        grid = (r, 2, c)
        in_specs = [pl.BlockSpec((tr, 1), lambda i, p, k: (i, 0)),
                    pl.BlockSpec((1, tc), lambda i, p, k: (0, k)),
                    pl.BlockSpec((tc, hpad), lambda i, p, k: (k, 0)),
                    pl.BlockSpec((tr, tc), lambda i, p, k: (i, k))]
        out_shape = (jax.ShapeDtypeStruct((npad, hpad), jnp.float32),
                     jax.ShapeDtypeStruct((npad, npad), jnp.float32))
        out_specs = (pl.BlockSpec((tr, hpad), lambda i, p, k: (i, 0)),
                     # phase 0: park on block (i,0) (held resident, never flushed
                     # mid-row); phase 1: stream normalized tiles (i,k).
                     pl.BlockSpec((tr, tc), lambda i, p, k: (i, k * p)))
        sem = ("parallel", "arbitrary", "arbitrary")
        cost = pl.CostEstimate(
            flops=int(2 * npad * npad * hpad + 8 * npad * npad),
            transcendentals=int(2 * npad * npad),
            bytes_accessed=int(2 * npad * npad * adj_bytes + 4 * npad * npad
                               + 4 * 2 * r * npad * hpad + 4 * npad * hpad))
    else:
        grid = (r, c)
        in_specs = [pl.BlockSpec((tr, 1), lambda i, k: (i, 0)),
                    pl.BlockSpec((1, tc), lambda i, k: (0, k)),
                    pl.BlockSpec((tc, hpad), lambda i, k: (k, 0)),
                    pl.BlockSpec((tr, tc), lambda i, k: (i, k))]
        out_shape = jax.ShapeDtypeStruct((npad, hpad), jnp.float32)
        out_specs = pl.BlockSpec((tr, hpad), lambda i, k: (i, 0))
        sem = ("parallel", "arbitrary")
        cost = pl.CostEstimate(
            flops=int(2 * npad * npad * hpad + 6 * npad * npad),
            transcendentals=int(npad * npad),
            bytes_accessed=int(npad * npad * adj_bytes
                               + 4 * r * npad * hpad + 4 * npad * hpad))

    outs = pl.pallas_call(
        _make_attn_kernel(with_alpha),
        out_shape=out_shape,
        grid=grid,
        in_specs=in_specs,
        out_specs=out_specs,
        scratch_shapes=[pltpu.VMEM((tr, hpad), jnp.float32),   # accumulator
                        pltpu.VMEM((tr, 1), jnp.float32)],     # running denom
        compiler_params=pltpu.CompilerParams(
            dimension_semantics=sem,
            vmem_limit_bytes=VMEM_LIMIT),
        cost_estimate=cost,
    )(e_src, e_dst, wx, adj)

    if with_alpha:
        return outs[0], outs[1]
    return outs, None


# ----------------------------------------------------------------------------
# Classifier + log_softmax (lane-dense (N, 128) output, sliced in the wrapper)
# ----------------------------------------------------------------------------
def _make_classifier_kernel(nclass):
    def kernel(h_ref, wc_ref, bc_ref, out_ref):
        logits = jnp.dot(h_ref[...], wc_ref[...],
                         preferred_element_type=jnp.float32) + bc_ref[...]
        col = lax.broadcasted_iota(jnp.int32, logits.shape, 1)
        logits = jnp.where(col < nclass, logits, MASK_VAL)   # ignore padded classes
        m = jnp.max(logits, axis=1, keepdims=True)
        z = logits - m
        lse = jnp.log(jnp.sum(jnp.exp(z), axis=1, keepdims=True))
        out_ref[...] = z - lse
    return kernel


@functools.partial(jax.jit, static_argnames=("nclass", "tr", "tc"))
def gnn_forward(x, adj, params, *, nclass, tr=128, tc=128):
    n, f = x.shape
    nh = params["w1"].shape[1]
    npad = _round_up(n, math.lcm(tr, tc))
    fpad = _round_up(f, 128)
    hpad = _round_up(nh, 128)
    cpad = _round_up(nclass, 128)

    # Zero-pad everything to MXU/lane-friendly sizes (exact: pads contribute 0).
    xp = jnp.zeros((npad, fpad), jnp.float32).at[:n, :f].set(x)
    adjp = jnp.zeros((npad, npad), jnp.float32).at[:n, :n].set(adj)
    pad_ids = jnp.arange(n, npad)
    adjp = adjp.at[pad_ids, pad_ids].set(1.0)   # self-loops on pad rows: denom > 0
    adjp = adjp.astype(ADJ_DTYPE)

    def pad2(a, rows, cols):
        return jnp.zeros((rows, cols), jnp.float32).at[:a.shape[0], :a.shape[1]].set(a)

    w1 = pad2(params["w1"], fpad, hpad)
    w2 = pad2(params["w2"], hpad, hpad)
    a1s = pad2(params["a1s"], 1, hpad)
    a1d = pad2(params["a1d"], 1, hpad)
    a2s = pad2(params["a2s"], 1, hpad)
    a2d = pad2(params["a2d"], 1, hpad)
    wc = pad2(params["wc"], hpad, cpad)
    bc = pad2(params["bc"], 1, cpad)

    # GAT layer 1 (+ fused ReLU); dropout is identity at inference.
    h1, _ = gat_layer(xp, adjp, w1, a1s, a1d, params["a1b"],
                      tr=tr, tc=tc, with_alpha=False)
    # GAT layer 2 (+ fused ReLU), also streams the dense normalized attention.
    h2, alpha2 = gat_layer(h1, adjp, w2, a2s, a2d, params["a2b"],
                           tr=tr, tc=tc, with_alpha=True)

    r = npad // tr
    logp = pl.pallas_call(
        _make_classifier_kernel(nclass),
        out_shape=jax.ShapeDtypeStruct((npad, cpad), jnp.float32),
        grid=(r,),
        in_specs=[pl.BlockSpec((tr, hpad), lambda i: (i, 0)),
                  pl.BlockSpec((hpad, cpad), lambda i: (0, 0)),
                  pl.BlockSpec((1, cpad), lambda i: (0, 0))],
        out_specs=pl.BlockSpec((tr, cpad), lambda i: (i, 0)),
        compiler_params=pltpu.CompilerParams(
            dimension_semantics=("parallel",),
            vmem_limit_bytes=VMEM_LIMIT),
    )(h2, wc, bc)

    return logp[:n, :nclass], alpha2[:n, :n]


def init_params(key, nfeat, nhid, nclass):
    ks = jax.random.split(key, 8)

    def lin_w(k, fan_in, fan_out):   # nn.Linear weight, stored transposed (in, out)
        bound = 1.0 / jnp.sqrt(fan_in)
        return jax.random.uniform(k, (fan_in, fan_out), jnp.float32, -bound, bound)

    def lin_b(k, fan_in, shape):
        bound = 1.0 / jnp.sqrt(fan_in)
        return jax.random.uniform(k, shape, jnp.float32, -bound, bound)

    # GAT layer 1
    w1 = lin_w(ks[0], nfeat, nhid)               # fc: Linear(nfeat, nhid, bias=False)
    a1 = lin_w(ks[1], 2 * nhid, 1)               # a:  Linear(2*nhid, 1) weight^T
    a1s = a1[:nhid, :].T                         # (1, nhid): acts on Wx_i (source)
    a1d = a1[nhid:, :].T                         # (1, nhid): acts on Wx_j (target)
    a1b = lin_b(ks[2], 2 * nhid, (1, 1))
    # GAT layer 2
    w2 = lin_w(ks[3], nhid, nhid)
    a2 = lin_w(ks[4], 2 * nhid, 1)
    a2s = a2[:nhid, :].T
    a2d = a2[nhid:, :].T
    a2b = lin_b(ks[5], 2 * nhid, (1, 1))
    # classifier
    wc = lin_w(ks[6], nhid, nclass)
    bc = lin_b(ks[7], nhid, (1, nclass))
    return dict(w1=w1, a1s=a1s, a1d=a1d, a1b=a1b,
                w2=w2, a2s=a2s, a2d=a2d, a2b=a2b,
                wc=wc, bc=bc)


if __name__ == "__main__":
    # Small but multi-tile: N=200 pads to 256 -> 2x2 attention grid at 128 tiles.
    N, nfeat, nhid, nclass = 200, 16, 32, 4
    key = jax.random.PRNGKey(0)
    k_adj, k_par, k_x = jax.random.split(key, 3)

    # Random symmetric adjacency with self-loops (every node appears as a source,
    # matching the scatter_add assumption of the PyTorch code).
    a_rand = jax.random.uniform(k_adj, (N, N))
    adj = (a_rand < 0.05).astype(jnp.float32)
    adj = jnp.maximum(adj, adj.T)
    adj = jnp.maximum(adj, jnp.eye(N, dtype=jnp.float32))

    x = jax.random.normal(k_x, (N, nfeat), dtype=jnp.float32)
    params = init_params(k_par, nfeat, nhid, nclass)

    logp, alpha2_dense = gnn_forward(x, adj, params, nclass=nclass, tr=128, tc=128)

    # Glue: per-edge alpha in row-major (coalesced) edge order, matching
    # torch's adj.coalesce().indices() ordering.
    src, dst = jnp.nonzero(adj)
    alpha2 = alpha2_dense[src, dst]

    jax.block_until_ready((logp, alpha2))
    assert logp.shape == (N, nclass)
    assert alpha2.shape == (src.shape[0],)
    assert bool(jnp.all(jnp.isfinite(logp)))
    assert bool(jnp.all(jnp.isfinite(alpha2)))
    print("KERNEL_OK")
</pallas_src>

<mosaic_0001>
module attributes {stable_mosaic.version = 11 : i64} {
  func.func @_proj_kernel(%arg0: i32, %arg1: memref<128x128xf32, #tpu.memory_space<vmem>>, %arg2: memref<128x128xf32, #tpu.memory_space<vmem>>, %arg3: memref<1x128xf32, #tpu.memory_space<vmem>>, %arg4: memref<1x128xf32, #tpu.memory_space<vmem>>, %arg5: memref<1x1xf32, #tpu.memory_space<smem>>, %arg6: memref<128x128xf32, #tpu.memory_space<vmem>>, %arg7: memref<128x1xf32, #tpu.memory_space<vmem>>, %arg8: memref<1x128xf32, #tpu.memory_space<vmem>>) attributes {dimension_semantics = [#tpu.dimension_semantics<parallel>], iteration_bounds = array<i64: 2>, scalar_prefetch = 0 : i64, scratch_operands = 0 : i64, tpu.core_type = #tpu.core_type<tc>, window_params = [{transform_indices = @transform_0, window_bounds = array<i64: 128, 128>}, {pipeline_mode = #tpu.pipeline_mode<synchronous>, transform_indices = @transform_1, window_bounds = array<i64: 128, 128>}, {pipeline_mode = #tpu.pipeline_mode<synchronous>, transform_indices = @transform_2, window_bounds = array<i64: 1, 128>}, {pipeline_mode = #tpu.pipeline_mode<synchronous>, transform_indices = @transform_3, window_bounds = array<i64: 1, 128>}, {transform_indices = @transform_4, window_bounds = array<i64: 1, 1>}, {transform_indices = @transform_5, window_bounds = array<i64: 128, 128>}, {transform_indices = @transform_6, window_bounds = array<i64: 128, 1>}, {transform_indices = @transform_7, window_bounds = array<i64: 1, 128>}]} {
    %c0 = arith.constant 0 : index
    %c0_0 = arith.constant 0 : index
    %0 = vector.load %arg1[%c0, %c0_0] : memref<128x128xf32, #tpu.memory_space<vmem>>, vector<128x128xf32>
    %c0_1 = arith.constant 0 : index
    %c0_2 = arith.constant 0 : index
    %1 = vector.load %arg2[%c0_1, %c0_2] : memref<128x128xf32, #tpu.memory_space<vmem>>, vector<128x128xf32>
    %cst = arith.constant dense<0.000000e+00> : vector<128x128xf32>
    %2 = tpu.matmul %0, %1, %cst {dimension_numbers = #tpu.dot_dimension_numbers<[1], [0], [0], [1], [0, 0, 1, 1], [], []>} : vector<128x128xf32>, vector<128x128xf32>, vector<128x128xf32> -> vector<128x128xf32>
    %c0_3 = arith.constant 0 : index
    %c0_4 = arith.constant 0 : index
    %3 = vector.load %arg6[%c0_3, %c0_4] : memref<128x128xf32, #tpu.memory_space<vmem>>, vector<128x128xf32>
    tpu.vector_store %arg6[%c0_3, %c0_4], %2 {strides = array<i32>} : memref<128x128xf32, #tpu.memory_space<vmem>>, vector<128x128xf32>,
    %c0_5 = arith.constant 0 : index
    %c0_6 = arith.constant 0 : index
    %4 = vector.load %arg3[%c0_5, %c0_6] : memref<1x128xf32, #tpu.memory_space<vmem>>, vector<1x128xf32>
    %5 = vector.broadcast %4 : vector<1x128xf32> to vector<128x128xf32>
    %6 = arith.mulf %2, %5 : vector<128x128xf32>
    %cst_7 = arith.constant dense<0.000000e+00> : vector<128xf32>
    %7 = vector.multi_reduction <add>, %6, %cst_7 [1] : vector<128x128xf32> to vector<128xf32>
    %8 = vector.shape_cast %7 : vector<128xf32> to vector<128x1xf32>
    %c0_8 = arith.constant 0 : index
    %c0_9 = arith.constant 0 : index
    %9 = memref.load %arg5[%c0_8, %c0_9] : memref<1x1xf32, #tpu.memory_space<smem>>
    %10 = vector.broadcast %9 : f32 to vector<128x1xf32>
    %11 = arith.addf %8, %10 : vector<128x1xf32>
    %c0_10 = arith.constant 0 : index
    %c0_11 = arith.constant 0 : index
    %12 = vector.load %arg7[%c0_10, %c0_11] : memref<128x1xf32, #tpu.memory_space<vmem>>, vector<128x1xf32>
    tpu.vector_store %arg7[%c0_10, %c0_11], %11 {strides = array<i32>} : memref<128x1xf32, #tpu.memory_space<vmem>>, vector<128x1xf32>,
    %c0_12 = arith.constant 0 : index
    %c0_13 = arith.constant 0 : index
    %13 = vector.load %arg4[%c0_12, %c0_13] : memref<1x128xf32, #tpu.memory_space<vmem>>, vector<1x128xf32>
    %cst_14 = arith.constant dense<0.000000e+00> : vector<1x128xf32>
    %14 = tpu.matmul %13, %2, %cst_14 {dimension_numbers = #tpu.dot_dimension_numbers<[1], [1], [0], [0], [0, 0, 1, 0], [], []>} : vector<1x128xf32>, vector<128x128xf32>, vector<1x128xf32> -> vector<1x128xf32>
    %c0_15 = arith.constant 0 : index
    %c0_16 = arith.constant 0 : index
    %15 = vector.load %arg8[%c0_15, %c0_16] : memref<1x128xf32, #tpu.memory_space<vmem>>, vector<1x128xf32>
    tpu.vector_store %arg8[%c0_15, %c0_16], %14 {strides = array<i32>} : memref<1x128xf32, #tpu.memory_space<vmem>>, vector<1x128xf32>,
    return
  }
  func.func @transform_0(%arg0: i32) -> (i32, i32) {
    %c0_i32 = arith.constant 0 : i32
    %c0_i32_0 = arith.constant 0 : i32
    return %arg0, %c0_i32 : i32, i32
  }
  func.func @transform_1(%arg0: i32) -> (i32, i32) {
    %c0_i32 = arith.constant 0 : i32
    %c0_i32_0 = arith.constant 0 : i32
    %c0_i32_1 = arith.constant 0 : i32
    return %c0_i32, %c0_i32_0 : i32, i32
  }
  func.func @transform_2(%arg0: i32) -> (i32, i32) {
    %c0_i32 = arith.constant 0 : i32
    %c0_i32_0 = arith.constant 0 : i32
    %c0_i32_1 = arith.constant 0 : i32
    return %c0_i32, %c0_i32_0 : i32, i32
  }
  func.func @transform_3(%arg0: i32) -> (i32, i32) {
    %c0_i32 = arith.constant 0 : i32
    %c0_i32_0 = arith.constant 0 : i32
    %c0_i32_1 = arith.constant 0 : i32
    return %c0_i32, %c0_i32_0 : i32, i32
  }
  func.func @transform_4(%arg0: i32) -> (i32, i32) {
    %c0_i32 = arith.constant 0 : i32
    %c0_i32_0 = arith.constant 0 : i32
    %c0_i32_1 = arith.constant 0 : i32
    return %c0_i32, %c0_i32_0 : i32, i32
  }
  func.func @transform_5(%arg0: i32) -> (i32, i32) {
    %c0_i32 = arith.constant 0 : i32
    %c0_i32_0 = arith.constant 0 : i32
    return %arg0, %c0_i32 : i32, i32
  }
  func.func @transform_6(%arg0: i32) -> (i32, i32) {
    %c0_i32 = arith.constant 0 : i32
    %c0_i32_0 = arith.constant 0 : i32
    return %arg0, %c0_i32 : i32, i32
  }
  func.func @transform_7(%arg0: i32) -> (i32, i32) {
    %c0_i32 = arith.constant 0 : i32
    %c0_i32_0 = arith.constant 0 : i32
    return %c0_i32, %arg0 : i32, i32
  }
}

module attributes {stable_mosaic.version = 11 : i64} {
  func.func @kernel(%arg0: i32, %arg1: i32, %arg2: memref<128x1xf32, #tpu.memory_space<vmem>>, %arg3: memref<1x128xf32, #tpu.memory_space<vmem>>, %arg4: memref<128x128xf32, #tpu.memory_space<vmem>>, %arg5: memref<128x128xbf16, #tpu.memory_space<vmem>>, %arg6: memref<128x128xf32, #tpu.memory_space<vmem>>, %arg7: memref<128x128xf32, #tpu.memory_space<vmem>>, %arg8: memref<128x1xf32, #tpu.memory_space<vmem>>) attributes {dimension_semantics = [#tpu.dimension_semantics<parallel>, #tpu.dimension_semantics<arbitrary>], iteration_bounds = array<i64: 2, 2>, scalar_prefetch = 0 : i64, scratch_operands = 2 : i64, tpu.core_type = #tpu.core_type<tc>, window_params = [{transform_indices = @transform_0, window_bounds = array<i64: 128, 1>}, {transform_indices = @transform_1, window_bounds = array<i64: 1, 128>}, {transform_indices = @transform_2, window_bounds = array<i64: 128, 128>}, {transform_indices = @transform_3, window_bounds = array<i64: 128, 128>}, {transform_indices = @transform_4, window_bounds = array<i64: 128, 128>}]} {
    %c0 = arith.constant 0 : index
    %c0_0 = arith.constant 0 : index
    %0 = vector.load %arg2[%c0, %c0_0] : memref<128x1xf32, #tpu.memory_space<vmem>>, vector<128x1xf32>
    %c0_1 = arith.constant 0 : index
    %c0_2 = arith.constant 0 : index
    %1 = vector.load %arg3[%c0_1, %c0_2] : memref<1x128xf32, #tpu.memory_space<vmem>>, vector<1x128xf32>
    %2 = vector.broadcast %0 : vector<128x1xf32> to vector<128x128xf32>
    %3 = vector.broadcast %1 : vector<1x128xf32> to vector<128x128xf32>
    %4 = arith.addf %2, %3 : vector<128x128xf32>
    %cst = arith.constant 0.000000e+00 : f32
    %5 = vector.broadcast %cst : f32 to vector<128x128xf32>
    %6 = arith.cmpf ogt, %4, %5 : vector<128x128xf32>
    %cst_3 = arith.constant 5.000000e-02 : f32
    %7 = vector.broadcast %cst_3 : f32 to vector<128x128xf32>
    %8 = arith.mulf %7, %4 : vector<128x128xf32>
    %9 = arith.select %6, %4, %8 : vector<128x128xi1>, vector<128x128xf32>
    %c0_4 = arith.constant 0 : index
    %c0_5 = arith.constant 0 : index
    %10 = vector.load %arg5[%c0_4, %c0_5] : memref<128x128xbf16, #tpu.memory_space<vmem>>, vector<128x128xbf16>
    %cst_6 = arith.constant 0.000000e+00 : bf16
    %11 = vector.broadcast %cst_6 : bf16 to vector<128x128xbf16>
    %12 = arith.cmpf ogt, %10, %11 : vector<128x128xbf16>
    %cst_7 = arith.constant -1.000000e+30 : f32
    %13 = vector.broadcast %cst_7 : f32 to vector<128x128xf32>
    %14 = arith.select %12, %9, %13 : vector<128x128xi1>, vector<128x128xf32>
    %15 = math.exp %14 : vector<128x128xf32>
    %c0_i32 = arith.constant 0 : i32
    %16 = arith.cmpi eq, %arg1, %c0_i32 : i32
    %17 = arith.extui %16 : i1 to i32
    %c0_i32_8 = arith.constant 0 : i32
    %18 = arith.cmpi ne, %17, %c0_i32_8 : i32
    scf.if %18 {
      %cst_22 = arith.constant 0.000000e+00 : f32
      %32 = vector.broadcast %cst_22 : f32 to vector<128x128xf32>
      %c0_23 = arith.constant 0 : index
      %c0_24 = arith.constant 0 : index
      %33 = vector.load %arg7[%c0_23, %c0_24] : memref<128x128xf32, #tpu.memory_space<vmem>>, vector<128x128xf32>
      tpu.vector_store %arg7[%c0_23, %c0_24], %32 {strides = array<i32>} : memref<128x128xf32, #tpu.memory_space<vmem>>, vector<128x128xf32>,
      %cst_25 = arith.constant 0.000000e+00 : f32
      %34 = vector.broadcast %cst_25 : f32 to vector<128x1xf32>
      %c0_26 = arith.constant 0 : index
      %c0_27 = arith.constant 0 : index
      %35 = vector.load %arg8[%c0_26, %c0_27] : memref<128x1xf32, #tpu.memory_space<vmem>>, vector<128x1xf32>
      tpu.vector_store %arg8[%c0_26, %c0_27], %34 {strides = array<i32>} : memref<128x1xf32, #tpu.memory_space<vmem>>, vector<128x1xf32>,
    } else {
    }
    %c0_9 = arith.constant 0 : index
    %c0_10 = arith.constant 0 : index
    %19 = vector.load %arg7[%c0_9, %c0_10] : memref<128x128xf32, #tpu.memory_space<vmem>>, vector<128x128xf32>
    %c0_11 = arith.constant 0 : index
    %c0_12 = arith.constant 0 : index
    %20 = vector.load %arg4[%c0_11, %c0_12] : memref<128x128xf32, #tpu.memory_space<vmem>>, vector<128x128xf32>
    %cst_13 = arith.constant dense<0.000000e+00> : vector<128x128xf32>
    %21 = tpu.matmul %15, %20, %cst_13 {dimension_numbers = #tpu.dot_dimension_numbers<[1], [0], [0], [1], [0, 0, 1, 1], [], []>} : vector<128x128xf32>, vector<128x128xf32>, vector<128x128xf32> -> vector<128x128xf32>
    %22 = arith.addf %19, %21 : vector<128x128xf32>
    %c0_14 = arith.constant 0 : index
    %c0_15 = arith.constant 0 : index
    %23 = vector.load %arg7[%c0_14, %c0_15] : memref<128x128xf32, #tpu.memory_space<vmem>>, vector<128x128xf32>
    tpu.vector_store %arg7[%c0_14, %c0_15], %22 {strides = array<i32>} : memref<128x128xf32, #tpu.memory_space<vmem>>, vector<128x128xf32>,
    %c0_16 = arith.constant 0 : index
    %c0_17 = arith.constant 0 : index
    %24 = vector.load %arg8[%c0_16, %c0_17] : memref<128x1xf32, #tpu.memory_space<vmem>>, vector<128x1xf32>
    %cst_18 = arith.constant dense<0.000000e+00> : vector<128xf32>
    %25 = vector.multi_reduction <add>, %15, %cst_18 [1] : vector<128x128xf32> to vector<128xf32>
    %26 = vector.shape_cast %25 : vector<128xf32> to vector<128x1xf32>
    %27 = arith.addf %24, %26 : vector<128x1xf32>
    %c0_19 = arith.constant 0 : index
    %c0_20 = arith.constant 0 : index
    %28 = vector.load %arg8[%c0_19, %c0_20] : memref<128x1xf32, #tpu.memory_space<vmem>>, vector<128x1xf32>
    tpu.vector_store %arg8[%c0_19, %c0_20], %27 {strides = array<i32>} : memref<128x1xf32, #tpu.memory_space<vmem>>, vector<128x1xf32>,
    %c1_i32 = arith.constant 1 : i32
    %29 = arith.cmpi eq, %arg1, %c1_i32 : i32
    %30 = arith.extui %29 : i1 to i32
    %c0_i32_21 = arith.constant 0 : i32
    %31 = arith.cmpi ne, %30, %c0_i32_21 : i32
    scf.if %31 {
      %c0_22 = arith.constant 0 : index
      %c0_23 = arith.constant 0 : index
      %32 = vector.load %arg8[%c0_22, %c0_23] : memref<128x1xf32, #tpu.memory_space<vmem>>, vector<128x1xf32>
      %33 = tpu.reciprocal %32 {approx = true} : vector<128x1xf32> -> vector<128x1xf32>
      %c0_24 = arith.constant 0 : index
      %c0_25 = arith.constant 0 : index
      %34 = vector.load %arg7[%c0_24, %c0_25] : memref<128x128xf32, #tpu.memory_space<vmem>>, vector<128x128xf32>
      %35 = vector.broadcast %33 : vector<128x1xf32> to vector<128x128xf32>
      %36 = arith.mulf %34, %35 : vector<128x128xf32>
      %cst_26 = arith.constant 0.000000e+00 : f32
      %37 = vector.broadcast %cst_26 : f32 to vector<128x128xf32>
      %38 = arith.maximumf %36, %37 : vector<128x128xf32>
      %c0_27 = arith.constant 0 : index
      %c0_28 = arith.constant 0 : index
      %39 = vector.load %arg6[%c0_27, %c0_28] : memref<128x128xf32, #tpu.memory_space<vmem>>, vector<128x128xf32>
      tpu.vector_store %arg6[%c0_27, %c0_28], %38 {strides = array<i32>} : memref<128x128xf32, #tpu.memory_space<vmem>>, vector<128x128xf32>,
    } else {
    }
    return
  }
  func.func @transform_0(%arg0: i32, %arg1: i32) -> (i32, i32) {
    %c0_i32 = arith.constant 0 : i32
    %c0_i32_0 = arith.constant 0 : i32
    return %arg0, %c0_i32 : i32, i32
  }
  func.func @transform_1(%arg0: i32, %arg1: i32) -> (i32, i32) {
    %c0_i32 = arith.constant 0 : i32
    %c0_i32_0 = arith.constant 0 : i32
    return %c0_i32, %arg1 : i32, i32
  }
  func.func @transform_2(%arg0: i32, %arg1: i32) -> (i32, i32) {
    %c0_i32 = arith.constant 0 : i32
    %c0_i32_0 = arith.constant 0 : i32
    return %arg1, %c0_i32 : i32, i32
  }
  func.func @transform_3(%arg0: i32, %arg1: i32) -> (i32, i32) {
    %c0_i32 = arith.constant 0 : i32
    return %arg0, %arg1 : i32, i32
  }
  func.func @transform_4(%arg0: i32, %arg1: i32) -> (i32, i32) {
    %c0_i32 = arith.constant 0 : i32
    %c0_i32_0 = arith.constant 0 : i32
    return %arg0, %c0_i32 : i32, i32
  }
}

module attributes {stable_mosaic.version = 11 : i64} {
  func.func @kernel(%arg0: i32, %arg1: i32, %arg2: i32, %arg3: memref<128x1xf32, #tpu.memory_space<vmem>>, %arg4: memref<1x128xf32, #tpu.memory_space<vmem>>, %arg5: memref<128x128xf32, #tpu.memory_space<vmem>>, %arg6: memref<128x128xbf16, #tpu.memory_space<vmem>>, %arg7: memref<128x128xf32, #tpu.memory_space<vmem>>, %arg8: memref<128x128xf32, #tpu.memory_space<vmem>>, %arg9: memref<128x128xf32, #tpu.memory_space<vmem>>, %arg10: memref<128x1xf32, #tpu.memory_space<vmem>>) attributes {dimension_semantics = [#tpu.dimension_semantics<parallel>, #tpu.dimension_semantics<arbitrary>, #tpu.dimension_semantics<arbitrary>], iteration_bounds = array<i64: 2, 2, 2>, scalar_prefetch = 0 : i64, scratch_operands = 2 : i64, tpu.core_type = #tpu.core_type<tc>, window_params = [{transform_indices = @transform_0, window_bounds = array<i64: 128, 1>}, {transform_indices = @transform_1, window_bounds = array<i64: 1, 128>}, {transform_indices = @transform_2, window_bounds = array<i64: 128, 128>}, {transform_indices = @transform_3, window_bounds = array<i64: 128, 128>}, {transform_indices = @transform_4, window_bounds = array<i64: 128, 128>}, {transform_indices = @transform_5, window_bounds = array<i64: 128, 128>}]} {
    %c0 = arith.constant 0 : index
    %c0_0 = arith.constant 0 : index
    %0 = vector.load %arg3[%c0, %c0_0] : memref<128x1xf32, #tpu.memory_space<vmem>>, vector<128x1xf32>
    %c0_1 = arith.constant 0 : index
    %c0_2 = arith.constant 0 : index
    %1 = vector.load %arg4[%c0_1, %c0_2] : memref<1x128xf32, #tpu.memory_space<vmem>>, vector<1x128xf32>
    %2 = vector.broadcast %0 : vector<128x1xf32> to vector<128x128xf32>
    %3 = vector.broadcast %1 : vector<1x128xf32> to vector<128x128xf32>
    %4 = arith.addf %2, %3 : vector<128x128xf32>
    %cst = arith.constant 0.000000e+00 : f32
    %5 = vector.broadcast %cst : f32 to vector<128x128xf32>
    %6 = arith.cmpf ogt, %4, %5 : vector<128x128xf32>
    %cst_3 = arith.constant 5.000000e-02 : f32
    %7 = vector.broadcast %cst_3 : f32 to vector<128x128xf32>
    %8 = arith.mulf %7, %4 : vector<128x128xf32>
    %9 = arith.select %6, %4, %8 : vector<128x128xi1>, vector<128x128xf32>
    %c0_4 = arith.constant 0 : index
    %c0_5 = arith.constant 0 : index
    %10 = vector.load %arg6[%c0_4, %c0_5] : memref<128x128xbf16, #tpu.memory_space<vmem>>, vector<128x128xbf16>
    %cst_6 = arith.constant 0.000000e+00 : bf16
    %11 = vector.broadcast %cst_6 : bf16 to vector<128x128xbf16>
    %12 = arith.cmpf ogt, %10, %11 : vector<128x128xbf16>
    %cst_7 = arith.constant -1.000000e+30 : f32
    %13 = vector.broadcast %cst_7 : f32 to vector<128x128xf32>
    %14 = arith.select %12, %9, %13 : vector<128x128xi1>, vector<128x128xf32>
    %15 = math.exp %14 : vector<128x128xf32>
    %c0_i32 = arith.constant 0 : i32
    %16 = arith.cmpi eq, %arg1, %c0_i32 : i32
    %17 = arith.extui %16 : i1 to i32
    %c0_i32_8 = arith.constant 0 : i32
    %18 = arith.cmpi ne, %17, %c0_i32_8 : i32
    scf.if %18 {
      %c0_i32_10 = arith.constant 0 : i32
      %22 = arith.cmpi eq, %arg2, %c0_i32_10 : i32
      %23 = arith.extui %22 : i1 to i32
      %c0_i32_11 = arith.constant 0 : i32
      %24 = arith.cmpi ne, %23, %c0_i32_11 : i32
      scf.if %24 {
        %cst_26 = arith.constant 0.000000e+00 : f32
        %38 = vector.broadcast %cst_26 : f32 to vector<128x128xf32>
        %c0_27 = arith.constant 0 : index
        %c0_28 = arith.constant 0 : index
        %39 = vector.load %arg9[%c0_27, %c0_28] : memref<128x128xf32, #tpu.memory_space<vmem>>, vector<128x128xf32>
        tpu.vector_store %arg9[%c0_27, %c0_28], %38 {strides = array<i32>} : memref<128x128xf32, #tpu.memory_space<vmem>>, vector<128x128xf32>,
        %cst_29 = arith.constant 0.000000e+00 : f32
        %40 = vector.broadcast %cst_29 : f32 to vector<128x1xf32>
        %c0_30 = arith.constant 0 : index
        %c0_31 = arith.constant 0 : index
        %41 = vector.load %arg10[%c0_30, %c0_31] : memref<128x1xf32, #tpu.memory_space<vmem>>, vector<128x1xf32>
        tpu.vector_store %arg10[%c0_30, %c0_31], %40 {strides = array<i32>} : memref<128x1xf32, #tpu.memory_space<vmem>>, vector<128x1xf32>,
      } else {
      }
      %c0_12 = arith.constant 0 : index
      %c0_13 = arith.constant 0 : index
      %25 = vector.load %arg9[%c0_12, %c0_13] : memref<128x128xf32, #tpu.memory_space<vmem>>, vector<128x128xf32>
      %c0_14 = arith.constant 0 : index
      %c0_15 = arith.constant 0 : index
      %26 = vector.load %arg5[%c0_14, %c0_15] : memref<128x128xf32, #tpu.memory_space<vmem>>, vector<128x128xf32>
      %cst_16 = arith.constant dense<0.000000e+00> : vector<128x128xf32>
      %27 = tpu.matmul %15, %26, %cst_16 {dimension_numbers = #tpu.dot_dimension_numbers<[1], [0], [0], [1], [0, 0, 1, 1], [], []>} : vector<128x128xf32>, vector<128x128xf32>, vector<128x128xf32> -> vector<128x128xf32>
      %28 = arith.addf %25, %27 : vector<128x128xf32>
      %c0_17 = arith.constant 0 : index
      %c0_18 = arith.constant 0 : index
      %29 = vector.load %arg9[%c0_17, %c0_18] : memref<128x128xf32, #tpu.memory_space<vmem>>, vector<128x128xf32>
      tpu.vector_store %arg9[%c0_17, %c0_18], %28 {strides = array<i32>} : memref<128x128xf32, #tpu.memory_space<vmem>>, vector<128x128xf32>,
      %c0_19 = arith.constant 0 : index
      %c0_20 = arith.constant 0 : index
      %30 = vector.load %arg10[%c0_19, %c0_20] : memref<128x1xf32, #tpu.memory_space<vmem>>, vector<128x1xf32>
      %cst_21 = arith.constant dense<0.000000e+00> : vector<128xf32>
      %31 = vector.multi_reduction <add>, %15, %cst_21 [1] : vector<128x128xf32> to vector<128xf32>
      %32 = vector.shape_cast %31 : vector<128xf32> to vector<128x1xf32>
      %33 = arith.addf %30, %32 : vector<128x1xf32>
      %c0_22 = arith.constant 0 : index
      %c0_23 = arith.constant 0 : index
      %34 = vector.load %arg10[%c0_22, %c0_23] : memref<128x1xf32, #tpu.memory_space<vmem>>, vector<128x1xf32>
      tpu.vector_store %arg10[%c0_22, %c0_23], %33 {strides = array<i32>} : memref<128x1xf32, #tpu.memory_space<vmem>>, vector<128x1xf32>,
      %c1_i32_24 = arith.constant 1 : i32
      %35 = arith.cmpi eq, %arg2, %c1_i32_24 : i32
      %36 = arith.extui %35 : i1 to i32
      %c0_i32_25 = arith.constant 0 : i32
      %37 = arith.cmpi ne, %36, %c0_i32_25 : i32
      scf.if %37 {
        %c0_26 = arith.constant 0 : index
        %c0_27 = arith.constant 0 : index
        %38 = vector.load %arg10[%c0_26, %c0_27] : memref<128x1xf32, #tpu.memory_space<vmem>>, vector<128x1xf32>
        %39 = tpu.reciprocal %38 {approx = true} : vector<128x1xf32> -> vector<128x1xf32>
        %c0_28 = arith.constant 0 : index
        %c0_29 = arith.constant 0 : index
        %40 = vector.load %arg9[%c0_28, %c0_29] : memref<128x128xf32, #tpu.memory_space<vmem>>, vector<128x128xf32>
        %41 = vector.broadcast %39 : vector<128x1xf32> to vector<128x128xf32>
        %42 = arith.mulf %40, %41 : vector<128x128xf32>
        %cst_30 = arith.constant 0.000000e+00 : f32
        %43 = vector.broadcast %cst_30 : f32 to vector<128x128xf32>
        %44 = arith.maximumf %42, %43 : vector<128x128xf32>
        %c0_31 = arith.constant 0 : index
        %c0_32 = arith.constant 0 : index
        %45 = vector.load %arg7[%c0_31, %c0_32] : memref<128x128xf32, #tpu.memory_space<vmem>>, vector<128x128xf32>
        tpu.vector_store %arg7[%c0_31, %c0_32], %44 {strides = array<i32>} : memref<128x128xf32, #tpu.memory_space<vmem>>, vector<128x128xf32>,
      } else {
      }
    } else {
    }
    %c1_i32 = arith.constant 1 : i32
    %19 = arith.cmpi eq, %arg1, %c1_i32 : i32
    %20 = arith.extui %19 : i1 to i32
    %c0_i32_9 = arith.constant 0 : i32
    %21 = arith.cmpi ne, %20, %c0_i32_9 : i32
    scf.if %21 {
      %c0_10 = arith.constant 0 : index
      %c0_11 = arith.constant 0 : index
      %22 = vector.load %arg10[%c0_10, %c0_11] : memref<128x1xf32, #tpu.memory_space<vmem>>, vector<128x1xf32>
      %23 = tpu.reciprocal %22 {approx = true} : vector<128x1xf32> -> vector<128x1xf32>
      %24 = vector.broadcast %23 : vector<128x1xf32> to vector<128x128xf32>
      %25 = arith.mulf %15, %24 : vector<128x128xf32>
      %c0_12 = arith.constant 0 : index
      %c0_13 = arith.constant 0 : index
      %26 = vector.load %arg8[%c0_12, %c0_13] : memref<128x128xf32, #tpu.memory_space<vmem>>, vector<128x128xf32>
      tpu.vector_store %arg8[%c0_12, %c0_13], %25 {strides = array<i32>} : memref<128x128xf32, #tpu.memory_space<vmem>>, vector<128x128xf32>,
    } else {
    }
    return
  }
  func.func @transform_0(%arg0: i32, %arg1: i32, %arg2: i32) -> (i32, i32) {
    %c0_i32 = arith.constant 0 : i32
    %c0_i32_0 = arith.constant 0 : i32
    return %arg0, %c0_i32 : i32, i32
  }
  func.func @transform_1(%arg0: i32, %arg1: i32, %arg2: i32) -> (i32, i32) {
    %c0_i32 = arith.constant 0 : i32
    %c0_i32_0 = arith.constant 0 : i32
    return %c0_i32, %arg2 : i32, i32
  }
  func.func @transform_2(%arg0: i32, %arg1: i32, %arg2: i32) -> (i32, i32) {
    %c0_i32 = arith.constant 0 : i32
    %c0_i32_0 = arith.constant 0 : i32
    return %arg2, %c0_i32 : i32, i32
  }
  func.func @transform_3(%arg0: i32, %arg1: i32, %arg2: i32) -> (i32, i32) {
    %c0_i32 = arith.constant 0 : i32
    return %arg0, %arg2 : i32, i32
  }
  func.func @transform_4(%arg0: i32, %arg1: i32, %arg2: i32) -> (i32, i32) {
    %c0_i32 = arith.constant 0 : i32
    %c0_i32_0 = arith.constant 0 : i32
    return %arg0, %c0_i32 : i32, i32
  }
  func.func @transform_5(%arg0: i32, %arg1: i32, %arg2: i32) -> (i32, i32) {
    %0 = arith.muli %arg2, %arg1 : i32
    %c0_i32 = arith.constant 0 : i32
    return %arg0, %0 : i32, i32
  }
}

module attributes {stable_mosaic.version = 11 : i64} {
  func.func @kernel(%arg0: i32, %arg1: memref<128x128xf32, #tpu.memory_space<vmem>>, %arg2: memref<128x128xf32, #tpu.memory_space<vmem>>, %arg3: memref<1x128xf32, #tpu.memory_space<vmem>>, %arg4: memref<128x128xf32, #tpu.memory_space<vmem>>) attributes {dimension_semantics = [#tpu.dimension_semantics<parallel>], iteration_bounds = array<i64: 2>, scalar_prefetch = 0 : i64, scratch_operands = 0 : i64, tpu.core_type = #tpu.core_type<tc>, window_params = [{transform_indices = @transform_0, window_bounds = array<i64: 128, 128>}, {pipeline_mode = #tpu.pipeline_mode<synchronous>, transform_indices = @transform_1, window_bounds = array<i64: 128, 128>}, {pipeline_mode = #tpu.pipeline_mode<synchronous>, transform_indices = @transform_2, window_bounds = array<i64: 1, 128>}, {transform_indices = @transform_3, window_bounds = array<i64: 128, 128>}]} {
    %c0 = arith.constant 0 : index
    %c0_0 = arith.constant 0 : index
    %0 = vector.load %arg1[%c0, %c0_0] : memref<128x128xf32, #tpu.memory_space<vmem>>, vector<128x128xf32>
    %c0_1 = arith.constant 0 : index
    %c0_2 = arith.constant 0 : index
    %1 = vector.load %arg2[%c0_1, %c0_2] : memref<128x128xf32, #tpu.memory_space<vmem>>, vector<128x128xf32>
    %cst = arith.constant dense<0.000000e+00> : vector<128x128xf32>
    %2 = tpu.matmul %0, %1, %cst {dimension_numbers = #tpu.dot_dimension_numbers<[1], [0], [0], [1], [0, 0, 1, 1], [], []>} : vector<128x128xf32>, vector<128x128xf32>, vector<128x128xf32> -> vector<128x128xf32>
    %c0_3 = arith.constant 0 : index
    %c0_4 = arith.constant 0 : index
    %3 = vector.load %arg3[%c0_3, %c0_4] : memref<1x128xf32, #tpu.memory_space<vmem>>, vector<1x128xf32>
    %4 = vector.broadcast %3 : vector<1x128xf32> to vector<128x128xf32>
    %5 = arith.addf %2, %4 : vector<128x128xf32>
    %6 = tpu.iota {dimensions = array<i32: 1>} : vector<128x128xi32>
    %c4_i32 = arith.constant 4 : i32
    %7 = vector.broadcast %c4_i32 : i32 to vector<128x128xi32>
    %8 = arith.cmpi slt, %6, %7 : vector<128x128xi32>
    %cst_5 = arith.constant -1.000000e+30 : f32
    %9 = vector.broadcast %cst_5 : f32 to vector<128x128xf32>
    %10 = arith.select %8, %5, %9 : vector<128x128xi1>, vector<128x128xf32>
    %cst_6 = arith.constant dense<0xFF800000> : vector<128xf32>
    %11 = vector.multi_reduction <maximumf>, %10, %cst_6 [1] : vector<128x128xf32> to vector<128xf32>
    %12 = vector.shape_cast %11 : vector<128xf32> to vector<128x1xf32>
    %13 = vector.broadcast %12 : vector<128x1xf32> to vector<128x128xf32>
    %14 = arith.subf %10, %13 : vector<128x128xf32>
    %15 = math.exp %14 : vector<128x128xf32>
    %cst_7 = arith.constant dense<0.000000e+00> : vector<128xf32>
    %16 = vector.multi_reduction <add>, %15, %cst_7 [1] : vector<128x128xf32> to vector<128xf32>
    %17 = vector.shape_cast %16 : vector<128xf32> to vector<128x1xf32>
    %18 = math.log %17 : vector<128x1xf32>
    %19 = vector.broadcast %18 : vector<128x1xf32> to vector<128x128xf32>
    %20 = arith.subf %14, %19 : vector<128x128xf32>
    %c0_8 = arith.constant 0 : index
    %c0_9 = arith.constant 0 : index
    %21 = vector.load %arg4[%c0_8, %c0_9] : memref<128x128xf32, #tpu.memory_space<vmem>>, vector<128x128xf32>
    tpu.vector_store %arg4[%c0_8, %c0_9], %20 {strides = array<i32>} : memref<128x128xf32, #tpu.memory_space<vmem>>, vector<128x128xf32>,
    return
  }
  func.func @transform_0(%arg0: i32) -> (i32, i32) {
    %c0_i32 = arith.constant 0 : i32
    %c0_i32_0 = arith.constant 0 : i32
    return %arg0, %c0_i32 : i32, i32
  }
  func.func @transform_1(%arg0: i32) -> (i32, i32) {
    %c0_i32 = arith.constant 0 : i32
    %c0_i32_0 = arith.constant 0 : i32
    %c0_i32_1 = arith.constant 0 : i32
    return %c0_i32, %c0_i32_0 : i32, i32
  }
  func.func @transform_2(%arg0: i32) -> (i32, i32) {
    %c0_i32 = arith.constant 0 : i32
    %c0_i32_0 = arith.constant 0 : i32
    %c0_i32_1 = arith.constant 0 : i32
    return %c0_i32, %c0_i32_0 : i32, i32
  }
  func.func @transform_3(%arg0: i32) -> (i32, i32) {
    %c0_i32 = arith.constant 0 : i32
    %c0_i32_0 = arith.constant 0 : i32
    return %arg0, %c0_i32 : i32, i32
  }
}

</mosaic_0001>

<bundles_post_ra>
// kernel: gnn_forward.5
= control target key start
LH: loop header
LB: loop body
LE: loop exit
PB: predicated region body
PF: predicated region fallthrough
CT: control target
= control target key end

     0   :  { %s992_s26 = smov 0   ;;  %s1214_s0 = inlined_call_operand.vmem [shape: f32[256,128], index: 0, kind: input, shape index: {}]   ;;  %s1215_s1 = inlined_call_operand.vmem [shape: f32[128,128], index: 1, kind: input, shape index: {}]   ;;  %s1216_s2 = inlined_call_operand.vmem [shape: f32[1,128], index: 2, kind: input, shape index: {}]   ;;  %s1217_s3 = inlined_call_operand.vmem [shape: f32[1,128], index: 3, kind: input, shape index: {}]   ;;  %s1218_s4 = inlined_call_operand.<no memory space> [shape: f32[1,1], index: 4, kind: input, shape index: {}]   ;;  %s1219_s5 = inlined_call_operand.vmem [shape: f32[256,128], index: 5, kind: output, shape index: {0}]   ;;  %s1220_s6 = inlined_call_operand.vmem [shape: f32[256,1], index: 6, kind: output, shape index: {1}]   ;;  %s1221_s7 = inlined_call_operand.vmem [shape: f32[1,256], index: 7, kind: output, shape index: {2}]  }
   0x1   :  { %13 = sst [smem:[#allocation2]] %s1218_s4 }
   0x2 LB: > { %s998_s27 = sadd.s32 4294967295, %s945_s26   ;;  %p779_p0 = scmp.ge.s32.totalorder %s945_s26, 1  ;;  %s945_s26 = sphi %s992_s26, %s19_s26  }
   0x3   : > { %p244_p1 = scmp.lt.s32.totalorder %s945_s26, 3 }
   0x5   : > { %p245_p2 = pnand %p779_p0, %p244_p1 }
   0x6   : > { %s780_s8 = sshll.u32 (!%p245_p2), %s998_s27, 4  ;;  %s553_s29 = sld [smem:[#allocation2]] (!%p245_p2) }
   0x7   : > { %248 = sbr.rel (%p245_p2) target bundleno = 524 (0x20c), region = 40  ;;  %p285_p3 = scmp.lt.s32.totalorder (!%p245_p2), %s780_s8, 31 }
   0x8   : > { %p302_p4 = scmp.lt.s32.totalorder (!%p245_p2), %s998_s27, 1 }
   0xc   : > { %v336_v0 = vld [vmem:[%s1215_s1 + $0x78] sm:$0xff]  ;;  %v335_v1 = vld [vmem:[%s1215_s1 + $0x70] sm:$0xff]  ;;  %v334_v2 = vld [vmem:[%s1215_s1 + $0x68] sm:$0xff]  ;;  %s1223_s8 = smov (!%p285_p3, %s780_s8), 31  ;;  %v947_v32 = vmov 0.0   ;;  %vm948_vm0 = vmmov 0  }
   0xd   : > { %838 = vmatprep.subr.mxu0 %v336_v0  ;;  %v333_v3 = vld [vmem:[%s1215_s1 + $0x60] sm:$0xff]  ;;  %s1015_s13 = sshll.u32 %s1223_s8, 3  ;;  %v332_v4 = vld [vmem:[%s1215_s1 + $0x58] sm:$0xff]  ;;  %v331_v6 = vld [vmem:[%s1215_s1 + $0x50] sm:$0xff]  ;;  %894 = vmatprep.subr.mxu1 %v947_v32  ;;  %vm571_vm1 = vcmask 7168   ;;  %s1225_s27 = smov (!%p302_p4, %s998_s27), 1 }
   0xe   : > { %839 = vmatpush3.msra.mxu0 %v336_v0  ;;  %s1024_s18 = scalar_lea.vmem %s1214_s0, %s1015_s13  ;;  %v330_v7 = vld [vmem:[%s1215_s1 + $0x48] sm:$0xff]  ;;  %v329_v8 = vld [vmem:[%s1215_s1 + $0x40] sm:$0xff]  ;;  %v328_v9 = vld [vmem:[%s1215_s1 + $0x38] sm:$0xff]  ;;  %926 = vmatprep.mubr.msk.f32.mxu1 %vm948_vm0, %v947_v32  ;;  %s1081_s23 = scalar_lea.vmem %s1219_s5, %s1015_s13 }
   0xf   : > { %840 = vmatprep.subr.mxu0 %v335_v1  ;;  %v305_v5 = vld [vmem:[%s1024_s18] sm:$0xff]  ;;  %v327_v10 = vld [vmem:[%s1215_s1 + $0x30] sm:$0xff]  ;;  %v326_v11 = vld [vmem:[%s1215_s1 + $0x28] sm:$0xff]  ;;  %s1172_s8 = scalar_lea.vmem %s1220_s6, %s1015_s13  ;;  %s304_s10 = scalar_lea.vmem %s1221_s7, %s1225_s27 }
  0x10   : > { %841 = vmatpush3.msra.mxu0 %v335_v1  ;;  %870 = vmatprep.mubr.f32.mxu0 %v305_v5  ;;  %v325_v12 = vld [vmem:[%s1215_s1 + $0x20] sm:$0xff]  ;;  %v324_v13 = vld [vmem:[%s1215_s1 + $0x18] sm:$0xff]  ;;  %v323_v14 = vld [vmem:[%s1215_s1 + $0x10] sm:$0xff] }
  0x11   : > { %842 = vmatprep.subr.mxu0 %v334_v2  ;;  %v322_v15 = vld [vmem:[%s1215_s1 + $0x8] sm:$0xff]  ;;  %v321_v16 = vld [vmem:[%s1215_s1] sm:$0xff]  ;;  %v307_v18 = vld [vmem:[%s1024_s18 + $0x10] sm:$0xff] }
  0x12   : > { %843 = vmatpush3.msra.mxu0 %v334_v2  ;;  %v306_v17 = vld [vmem:[%s1024_s18 + $0x8] sm:$0xff]  ;;  %v308_v19 = vld [vmem:[%s1024_s18 + $0x18] sm:$0xff]  ;;  %v309_v20 = vld [vmem:[%s1024_s18 + $0x20] sm:$0xff] }
  0x13   : > { %844 = vmatprep.subr.mxu0 %v333_v3  ;;  %v310_v21 = vld [vmem:[%s1024_s18 + $0x28] sm:$0xff]  ;;  %v311_v22 = vld [vmem:[%s1024_s18 + $0x30] sm:$0xff]  ;;  %v312_v23 = vld [vmem:[%s1024_s18 + $0x38] sm:$0xff] }
  0x14   : > { %845 = vmatpush3.msra.mxu0 %v333_v3  ;;  %v313_v24 = vld [vmem:[%s1024_s18 + $0x40] sm:$0xff]  ;;  %v314_v25 = vld [vmem:[%s1024_s18 + $0x48] sm:$0xff]  ;;  %v315_v26 = vld [vmem:[%s1024_s18 + $0x50] sm:$0xff]  ;;  %v554_v3 = vstv %s553_s29 }
  0x15   : > { %846 = vmatprep.subr.mxu0 %v332_v4  ;;  %v316_v27 = vld [vmem:[%s1024_s18 + $0x58] sm:$0xff]  ;;  %v317_v28 = vld [vmem:[%s1024_s18 + $0x60] sm:$0xff]  ;;  %v318_v29 = vld [vmem:[%s1024_s18 + $0x68] sm:$0xff] }
  0x16   : > { %847 = vmatpush3.msra.mxu0 %v332_v4  ;;  %v319_v30 = vld [vmem:[%s1024_s18 + $0x70] sm:$0xff]  ;;  %v320_v31 = vld [vmem:[%s1024_s18 + $0x78] sm:$0xff]  ;;  %v1086_v33 = vld [vmem:[%s1216_s2] ss:$0 sm:$0xff] }
  0x17   : > { %848 = vmatprep.subr.mxu0 %v331_v6  ;;  %v588_v2 = vld [vmem:[%s1217_s3] sm:$0x1] }
  0x18   : > { %849 = vmatpush3.msra.mxu0 %v331_v6 }
  0x19   : > { %850 = vmatprep.subr.mxu0 %v330_v7 }
  0x1a   : > { %851 = vmatpush3.msra.mxu0 %v330_v7 }
  0x1b   : > { %852 = vmatprep.subr.mxu0 %v329_v8 }
  0x1c   : > { %853 = vmatpush3.msra.mxu0 %v329_v8 }
  0x1d   : > { %854 = vmatprep.subr.mxu0 %v328_v9 }
  0x1e   : > { %855 = vmatpush3.msra.mxu0 %v328_v9 }
  0x1f   : > { %856 = vmatprep.subr.mxu0 %v327_v10 }
  0x20   : > { %857 = vmatpush3.msra.mxu0 %v327_v10 }
  0x21   : > { %858 = vmatprep.subr.mxu0 %v326_v11 }
  0x22   : > { %859 = vmatpush3.msra.mxu0 %v326_v11 }
  0x23   : > { %860 = vmatprep.subr.mxu0 %v325_v12 }
  0x24   : > { %861 = vmatpush3.msra.mxu0 %v325_v12 }
  0x25   : > { %862 = vmatprep.subr.mxu0 %v324_v13 }
  0x26   : > { %863 = vmatpush3.msra.mxu0 %v324_v13 }
  0x27   : > { %864 = vmatprep.subr.mxu0 %v323_v14 }
  0x28   : > { %865 = vmatpush3.msra.mxu0 %v323_v14 }
  0x29   : > { %866 = vmatprep.subr.mxu0 %v322_v15 }
  0x2a   : > { %867 = vmatpush3.msra.mxu0 %v322_v15 }
  0x2b   : > { %868 = vmatprep.subr.mxu0 %v321_v16 }
  0x2c   : > { %869 = vmatpush3.msra.mxu0 %v321_v16 }
  0x2d   : > { %871 = vmatmul.mubr.f32.vlgmr.msra.gmra.mxu0 %v306_v17 }
  0x2e   : > { %873 = vmatprep.mubr.f32.mxu0 %v307_v18 }
  0x31   : > { %874 = vmatmul.mubr.f32.gmra.mxu0 %v308_v19 }
  0x32   : > { %876 = vmatprep.mubr.f32.mxu0 %v309_v20 }
  0x35   : > { %877 = vmatmul.mubr.f32.gmra.mxu0 %v310_v21 }
  0x36   : > { %879 = vmatprep.mubr.f32.mxu0 %v311_v22 }
  0x39   : > { %880 = vmatmul.mubr.f32.gmra.mxu0 %v312_v23 }
  0x3a   : > { %882 = vmatprep.mubr.f32.mxu0 %v313_v24 }
  0x3d   : > { %883 = vmatmul.mubr.f32.gmra.mxu0 %v314_v25 }
  0x3e   : > { %885 = vmatprep.mubr.f32.mxu0 %v315_v26 }
  0x41   : > { %886 = vmatmul.mubr.f32.gmra.mxu0 %v316_v27 }
  0x42   : > { %888 = vmatprep.mubr.f32.mxu0 %v317_v28 }
  0x45   : > { %889 = vmatmul.mubr.f32.gmra.mxu0 %v318_v29 }
  0x46   : > { %891 = vmatprep.mubr.f32.mxu0 %v319_v30 }
  0x49   : > { %892 = vmatmul.mubr.f32.gmra.mxu0 %v320_v31 }
  0xed   : > { %v1088_v34 = vpop.f32.mrf.mxu0 }
  0xee   : > { %483 = vst [vmem:[%s1081_s23 + $0x8] sm:$0xff] %v1088_v34  ;;  %v506_v35 = vmul.f32 %v1088_v34, %v1086_v33 }
  0xef   : > { %v1094_v36 = vpop.f32.mrf.mxu0 }
  0xf0   : > { %482 = vst [vmem:[%s1081_s23] sm:$0xff] %v1094_v36  ;;  %523 = vadd.xlane.f32.xlu0 %v506_v35  ;;  %v505_v38 = vmul.f32 %v1086_v33, %v1094_v36 }
  0xf1   : > { %v1098_v37 = vpop.f32.mrf.mxu0 }
  0xf2   : > { %485 = vst [vmem:[%s1081_s23 + $0x18] sm:$0xff] %v1098_v37  ;;  %v508_v39 = vmul.f32 %v1098_v37, %v1086_v33 }
  0xf3   : > { %v1106_v40 = vpop.f32.mrf.mxu0 }
  0xf4   : > { %484 = vst [vmem:[%s1081_s23 + $0x10] sm:$0xff] %v1106_v40  ;;  %521 = vadd.xlane.f32.xlu0 %v505_v38  ;;  %527 = vadd.xlane.f32.xlu1 %v508_v39  ;;  %v507_v42 = vmul.f32 %v1086_v33, %v1106_v40 }
  0xf5   : > { %v1110_v41 = vpop.f32.mrf.mxu0 }
  0xf6   : > { %487 = vst [vmem:[%s1081_s23 + $0x28] sm:$0xff] %v1110_v41  ;;  %v510_v46 = vmul.f32 %v1110_v41, %v1086_v33 }
  0xf7   : > { %v1116_v43 = vpop.f32.mrf.mxu0 }
  0xf8   : > { %486 = vst [vmem:[%s1081_s23 + $0x20] sm:$0xff] %v1116_v43  ;;  %525 = vadd.xlane.f32.xlu1 %v507_v42  ;;  %v509_v44 = vmul.f32 %v1086_v33, %v1116_v43 }
  0xf9   : > { %v881_v45 = vpop.f32.mrf.mxu0 }
  0xfa   : > { %489 = vst [vmem:[%s1081_s23 + $0x38] sm:$0xff] %v881_v45  ;;  %529 = vadd.xlane.f32.xlu0 %v509_v44  ;;  %v512_v50 = vmul.f32 %v881_v45, %v1086_v33 }
  0xfb   : > { %v433_v47 = vpop.f32.mrf.mxu0 }
  0xfc   : > { %488 = vst [vmem:[%s1081_s23 + $0x30] sm:$0xff] %v433_v47  ;;  %531 = vadd.xlane.f32.xlu1 %v510_v46  ;;  %v511_v48 = vmul.f32 %v1086_v33, %v433_v47 }
  0xfd   : > { %v884_v49 = vpop.f32.mrf.mxu0 }
  0xfe   : > { %491 = vst [vmem:[%s1081_s23 + $0x48] sm:$0xff] %v884_v49  ;;  %533 = vadd.xlane.f32.xlu0 %v511_v48  ;;  %v514_v54 = vmul.f32 %v884_v49, %v1086_v33 }
  0xff   : > { %v443_v51 = vpop.f32.mrf.mxu0 }
 0x100   : > { %490 = vst [vmem:[%s1081_s23 + $0x40] sm:$0xff] %v443_v51  ;;  %535 = vadd.xlane.f32.xlu1 %v512_v50  ;;  %v513_v52 = vmul.f32 %v1086_v33, %v443_v51 }
 0x101   : > { %v887_v53 = vpop.f32.mrf.mxu0 }
 0x102   : > { %493 = vst [vmem:[%s1081_s23 + $0x58] sm:$0xff] %v887_v53  ;;  %537 = vadd.xlane.f32.xlu0 %v513_v52  ;;  %v516_v58 = vmul.f32 %v887_v53, %v1086_v33 }
 0x103   : > { %v453_v55 = vpop.f32.mrf.mxu0 }
 0x104   : > { %492 = vst [vmem:[%s1081_s23 + $0x50] sm:$0xff] %v453_v55  ;;  %539 = vadd.xlane.f32.xlu1 %v514_v54  ;;  %v515_v56 = vmul.f32 %v1086_v33, %v453_v55 }
 0x105   : > { %v890_v57 = vpop.f32.mrf.mxu0 }
 0x106   : > { %495 = vst [vmem:[%s1081_s23 + $0x68] sm:$0xff] %v890_v57  ;;  %541 = vadd.xlane.f32.xlu0 %v515_v56  ;;  %v518_v62 = vmul.f32 %v890_v57, %v1086_v33 }
 0x107   : > { %v463_v59 = vpop.f32.mrf.mxu0 }
 0x108   : > { %494 = vst [vmem:[%s1081_s23 + $0x60] sm:$0xff] %v463_v59  ;;  %543 = vadd.xlane.f32.xlu1 %v516_v58  ;;  %v517_v60 = vmul.f32 %v1086_v33, %v463_v59 }
 0x109   : > { %v893_v61 = vpop.f32.mrf.mxu0 }
 0x10a   : > { %497 = vst [vmem:[%s1081_s23 + $0x78] sm:$0xff] %v893_v61  ;;  %545 = vadd.xlane.f32.xlu0 %v517_v60  ;;  %895 = vmatpush3.xpose.msra.mxu1 %v893_v61  ;;  %v520_v1 = vmul.f32 %v893_v61, %v1086_v33 }
 0x10b   : > { %v473_v63 = vpop.f32.mrf.mxu0  ;;  %896 = vmatprep.subr.mxu1 %v947_v32 }
 0x10c   : > { %496 = vst [vmem:[%s1081_s23 + $0x70] sm:$0xff] %v473_v63  ;;  %547 = vadd.xlane.f32.xlu1 %v518_v62  ;;  %v519_v0 = vmul.f32 %v1086_v33, %v473_v63 }
 0x10e   : > { %897 = vmatpush3.xpose.msra.mxu1 %v473_v63  ;;  %549 = vadd.xlane.f32.xlu0 %v519_v0 }
 0x10f   : > { %898 = vmatprep.subr.mxu1 %v947_v32 }
 0x110   : > { %551 = vadd.xlane.f32.xlu1 %v520_v1 }
 0x112   : > { %899 = vmatpush3.xpose.msra.mxu1 %v890_v57 }
 0x113   : > { %900 = vmatprep.subr.mxu1 %v947_v32 }
 0x116   : > { %901 = vmatpush3.xpose.msra.mxu1 %v463_v59 }
 0x117   : > { %902 = vmatprep.subr.mxu1 %v947_v32 }
 0x11a   : > { %903 = vmatpush3.xpose.msra.mxu1 %v887_v53 }
 0x11b   : > { %904 = vmatprep.subr.mxu1 %v947_v32 }
 0x11e   : > { %905 = vmatpush3.xpose.msra.mxu1 %v453_v55 }
 0x11f   : > { %906 = vmatprep.subr.mxu1 %v947_v32 }
 0x122   : > { %907 = vmatpush3.xpose.msra.mxu1 %v884_v49 }
 0x123   : > { %908 = vmatprep.subr.mxu1 %v947_v32 }
 0x126   : > { %909 = vmatpush3.xpose.msra.mxu1 %v443_v51 }
 0x127   : > { %910 = vmatprep.subr.mxu1 %v947_v32 }
 0x12a   : > { %911 = vmatpush3.xpose.msra.mxu1 %v881_v45 }
 0x12b   : > { %912 = vmatprep.subr.mxu1 %v947_v32 }
 0x12e   : > { %913 = vmatpush3.xpose.msra.mxu1 %v433_v47 }
 0x12f   : > { %914 = vmatprep.subr.mxu1 %v947_v32 }
 0x132   : > { %915 = vmatpush3.xpose.msra.mxu1 %v1110_v41 }
 0x133   : > { %916 = vmatprep.subr.mxu1 %v947_v32 }
 0x136   : > { %917 = vmatpush3.xpose.msra.mxu1 %v1116_v43 }
 0x137   : > { %918 = vmatprep.subr.mxu1 %v947_v32 }
 0x13a   : > { %919 = vmatpush3.xpose.msra.mxu1 %v1098_v37 }
 0x13b   : > { %920 = vmatprep.subr.mxu1 %v947_v32 }
 0x13e   : > { %921 = vmatpush3.xpose.msra.mxu1 %v1106_v40 }
 0x13f   : > { %922 = vmatprep.subr.mxu1 %v947_v32 }
 0x142   : > { %923 = vmatpush3.xpose.msra.mxu1 %v1088_v34 }
 0x143   : > { %924 = vmatprep.subr.mxu1 %v947_v32 }
 0x146   : > { %925 = vmatpush3.xpose.msra.mxu1 %v1094_v36 }
 0x149   : > { %927 = vmatmul.mubr.f32.vlgmr.msra.gmra.mxu1 %v588_v2 }
 0x179   : > { %v524_v4 = vpop.xlane.xlu0 %523 }
 0x17a   : > { %v556_v5 = vadd.f32 %v554_v3, %v524_v4 }
 0x17c   : > { %573 = vst.msk [vmem:[%s1172_s8 + $0x8] sm:$0xff] %vm571_vm1, %v556_v5 }
 0x17d   : > { %v522_v6 = vpop.xlane.xlu0 %521  ;;  %v528_v7 = vpop.xlane.xlu1 %527 }
 0x17e   : > { %v555_v8 = vadd.f32 %v554_v3, %v522_v6  ;;  %v558_v9 = vadd.f32 %v554_v3, %v528_v7 }
 0x180   : > { %572 = vst.msk [vmem:[%s1172_s8] sm:$0xff] %vm571_vm1, %v555_v8  ;;  %575 = vst.msk [vmem:[%s1172_s8 + $0x18] sm:$0xff] %vm571_vm1, %v558_v9 }
 0x181   : > { %v526_v10 = vpop.xlane.xlu1 %525 }
 0x182   : > { %v557_v11 = vadd.f32 %v554_v3, %v526_v10 }
 0x183   : > { %v530_v12 = vpop.xlane.xlu0 %529 }
 0x184   : > { %574 = vst.msk [vmem:[%s1172_s8 + $0x10] sm:$0xff] %vm571_vm1, %v557_v11  ;;  %v559_v13 = vadd.f32 %v554_v3, %v530_v12 }
 0x185   : > { %v532_v14 = vpop.xlane.xlu1 %531 }
 0x186   : > { %576 = vst.msk [vmem:[%s1172_s8 + $0x20] sm:$0xff] %vm571_vm1, %v559_v13  ;;  %v560_v15 = vadd.f32 %v554_v3, %v532_v14 }
 0x187   : > { %v534_v16 = vpop.xlane.xlu0 %533 }
 0x188   : > { %577 = vst.msk [vmem:[%s1172_s8 + $0x28] sm:$0xff] %vm571_vm1, %v560_v15  ;;  %v561_v17 = vadd.f32 %v554_v3, %v534_v16 }
 0x189   : > { %v536_v18 = vpop.xlane.xlu1 %535 }
 0x18a   : > { %578 = vst.msk [vmem:[%s1172_s8 + $0x30] sm:$0xff] %vm571_vm1, %v561_v17  ;;  %v562_v19 = vadd.f32 %v554_v3, %v536_v18 }
 0x18b   : > { %v538_v20 = vpop.xlane.xlu0 %537 }
 0x18c   : > { %579 = vst.msk [vmem:[%s1172_s8 + $0x38] sm:$0xff] %vm571_vm1, %v562_v19  ;;  %v563_v21 = vadd.f32 %v554_v3, %v538_v20 }
 0x18d   : > { %v540_v22 = vpop.xlane.xlu1 %539 }
 0x18e   : > { %580 = vst.msk [vmem:[%s1172_s8 + $0x40] sm:$0xff] %vm571_vm1, %v563_v21  ;;  %v564_v23 = vadd.f32 %v554_v3, %v540_v22 }
 0x18f   : > { %v542_v24 = vpop.xlane.xlu0 %541 }
 0x190   : > { %581 = vst.msk [vmem:[%s1172_s8 + $0x48] sm:$0xff] %vm571_vm1, %v564_v23  ;;  %v565_v25 = vadd.f32 %v554_v3, %v542_v24 }
 0x191   : > { %v544_v26 = vpop.xlane.xlu1 %543 }
 0x192   : > { %582 = vst.msk [vmem:[%s1172_s8 + $0x50] sm:$0xff] %vm571_vm1, %v565_v25  ;;  %v566_v27 = vadd.f32 %v554_v3, %v544_v26 }
 0x193   : > { %v546_v28 = vpop.xlane.xlu0 %545 }
 0x194   : > { %583 = vst.msk [vmem:[%s1172_s8 + $0x58] sm:$0xff] %vm571_vm1, %v566_v27  ;;  %v567_v29 = vadd.f32 %v554_v3, %v546_v28 }
 0x195   : > { %v548_v30 = vpop.xlane.xlu1 %547 }
 0x196   : > { %584 = vst.msk [vmem:[%s1172_s8 + $0x60] sm:$0xff] %vm571_vm1, %v567_v29  ;;  %v568_v31 = vadd.f32 %v554_v3, %v548_v30 }
 0x197   : > { %v550_v32 = vpop.xlane.xlu0 %549 }
 0x198   : > { %585 = vst.msk [vmem:[%s1172_s8 + $0x68] sm:$0xff] %vm571_vm1, %v568_v31  ;;  %v569_v33 = vadd.f32 %v554_v3, %v550_v32 }
 0x199   : > { %v552_v34 = vpop.xlane.xlu1 %551 }
 0x19a   : > { %586 = vst.msk [vmem:[%s1172_s8 + $0x70] sm:$0xff] %vm571_vm1, %v569_v33  ;;  %v570_v35 = vadd.f32 %v554_v3, %v552_v34 }
 0x19c   : > { %587 = vst.msk [vmem:[%s1172_s8 + $0x78] sm:$0xff] %vm571_vm1, %v570_v35 }
 0x209   : > { %v655_v36 = vpop.f32.mrf.mxu1 }
 0x20a   : > { %659 = vst [vmem:[%s304_s10] sm:$0x1] %v655_v36 }
 0x20b   : > { %v928_v37 = vpop.f32.mrf.mxu1 }
 0x20c PF: > { %s19_s26 = sadd.s32 1, %s945_s26  }
 0x20d   : > { %p16_p5 = scmp.ge.s32.totalorder %s19_s26, 4  }
 0x20f   :  { %18 = sbr.rel (!%p16_p5) target bundleno = 2 (0x2), region = 94 }

// kernel: gnn_forward.6
= control target key start
LH: loop header
LB: loop body
LE: loop exit
PB: predicated region body
PF: predicated region fallthrough
CT: control target
= control target key end

     0   :  { %s1645_s15 = smov 0   ;;  %s1647_s16 = smov 0   ;;  %s2072_s0 = inlined_call_operand.vmem [shape: f32[256,1], index: 0, kind: input, shape index: {}]   ;;  %s2073_s1 = inlined_call_operand.vmem [shape: f32[1,256], index: 1, kind: input, shape index: {}]   ;;  %s2074_s2 = inlined_call_operand.vmem [shape: f32[256,128], index: 2, kind: input, shape index: {}]   ;;  %s2075_s3 = inlined_call_operand.vmem [shape: bf16[256,256], index: 3, kind: input, shape index: {}]   ;;  %s2076_s4 = inlined_call_operand.vmem [shape: f32[256,128], index: 4, kind: output, shape index: {}]  }
   0x1   :  { %s1649_s17 = smov 0   ;;  %s1651_s18 = smov 0  }
   0x2   :  { %s1653_s19 = smov 0   ;;  %s1655_s20 = smov 0  }
   0x3   :  { %s1657_s21 = smov 0  }
   0x4 LB: > { %s23_s22 = sadd.s32 1, %s1607_s19  ;;  %s26_s23 = sadd.s32 1, %s1611_s20  ;;  %s1615_s21 = sphi %s1657_s21, %s14_s21   ;;  %s1611_s20 = sphi %s1655_s20, %s2112_s20   ;;  %s1607_s19 = sphi %s1653_s19, %s2111_s19   ;;  %s1603_s18 = sphi %s1651_s18, %s2110_s18   ;;  %s1599_s17 = sphi %s1649_s17, %s2109_s17   ;;  %s1595_s16 = sphi %s1647_s16, %s2108_s16   ;;  %s1591_s15 = sphi %s1645_s15, %s2107_s15  }
   0x5   : > { %p24_p0 = scmp.ge.s32.totalorder %s23_s22, 2  ;;  %p120_p1 = scmp.ne.s32.totalorder %s1595_s16, %s1591_s15 }
   0x6   : > { %p121_p2 = scmp.eq.s32.totalorder %s1615_s21, 0  ;;  %s113_s27 = sadd.s32 1, %s1595_s16 }
   0x7   : > { %s2114_s22 = smov (%p24_p0, %s23_s22), 0  ;;  %s2116_s23 = smov (!%p24_p0, %s26_s23), %s1611_s20 }
   0x8   : > { %p122_p3 = por %p121_p2, %p120_p1  ;;  %p28_p4 = scmp.ge.s32.totalorder %s2116_s23, 2 }
   0x9   : > { %s109_s24 = ssub.s32 %s1607_s19, %s2114_s22  ;;  %p1295_p6 = scmp.ge.s32.totalorder %s1615_s21, 4 }
   0xa   : > { %s2118_s23 = smov (%p28_p4, %s2116_s23), 0 }
   0xb   : > { %s108_s25 = ssub.s32 %s1611_s20, %s2118_s23  ;;  %172 = sbr.rel (%p1295_p6) target bundleno = 32 (0x20), region = 16 }
   0xc   : > { %s110_s26 = sor.u32 %s109_s24, %s108_s25 }
   0xd   : > { %p111_p5 = scmp.eq.s32.totalorder %s110_s26, 0 }
   0xf   : > { %s1696_s28 = scalar_select %p111_p5, %s1595_s16, %s113_s27  }
  0x10   : > { %199 = sbr.rel (!%p122_p3) target bundleno = 32 (0x20), region = 32  ;;  %s201_s29 = sand.u32 (%p122_p3), 1, %s1595_s16  }
  0x11   : > { %s1313_s30 = sshll.u32 (%p122_p3), %s1611_s20, 5  ;;  %s1296_s5 = sshll.u32 (%p122_p3), %s201_s29, 6 }
  0x12   : > { %s206_s6 = sadd.s32 (%p122_p3), %s1607_s19, %s1313_s30  ;;  %s203_s11 = scalar_lea.vmem (%p122_p3), [#allocation4], %s1296_s5 }
  0x13   : > { %s1299_s7 = sshll.u32 (%p122_p3), %s206_s6, 2 }
  0x14   : > { %s1705_s10 = scalar_lea.vmem (%p122_p3), %s2075_s3, %s1299_s7 }
  0x15   : > { %v225_v0 = vld [vmem:[%s1705_s10] sm:$0xf]  ;;  %v227_v1 = vld [vmem:[%s1705_s10 + $0x8] sm:$0xf]  ;;  %v229_v2 = vld [vmem:[%s1705_s10 + $0x10] sm:$0xf] }
  0x16   : > { %226 = vst [vmem:[%s203_s11] sm:$0xf] %v225_v0  ;;  %228 = vst [vmem:[%s203_s11 + $0x4] sm:$0xf] %v227_v1  ;;  %v231_v3 = vld [vmem:[%s1705_s10 + $0x18] sm:$0xf] }
  0x17   : > { %230 = vst [vmem:[%s203_s11 + $0x8] sm:$0xf] %v229_v2  ;;  %v233_v4 = vld [vmem:[%s1705_s10 + $0x20] sm:$0xf]  ;;  %v235_v5 = vld [vmem:[%s1705_s10 + $0x28] sm:$0xf] }
  0x18   : > { %232 = vst [vmem:[%s203_s11 + $0xc] sm:$0xf] %v231_v3  ;;  %234 = vst [vmem:[%s203_s11 + $0x10] sm:$0xf] %v233_v4  ;;  %v237_v6 = vld [vmem:[%s1705_s10 + $0x30] sm:$0xf] }
  0x19   : > { %236 = vst [vmem:[%s203_s11 + $0x14] sm:$0xf] %v235_v5  ;;  %v239_v7 = vld [vmem:[%s1705_s10 + $0x38] sm:$0xf]  ;;  %v241_v8 = vld [vmem:[%s1705_s10 + $0x40] sm:$0xf] }
  0x1a   : > { %238 = vst [vmem:[%s203_s11 + $0x18] sm:$0xf] %v237_v6  ;;  %240 = vst [vmem:[%s203_s11 + $0x1c] sm:$0xf] %v239_v7  ;;  %v243_v9 = vld [vmem:[%s1705_s10 + $0x48] sm:$0xf] }
  0x1b   : > { %242 = vst [vmem:[%s203_s11 + $0x20] sm:$0xf] %v241_v8  ;;  %v245_v10 = vld [vmem:[%s1705_s10 + $0x50] sm:$0xf]  ;;  %v247_v11 = vld [vmem:[%s1705_s10 + $0x58] sm:$0xf] }
  0x1c   : > { %244 = vst [vmem:[%s203_s11 + $0x24] sm:$0xf] %v243_v9  ;;  %246 = vst [vmem:[%s203_s11 + $0x28] sm:$0xf] %v245_v10  ;;  %v249_v12 = vld [vmem:[%s1705_s10 + $0x60] sm:$0xf] }
  0x1d   : > { %248 = vst [vmem:[%s203_s11 + $0x2c] sm:$0xf] %v247_v11  ;;  %v251_v13 = vld [vmem:[%s1705_s10 + $0x68] sm:$0xf]  ;;  %v253_v14 = vld [vmem:[%s1705_s10 + $0x70] sm:$0xf] }
  0x1e   : > { %250 = vst [vmem:[%s203_s11 + $0x30] sm:$0xf] %v249_v12  ;;  %252 = vst [vmem:[%s203_s11 + $0x34] sm:$0xf] %v251_v13  ;;  %v255_v15 = vld [vmem:[%s1705_s10 + $0x78] sm:$0xf] }
  0x1f   : > { %254 = vst [vmem:[%s203_s11 + $0x38] sm:$0xf] %v253_v14  ;;  %256 = vst [vmem:[%s203_s11 + $0x3c] sm:$0xf] %v255_v15 }
  0x20 PF: > { %p1300_p7 = scmp.ge.s32.totalorder %s1615_s21, 1  ;;  %p311_p8 = scmp.lt.s32.totalorder %s1615_s21, 5 }
  0x22   : > { %p312_p9 = pnand %p1300_p7, %p311_p8 }
  0x23   : > { %s1302_s12 = sshll.u32 (!%p312_p9), %s1603_s18, 4  ;;  %s1304_s29 = sshll.u32 (!%p312_p9), %s1599_s17, 4 }
  0x24   : > { %315 = sbr.rel (%p312_p9) target bundleno = 653 (0x28d), region = 73  ;;  %p357_p10 = scmp.lt.s32.totalorder (!%p312_p9), %s1302_s12, 31 }
  0x25   : > { %p366_p11 = scmp.lt.s32.totalorder (!%p312_p9), %s1304_s29, 31  ;;  %s318_s8 = sand.u32 (!%p312_p9), 1, %s1591_s15  }
  0x26   : > { %s1301_s9 = sshll.u32 (!%p312_p9), %s318_s8, 6  ;;  %p362_p12 = scmp.lt.s32.totalorder (!%p312_p9), %s1599_s17, 1 }
  0x27   : > { %s1761_s10 = scalar_lea.vmem (!%p312_p9), [#allocation4], %s1301_s9  ;;  %p1309_p13 = scmp.ne.s32.totalorder (!%p312_p9), %s1599_s17, 0 }
  0x29   : > { %v1617_v16 = vmov 0   ;;  %s2120_s12 = smov (!%p357_p10, %s1302_s12), 31  ;;  %s2122_s29 = smov (!%p366_p11, %s1304_s29), 31  ;;  %v550_v33 = vld [vmem:[%s1761_s10 + $0x8] sm:$0xf] }
  0x2a   : > { %1494 = vset.pattern.permute.xlu1 %v1617_v16  ;;  %1493 = vset.pattern.permute.xlu0 %v1617_v16  ;;  %s1303_s13 = sshll.u32 %s2120_s12, 3  ;;  %s1305_s30 = sshll.u32 %s2122_s29, 3  ;;  %v548_v34 = vld [vmem:[%s1761_s10] sm:$0xf]  ;;  %vm566_vm0 = vcmp.gt.bf16.partialorder %v550_v33, 0 }
  0x2b   : > { %s1731_s25 = scalar_lea.vmem %s2072_s0, %s1303_s13  ;;  %s1736_s18 = scalar_lea.vmem %s2076_s4, %s1303_s13  ;;  %v551_v35 = vld [vmem:[%s1761_s10 + $0xc] sm:$0xf]  ;;  %v549_v36 = vld [vmem:[%s1761_s10 + $0x4] sm:$0xf]  ;;  %vm564_vm1 = vcmp.gt.bf16.partialorder %v548_v34, 0  ;;  %v582_v39 = vsel %vm566_vm0, 65537, %v1617_v16 }
  0x2c   : > { %v383_v17 = vld [vmem:[%s1731_s25 + $0x10] sm:$0xff]  ;;  %v381_v18 = vld [vmem:[%s1731_s25] sm:$0xff]  ;;  %v384_v19 = vld [vmem:[%s1731_s25 + $0x18] sm:$0xff]  ;;  %s1758_s7 = scalar_lea.vmem %s2074_s2, %s1305_s30  ;;  %vm567_vm2 = vcmp.gt.bf16.partialorder %v551_v35, 0  ;;  %vm565_vm3 = vcmp.gt.bf16.partialorder %v549_v36, 0  ;;  %v580_v40 = vsel %vm564_vm1, 65537, %v1617_v16  ;;  %v598_v44 = vunpack.c.l.b16 %v582_v39 }
  0x2d   : > { %410 = vperm.xlu1 %1494, %v383_v17   ;;  %400 = vperm.xlu0 %1493, %v381_v18   ;;  %v382_v20 = vld [vmem:[%s1731_s25 + $0x8] sm:$0xff]  ;;  %v385_v22 = vld [vmem:[%s1731_s25 + $0x20] sm:$0xff]  ;;  %v388_v23 = vld [vmem:[%s1731_s25 + $0x38] sm:$0xff]  ;;  %s363_s15 = scalar_select %p362_p12, %s1599_s17, 1  ;;  %v583_v45 = vsel %vm567_vm2, 65537, %v1617_v16  ;;  %v581_v46 = vsel %vm565_vm3, 65537, %v1617_v16  ;;  %v596_v48 = vunpack.c.l.b16 %v580_v40 }
  0x2e   : > { %v386_v21 = vld [vmem:[%s1731_s25 + $0x28] sm:$0xff]  ;;  %v387_v24 = vld [vmem:[%s1731_s25 + $0x30] sm:$0xff]  ;;  %v389_v26 = vld [vmem:[%s1731_s25 + $0x40] sm:$0xff]  ;;  %v599_v52 = vunpack.c.l.b16 %v583_v45  ;;  %v597_v53 = vunpack.c.l.b16 %v581_v46  ;;  %vm1787_vm10 = vcmp.ne.s32.totalorder %v598_v44, 0 }
  0x2f   : > { %v390_v25 = vld [vmem:[%s1731_s25 + $0x48] sm:$0xff]  ;;  %v392_v27 = vld [vmem:[%s1731_s25 + $0x58] sm:$0xff]  ;;  %v391_v28 = vld [vmem:[%s1731_s25 + $0x50] sm:$0xff]  ;;  %s364_s13 = scalar_lea.vmem %s2073_s1, %s363_s15  ;;  %vm1793_vm11 = vcmp.ne.s32.totalorder %v596_v48, 0 }
  0x30   : > { %v394_v29 = vld [vmem:[%s1731_s25 + $0x68] sm:$0xff]  ;;  %v393_v30 = vld [vmem:[%s1731_s25 + $0x60] sm:$0xff]  ;;  %v396_v31 = vld [vmem:[%s1731_s25 + $0x78] sm:$0xff]  ;;  %vm1806_vm13 = vcmp.ne.s32.totalorder %v599_v52, 0  ;;  %vm1810_vm14 = vcmp.ne.s32.totalorder %v597_v53, 0 }
  0x31   : > { %415 = vperm.xlu1 %1494, %v384_v19   ;;  %405 = vperm.xlu0 %1493, %v382_v20   ;;  %v395_v32 = vld [vmem:[%s1731_s25 + $0x70] sm:$0xff]  ;;  %v555_v41 = vld [vmem:[%s1761_s10 + $0x1c] sm:$0xf]  ;;  %v554_v42 = vld [vmem:[%s1761_s10 + $0x18] sm:$0xf] }
  0x32   : > { %v553_v37 = vld [vmem:[%s1761_s10 + $0x14] sm:$0xf]  ;;  %v552_v38 = vld [vmem:[%s1761_s10 + $0x10] sm:$0xf]  ;;  %v557_v43 = vld [vmem:[%s1761_s10 + $0x24] sm:$0xf] }
  0x33   : > { %vm569_vm4 = vcmp.gt.bf16.partialorder %v553_v37, 0  ;;  %vm568_vm5 = vcmp.gt.bf16.partialorder %v552_v38, 0  ;;  %v556_v47 = vld [vmem:[%s1761_s10 + $0x20] sm:$0xf]  ;;  %vm571_vm6 = vcmp.gt.bf16.partialorder %v555_v41, 0  ;;  %vm570_vm7 = vcmp.gt.bf16.partialorder %v554_v42, 0 }
  0x34   : > { %v585_v49 = vsel %vm569_vm4, 65537, %v1617_v16  ;;  %v584_v50 = vsel %vm568_vm5, 65537, %v1617_v16  ;;  %vm573_vm8 = vcmp.gt.bf16.partialorder %v557_v43, 0  ;;  %v1784_v51 = vld [vmem:[%s364_s13] ss:$0 sm:$0xff]  ;;  %vm572_vm9 = vcmp.gt.bf16.partialorder %v556_v47, 0 }
  0x35   : > { %425 = vperm.xlu1 %1494, %v386_v21   ;;  %420 = vperm.xlu0 %1493, %v385_v22   ;;  %v559_v54 = vld [vmem:[%s1761_s10 + $0x2c] sm:$0xf]  ;;  %v587_v56 = vsel %vm571_vm6, 65537, %v1617_v16  ;;  %v586_v57 = vsel %vm570_vm7, 65537, %v1617_v16  ;;  %v601_v61 = vunpack.c.l.b16 %v585_v49  ;;  %v600_v62 = vunpack.c.l.b16 %v584_v50  ;;  %v558_v3 = vld [vmem:[%s1761_s10 + $0x28] sm:$0xf] }
  0x36   : > { %v1798_v63 = vsel %vm573_vm8, 65537, %v1617_v16  ;;  %v1803_v2 = vsel %vm572_vm9, 65537, %v1617_v16  ;;  %vm575_vm12 = vcmp.gt.bf16.partialorder %v559_v54, 0  ;;  %v603_v6 = vunpack.c.l.b16 %v587_v56  ;;  %v561_v8 = vld [vmem:[%s1761_s10 + $0x34] sm:$0xf] }
  0x37   : > { %v602_v7 = vunpack.c.l.b16 %v586_v57  ;;  %v560_v9 = vld [vmem:[%s1761_s10 + $0x30] sm:$0xf]  ;;  %vm1816_vm1 = vcmp.ne.s32.totalorder %v601_v61, 0  ;;  %v605_v15 = vunpack.c.l.b16 %v1798_v63  ;;  %v604_v17 = vunpack.c.l.b16 %v1803_v2  ;;  %v563_v42 = vld [vmem:[%s1761_s10 + $0x3c] sm:$0xf] }
  0x38   : > { %v591_v18 = vsel %vm575_vm12, 65537, %v1617_v16  ;;  %vm574_vm2 = vcmp.gt.bf16.partialorder %v558_v3, 0  ;;  %vm1826_vm3 = vcmp.ne.s32.totalorder %v600_v62, 0  ;;  %vm577_vm4 = vcmp.gt.bf16.partialorder %v561_v8, 0  ;;  %v562_v43 = vld [vmem:[%s1761_s10 + $0x38] sm:$0xf] }
  0x39   : > { %435 = vperm.xlu1 %1494, %v388_v23   ;;  %430 = vperm.xlu0 %1493, %v387_v24   ;;  %vm576_vm5 = vcmp.gt.bf16.partialorder %v560_v9, 0  ;;  %vm1834_vm8 = vcmp.ne.s32.totalorder %v603_v6, 0  ;;  %v607_v33 = vunpack.c.l.b16 %v591_v18  ;;  %v590_v34 = vsel %vm574_vm2, 65537, %v1617_v16 }
  0x3a   : > { %vm1842_vm9 = vcmp.ne.s32.totalorder %v602_v7, 0  ;;  %v593_v38 = vsel %vm577_vm4, 65537, %v1617_v16  ;;  %v592_v41 = vsel %vm576_vm5, 65537, %v1617_v16  ;;  %vm1856_vm12 = vcmp.ne.s32.totalorder %v605_v15, 0 }
  0x3b   : > { %v606_v53 = vunpack.c.l.b16 %v590_v34  ;;  %vm1871_vm2 = vcmp.ne.s32.totalorder %v607_v33, 0  ;;  %v608_v4 = vunpack.c.l.b16 %v592_v41 }
  0x3d   : > { %445 = vperm.xlu1 %1494, %v390_v25   ;;  %440 = vperm.xlu0 %1493, %v389_v26  }
  0x41   : > { %455 = vperm.xlu1 %1494, %v392_v27   ;;  %450 = vperm.xlu0 %1493, %v391_v28  }
  0x45   : > { %465 = vperm.xlu1 %1494, %v394_v29   ;;  %460 = vperm.xlu0 %1493, %v393_v30  }
  0x49   : > { %475 = vperm.xlu1 %1494, %v396_v31   ;;  %470 = vperm.xlu0 %1493, %v395_v32  }
  0xa8   : > { %v411_v58 = vpop.permute.xlu1 %410  ;;  %v401_v59 = vpop.permute.xlu0 %400 }
  0xa9   : > { %v486_v0 = vadd.f32 %v1784_v51, %v411_v58  ;;  %v484_v1 = vadd.f32 %v1784_v51, %v401_v59  ;;  %v609_v58 = vunpack.c.l.b16 %v593_v38 }
  0xab   : > { %vm502_vm15 = vcmp.gt.f32.partialorder %v486_v0, 0.0  ;;  %v518_v10 = vmul.f32 0.05, %v486_v0  ;;  %vm500_vm0 = vcmp.gt.f32.partialorder %v484_v1, 0.0  ;;  %v516_v11 = vmul.f32 0.05, %v484_v1 }
  0xac   : > { %v416_v12 = vpop.permute.xlu1 %415  ;;  %v406_v13 = vpop.permute.xlu0 %405  ;;  %vm1887_vm5 = vcmp.ne.s32.totalorder %v609_v58, 0 }
  0xad   : > { %v534_v19 = vsel %vm502_vm15, %v486_v0, %v518_v10  ;;  %v532_v20 = vsel %vm500_vm0, %v484_v1, %v516_v11  ;;  %v487_v21 = vadd.f32 %v1784_v51, %v416_v12  ;;  %v485_v22 = vadd.f32 %v1784_v51, %v406_v13 }
  0xae   : > { %v630_v24 = vsel %vm1787_vm10, %v534_v19, -1e+30  ;;  %v628_v25 = vsel %vm1793_vm11, %v532_v20, -1e+30  ;;  %vm578_vm15 = vcmp.gt.bf16.partialorder %v562_v43, 0 }
  0xaf   : > { %v648_v26 = vmul.f32 1.442695, %v630_v24  ;;  %v644_v27 = vmul.f32 1.442695, %v628_v25  ;;  %vm503_vm6 = vcmp.gt.f32.partialorder %v487_v21, 0.0  ;;  %vm501_vm7 = vcmp.gt.f32.partialorder %v485_v22, 0.0 }
  0xb0   : > { %v519_v28 = vmul.f32 0.05, %v487_v21  ;;  %v517_v29 = vmul.f32 0.05, %v485_v22  ;;  %v426_v30 = vpop.permute.xlu1 %425  ;;  %v421_v31 = vpop.permute.xlu0 %420 }
  0xb1   : > { %1495 = vpow2.f32 %v648_v26  ;;  %v489_v35 = vadd.f32 %v1784_v51, %v426_v30  ;;  %v488_v36 = vadd.f32 %v1784_v51, %v421_v31 }
  0xb2   : > { %1497 = vpow2.f32 %v644_v27  ;;  %v535_v39 = vsel %vm503_vm6, %v487_v21, %v519_v28  ;;  %v533_v40 = vsel %vm501_vm7, %v485_v22, %v517_v29  ;;  %vm1892_vm7 = vcmp.ne.s32.totalorder %v608_v4, 0 }
  0xb3   : > { %v631_v44 = vsel %vm1806_vm13, %v535_v39, -1e+30  ;;  %v629_v45 = vsel %vm1810_vm14, %v533_v40, -1e+30  ;;  %vm505_vm10 = vcmp.gt.f32.partialorder %v489_v35, 0.0  ;;  %vm504_vm11 = vcmp.gt.f32.partialorder %v488_v36, 0.0 }
  0xb4   : > { %v650_v46 = vmul.f32 1.442695, %v631_v44  ;;  %v646_v47 = vmul.f32 1.442695, %v629_v45  ;;  %v521_v48 = vmul.f32 0.05, %v489_v35  ;;  %v436_v49 = vpop.permute.xlu1 %435  ;;  %v431_v50 = vpop.permute.xlu0 %430 }
  0xb5   : > { %v520_v54 = vmul.f32 0.05, %v488_v36  ;;  %v491_v55 = vadd.f32 %v1784_v51, %v436_v49  ;;  %v490_v56 = vadd.f32 %v1784_v51, %v431_v50  ;;  %vm1862_vm13 = vcmp.ne.s32.totalorder %v604_v17, 0 }
  0xb6   : > { %1499 = vpow2.f32 %v650_v46  ;;  %v537_v59 = vsel %vm505_vm10, %v489_v35, %v521_v48  ;;  %vm579_vm14 = vcmp.gt.bf16.partialorder %v563_v42, 0  ;;  %v594_v28 = vsel %vm578_vm15, 65537, %v1617_v16 }
  0xb7   : > { %1501 = vpow2.f32 %v646_v47  ;;  %v633_v60 = vsel %vm1816_vm1, %v537_v59, -1e+30  ;;  %v536_v61 = vsel %vm504_vm11, %v488_v36, %v520_v54  ;;  %vm507_vm0 = vcmp.gt.f32.partialorder %v491_v55, 0.0 }
  0xb8   : > { %v654_v62 = vmul.f32 1.442695, %v633_v60  ;;  %v632_v63 = vsel %vm1826_vm3, %v536_v61, -1e+30  ;;  %v523_v0 = vmul.f32 0.05, %v491_v55  ;;  %v446_v1 = vpop.permute.xlu1 %445  ;;  %v441_v2 = vpop.permute.xlu0 %440  ;;  %v610_v52 = vunpack.c.l.b16 %v594_v28 }
  0xb9   : > { %v652_v5 = vmul.f32 1.442695, %v632_v63  ;;  %vm506_vm4 = vcmp.gt.f32.partialorder %v490_v56, 0.0  ;;  %v522_v6 = vmul.f32 0.05, %v490_v56  ;;  %v493_v7 = vadd.f32 %v1784_v51, %v446_v1 }
  0xba   : > { %vm1876_vm1 = vcmp.ne.s32.totalorder %v606_v53, 0  ;;  %1503 = vpow2.f32 %v654_v62  ;;  %v539_v9 = vsel %vm507_vm0, %v491_v55, %v523_v0  ;;  %v492_v10 = vadd.f32 %v1784_v51, %v441_v2 }
  0xbb   : > { %v595_v11 = vsel %vm579_vm14, 65537, %v1617_v16  ;;  %1505 = vpow2.f32 %v652_v5  ;;  %v635_v12 = vsel %vm1834_vm8, %v539_v9, -1e+30  ;;  %v538_v13 = vsel %vm506_vm4, %v490_v56, %v522_v6 }
  0xbc   : > { %vm509_vm3 = vcmp.gt.f32.partialorder %v493_v7, 0.0  ;;  %v658_v14 = vmul.f32 1.442695, %v635_v12  ;;  %v634_v15 = vsel %vm1842_vm9, %v538_v13, -1e+30  ;;  %v456_v18 = vpop.permute.xlu1 %455  ;;  %v451_v19 = vpop.permute.xlu0 %450  ;;  %vm508_vm6 = vcmp.gt.f32.partialorder %v492_v10, 0.0 }
  0xbd   : > { %v525_v17 = vmul.f32 0.05, %v493_v7  ;;  %v656_v21 = vmul.f32 1.442695, %v634_v15  ;;  %v524_v22 = vmul.f32 0.05, %v492_v10  ;;  %v495_v23 = vadd.f32 %v1784_v51, %v456_v18 }
  0xbe   : > { %v1896_v25 = vpop.eup %1495  ;;  %1507 = vpow2.f32 %v658_v14  ;;  %v494_v27 = vadd.f32 %v1784_v51, %v451_v19  ;;  %v611_v41 = vunpack.c.l.b16 %v595_v11  ;;  %vm626_vm15 = vcmp.ne.s32.totalorder %v610_v52, 0 }
  0xbf   : > { %v541_v26 = vsel %vm509_vm3, %v493_v7, %v525_v17  ;;  %v1901_v29 = vpop.eup %1497  ;;  %1509 = vpow2.f32 %v656_v21  ;;  %v540_v31 = vsel %vm508_vm6, %v492_v10, %v524_v22  ;;  %vm511_vm8 = vcmp.gt.f32.partialorder %v495_v23, 0.0 }
  0xc0   : > { %v637_v30 = vsel %vm1856_vm12, %v541_v26, -1e+30  ;;  %v636_v33 = vsel %vm1862_vm13, %v540_v31, -1e+30  ;;  %v527_v34 = vmul.f32 0.05, %v495_v23  ;;  %v466_v35 = vpop.permute.xlu1 %465  ;;  %v461_v36 = vpop.permute.xlu0 %460 }
  0xc1   : > { %v662_v32 = vmul.f32 1.442695, %v637_v30  ;;  %v660_v37 = vmul.f32 1.442695, %v636_v33  ;;  %vm510_vm9 = vcmp.gt.f32.partialorder %v494_v27, 0.0  ;;  %v497_v16 = vadd.f32 %v1784_v51, %v466_v35 }
  0xc2   : > { %v526_v38 = vmul.f32 0.05, %v494_v27  ;;  %v543_v39 = vsel %vm511_vm8, %v495_v23, %v527_v34  ;;  %v496_v40 = vadd.f32 %v1784_v51, %v461_v36  ;;  %vm1918_vm12 = vcmp.ne.s32.totalorder %v611_v41, 0 }
  0xc3   : > { %1511 = vpow2.f32 %v662_v32  ;;  %v1909_v42 = vpop.eup %1499  ;;  %v639_v43 = vsel %vm1871_vm2, %v543_v39, -1e+30  ;;  %vm513_vm10 = vcmp.gt.f32.partialorder %v497_v16, 0.0  ;;  %v529_v48 = vmul.f32 0.05, %v497_v16 }
  0xc4   : > { %1513 = vpow2.f32 %v660_v37  ;;  %v542_v44 = vsel %vm510_vm9, %v494_v27, %v526_v38  ;;  %v1913_v45 = vpop.eup %1501  ;;  %v666_v46 = vmul.f32 1.442695, %v639_v43  ;;  %v476_v49 = vpop.permute.xlu1 %475  ;;  %vm512_vm11 = vcmp.gt.f32.partialorder %v496_v40, 0.0 }
  0xc5   : > { %v638_v47 = vsel %vm1876_vm1, %v542_v44, -1e+30  ;;  %v471_v50 = vpop.permute.xlu0 %470  ;;  %v528_v54 = vmul.f32 0.05, %v496_v40  ;;  %v499_v55 = vadd.f32 %v1784_v51, %v476_v49  ;;  %v545_v56 = vsel %vm513_vm10, %v497_v16, %v529_v48 }
  0xc6   : > { %v664_v53 = vmul.f32 1.442695, %v638_v47  ;;  %1515 = vpow2.f32 %v666_v46  ;;  %v498_v58 = vadd.f32 %v1784_v51, %v471_v50  ;;  %v641_v60 = vsel %vm1887_vm5, %v545_v56, -1e+30 }
  0xc7   : > { %v1923_v59 = vpop.eup %1503  ;;  %v544_v61 = vsel %vm512_vm11, %v496_v40, %v528_v54  ;;  %vm515_vm13 = vcmp.gt.f32.partialorder %v499_v55, 0.0  ;;  %v670_v63 = vmul.f32 1.442695, %v641_v60  ;;  %v531_v1 = vmul.f32 0.05, %v499_v55 }
  0xc8   : > { %1517 = vpow2.f32 %v664_v53  ;;  %v1927_v62 = vpop.eup %1505  ;;  %v640_v0 = vsel %vm1892_vm7, %v544_v61, -1e+30  ;;  %vm514_vm14 = vcmp.gt.f32.partialorder %v498_v58, 0.0  ;;  %v530_v3 = vmul.f32 0.05, %v498_v58 }
  0xc9   : > { %v668_v2 = vmul.f32 1.442695, %v640_v0  ;;  %1519 = vpow2.f32 %v670_v63  ;;  %v547_v51 = vsel %vm515_vm13, %v499_v55, %v531_v1 }
  0xca   : > { %v643_v5 = vsel %vm1918_vm12, %v547_v51, -1e+30  ;;  %v546_v6 = vsel %vm514_vm14, %v498_v58, %v530_v3 }
  0xcb   : > { %v1931_v4 = vpop.eup %1507  ;;  %1521 = vpow2.f32 %v668_v2  ;;  %v674_v8 = vmul.f32 1.442695, %v643_v5  ;;  %v642_v9 = vsel %vm626_vm15, %v546_v6, -1e+30 }
  0xcc   : > { %v1935_v7 = vpop.eup %1509  ;;  %v672_v10 = vmul.f32 1.442695, %v642_v9 }
  0xcd   : > { %1523 = vpow2.f32 %v674_v8 }
  0xce   : > { %1525 = vpow2.f32 %v672_v10 }
  0xd0   : > { %v1937_v11 = vpop.eup %1511 }
  0xd1   : > { %v1939_v12 = vpop.eup %1513 }
  0xd3   : > { %v1941_v13 = vpop.eup %1515 }
  0xd5   : > { %v1943_v14 = vpop.eup %1517 }
  0xd6   : > { %v1945_v15 = vpop.eup %1519 }
  0xd7   : > { %679 = sbr.rel (%p1309_p13) target bundleno = 237 (0xed), region = 81 }
  0xd8   : > { %v1947_v17 = vpop.eup %1521 }
  0xda   : > { %v1949_v18 = vpop.eup %1523 }
  0xdb   : > { %v1951_v19 = vpop.eup %1525 }
  0xdc   : > { %vm696_vm0 = vcmask 7168   ;;  %v1618_v20 = vmov 0.0  }
  0xdd   : > { %680 = vst [vmem:[#allocation2 + $0x30] sm:$0xff] %v1618_v20  ;;  %681 = vst [vmem:[#allocation2] sm:$0xff] %v1618_v20 }
  0xde   : > { %682 = vst [vmem:[#allocation2 + $0x58] sm:$0xff] %v1618_v20  ;;  %683 = vst [vmem:[#allocation2 + $0x18] sm:$0xff] %v1618_v20 }
  0xdf   : > { %684 = vst [vmem:[#allocation2 + $0x50] sm:$0xff] %v1618_v20  ;;  %685 = vst [vmem:[#allocation2 + $0x68] sm:$0xff] %v1618_v20 }
  0xe0   : > { %686 = vst [vmem:[#allocation2 + $0x8] sm:$0xff] %v1618_v20  ;;  %687 = vst [vmem:[#allocation2 + $0x48] sm:$0xff] %v1618_v20 }
  0xe1   : > { %688 = vst [vmem:[#allocation2 + $0x40] sm:$0xff] %v1618_v20  ;;  %689 = vst [vmem:[#allocation2 + $0x20] sm:$0xff] %v1618_v20 }
  0xe2   : > { %690 = vst [vmem:[#allocation2 + $0x10] sm:$0xff] %v1618_v20  ;;  %691 = vst [vmem:[#allocation2 + $0x38] sm:$0xff] %v1618_v20 }
  0xe3   : > { %692 = vst [vmem:[#allocation2 + $0x60] sm:$0xff] %v1618_v20  ;;  %693 = vst [vmem:[#allocation2 + $0x70] sm:$0xff] %v1618_v20 }
  0xe4   : > { %694 = vst [vmem:[#allocation2 + $0x78] sm:$0xff] %v1618_v20  ;;  %695 = vst [vmem:[#allocation2 + $0x28] sm:$0xff] %v1618_v20 }
  0xe5   : > { %697 = vst.msk [vmem:[#allocation3] sm:$0xff] %vm696_vm0, %v1618_v20  ;;  %698 = vst.msk [vmem:[#allocation3 + $0x8] sm:$0xff] %vm696_vm0, %v1618_v20 }
  0xe6   : > { %699 = vst.msk [vmem:[#allocation3 + $0x10] sm:$0xff] %vm696_vm0, %v1618_v20  ;;  %700 = vst.msk [vmem:[#allocation3 + $0x18] sm:$0xff] %vm696_vm0, %v1618_v20 }
  0xe7   : > { %701 = vst.msk [vmem:[#allocation3 + $0x20] sm:$0xff] %vm696_vm0, %v1618_v20  ;;  %702 = vst.msk [vmem:[#allocation3 + $0x28] sm:$0xff] %vm696_vm0, %v1618_v20 }
  0xe8   : > { %703 = vst.msk [vmem:[#allocation3 + $0x30] sm:$0xff] %vm696_vm0, %v1618_v20  ;;  %704 = vst.msk [vmem:[#allocation3 + $0x38] sm:$0xff] %vm696_vm0, %v1618_v20 }
  0xe9   : > { %705 = vst.msk [vmem:[#allocation3 + $0x40] sm:$0xff] %vm696_vm0, %v1618_v20  ;;  %706 = vst.msk [vmem:[#allocation3 + $0x48] sm:$0xff] %vm696_vm0, %v1618_v20 }
  0xea   : > { %707 = vst.msk [vmem:[#allocation3 + $0x50] sm:$0xff] %vm696_vm0, %v1618_v20  ;;  %708 = vst.msk [vmem:[#allocation3 + $0x58] sm:$0xff] %vm696_vm0, %v1618_v20 }
  0xeb   : > { %709 = vst.msk [vmem:[#allocation3 + $0x60] sm:$0xff] %vm696_vm0, %v1618_v20  ;;  %710 = vst.msk [vmem:[#allocation3 + $0x68] sm:$0xff] %vm696_vm0, %v1618_v20 }
  0xec   : > { %711 = vst.msk [vmem:[#allocation3 + $0x70] sm:$0xff] %vm696_vm0, %v1618_v20  ;;  %712 = vst.msk [vmem:[#allocation3 + $0x78] sm:$0xff] %vm696_vm0, %v1618_v20 }
  0xed PF: > { %v744_v21 = vld [vmem:[%s1758_s7 + $0x78] sm:$0xff]  ;;  %v743_v22 = vld [vmem:[%s1758_s7 + $0x70] sm:$0xff]  ;;  %1378 = vmatprep.mubr.f32.mxu0 %v1901_v29  ;;  %1390 = vmatprep.mubr.f32.mxu1 %v1939_v12  ;;  %v742_v23 = vld [vmem:[%s1758_s7 + $0x68] sm:$0xff]  ;;  %vm986_vm2 = vcmask 7168   ;;  %p1310_p0 = scmp.ne.s32.totalorder %s1599_s17, 1 }
  0xee   : > { %1346 = vmatprep.subr.mxu0 %v744_v21  ;;  %1402 = vmatprep.subr.mxu1 %v744_v21  ;;  %v741_v24 = vld [vmem:[%s1758_s7 + $0x60] sm:$0xff]  ;;  %v740_v26 = vld [vmem:[%s1758_s7 + $0x58] sm:$0xff]  ;;  %v739_v27 = vld [vmem:[%s1758_s7 + $0x50] sm:$0xff] }
  0xef   : > { %1347 = vmatpush3.msra.mxu0 %v744_v21  ;;  %1418 = vmatpush3.msra.mxu1 %v744_v21  ;;  %v738_v28 = vld [vmem:[%s1758_s7 + $0x48] sm:$0xff]  ;;  %v737_v30 = vld [vmem:[%s1758_s7 + $0x40] sm:$0xff]  ;;  %v736_v31 = vld [vmem:[%s1758_s7 + $0x38] sm:$0xff] }
  0xf0   : > { %1348 = vmatprep.subr.mxu0 %v743_v22  ;;  %1403 = vmatprep.subr.mxu1 %v743_v22  ;;  %v735_v32 = vld [vmem:[%s1758_s7 + $0x30] sm:$0xff]  ;;  %v734_v33 = vld [vmem:[%s1758_s7 + $0x28] sm:$0xff]  ;;  %v733_v34 = vld [vmem:[%s1758_s7 + $0x20] sm:$0xff] }
  0xf1   : > { %1349 = vmatpush3.msra.mxu0 %v743_v22  ;;  %1419 = vmatpush3.msra.mxu1 %v743_v22  ;;  %v732_v35 = vld [vmem:[%s1758_s7 + $0x18] sm:$0xff]  ;;  %v731_v36 = vld [vmem:[%s1758_s7 + $0x10] sm:$0xff]  ;;  %v730_v37 = vld [vmem:[%s1758_s7 + $0x8] sm:$0xff] }
  0xf2   : > { %1350 = vmatprep.subr.mxu0 %v742_v23  ;;  %1404 = vmatprep.subr.mxu1 %v742_v23  ;;  %v729_v38 = vld [vmem:[%s1758_s7] sm:$0xff]  ;;  %v923_v43 = vld [vmem:[#allocation3 + $0x8] sm:$0xff]  ;;  %v929_v55 = vld [vmem:[#allocation3 + $0x38] sm:$0xff] }
  0xf3   : > { %1351 = vmatpush3.msra.mxu0 %v742_v23  ;;  %1420 = vmatpush3.msra.mxu1 %v742_v23  ;;  %v927_v48 = vld [vmem:[#allocation3 + $0x28] sm:$0xff]  ;;  %v926_v49 = vld [vmem:[#allocation3 + $0x20] sm:$0xff]  ;;  %v928_v56 = vld [vmem:[#allocation3 + $0x30] sm:$0xff] }
  0xf4   : > { %1352 = vmatprep.subr.mxu0 %v741_v24  ;;  %1405 = vmatprep.subr.mxu1 %v741_v24  ;;  %v931_v61 = vld [vmem:[#allocation3 + $0x48] sm:$0xff]  ;;  %v933_v3 = vld [vmem:[#allocation3 + $0x58] sm:$0xff]  ;;  %v932_v51 = vld [vmem:[#allocation3 + $0x50] sm:$0xff] }
  0xf5   : > { %1353 = vmatpush3.msra.mxu0 %v741_v24  ;;  %1421 = vmatpush3.msra.mxu1 %v741_v24  ;;  %v935_v8 = vld [vmem:[#allocation3 + $0x68] sm:$0xff]  ;;  %v934_v9 = vld [vmem:[#allocation3 + $0x60] sm:$0xff] }
  0xf6   : > { %1354 = vmatprep.subr.mxu0 %v740_v26  ;;  %1406 = vmatprep.subr.mxu1 %v740_v26  ;;  %v714_v21 = vld [vmem:[#allocation2] sm:$0xff] }
  0xf7   : > { %1355 = vmatpush3.msra.mxu0 %v740_v26  ;;  %1422 = vmatpush3.msra.mxu1 %v740_v26  ;;  %v722_v22 = vld [vmem:[#allocation2 + $0x20] sm:$0xff]  ;;  %v713_v26 = vld [vmem:[#allocation2 + $0x30] sm:$0xff] }
  0xf8   : > { %1356 = vmatprep.subr.mxu0 %v739_v27  ;;  %1407 = vmatprep.subr.mxu1 %v739_v27 }
  0xf9   : > { %1357 = vmatpush3.msra.mxu0 %v739_v27  ;;  %1423 = vmatpush3.msra.mxu1 %v739_v27  ;;  %v721_v27 = vld [vmem:[#allocation2 + $0x40] sm:$0xff] }
  0xfa   : > { %1358 = vmatprep.subr.mxu0 %v738_v28  ;;  %1408 = vmatprep.subr.mxu1 %v738_v28 }
  0xfb   : > { %1359 = vmatpush3.msra.mxu0 %v738_v28  ;;  %1424 = vmatpush3.msra.mxu1 %v738_v28 }
  0xfc   : > { %1360 = vmatprep.subr.mxu0 %v737_v30  ;;  %1409 = vmatprep.subr.mxu1 %v737_v30 }
  0xfd   : > { %1361 = vmatpush3.msra.mxu0 %v737_v30  ;;  %1425 = vmatpush3.msra.mxu1 %v737_v30 }
  0xfe   : > { %1362 = vmatprep.subr.mxu0 %v736_v31  ;;  %1410 = vmatprep.subr.mxu1 %v736_v31 }
  0xff   : > { %1363 = vmatpush3.msra.mxu0 %v736_v31  ;;  %1426 = vmatpush3.msra.mxu1 %v736_v31 }
 0x100   : > { %1364 = vmatprep.subr.mxu0 %v735_v32  ;;  %1411 = vmatprep.subr.mxu1 %v735_v32 }
 0x101   : > { %1365 = vmatpush3.msra.mxu0 %v735_v32  ;;  %1427 = vmatpush3.msra.mxu1 %v735_v32 }
 0x102   : > { %1366 = vmatprep.subr.mxu0 %v734_v33  ;;  %1412 = vmatprep.subr.mxu1 %v734_v33 }
 0x103   : > { %1367 = vmatpush3.msra.mxu0 %v734_v33  ;;  %1428 = vmatpush3.msra.mxu1 %v734_v33  ;;  %v716_v33 = vld [vmem:[#allocation2 + $0x18] sm:$0xff] }
 0x104   : > { %1368 = vmatprep.subr.mxu0 %v733_v34  ;;  %1413 = vmatprep.subr.mxu1 %v733_v34 }
 0x105   : > { %1369 = vmatpush3.msra.mxu0 %v733_v34  ;;  %1429 = vmatpush3.msra.mxu1 %v733_v34  ;;  %v724_v34 = vld [vmem:[#allocation2 + $0x38] sm:$0xff] }
 0x106   : > { %1370 = vmatprep.subr.mxu0 %v732_v35  ;;  %1414 = vmatprep.subr.mxu1 %v732_v35 }
 0x107   : > { %1371 = vmatpush3.msra.mxu0 %v732_v35  ;;  %1430 = vmatpush3.msra.mxu1 %v732_v35 }
 0x108   : > { %1372 = vmatprep.subr.mxu0 %v731_v36  ;;  %1415 = vmatprep.subr.mxu1 %v731_v36 }
 0x109   : > { %1373 = vmatpush3.msra.mxu0 %v731_v36  ;;  %1431 = vmatpush3.msra.mxu1 %v731_v36 }
 0x10a   : > { %1374 = vmatprep.subr.mxu0 %v730_v37  ;;  %1416 = vmatprep.subr.mxu1 %v730_v37 }
 0x10b   : > { %1375 = vmatpush3.msra.mxu0 %v730_v37  ;;  %1432 = vmatpush3.msra.mxu1 %v730_v37 }
 0x10c   : > { %1376 = vmatprep.subr.mxu0 %v729_v38  ;;  %1417 = vmatprep.subr.mxu1 %v729_v38 }
 0x10d   : > { %1377 = vmatpush3.msra.mxu0 %v729_v38  ;;  %1433 = vmatpush3.msra.mxu1 %v729_v38 }
 0x10e   : > { %1379 = vmatmul.mubr.f32.vlgmr.msra.gmra.mxu0 %v1913_v45  ;;  %1391 = vmatmul.mubr.f32.vlgmr.msra.gmra.mxu1 %v1937_v11 }
 0x10f   : > { %1381 = vmatprep.mubr.f32.mxu0 %v1896_v25  ;;  %1393 = vmatprep.mubr.f32.mxu1 %v1943_v14 }
 0x110   : > { %942 = vadd.xlane.f32.xlu1 %v1896_v25  ;;  %938 = vadd.xlane.f32.xlu0 %v1901_v29  ;;  %v924_v25 = vld [vmem:[#allocation3 + $0x10] sm:$0xff]  ;;  %v922_v29 = vld [vmem:[#allocation3] sm:$0xff] }
 0x112   : > { %1382 = vmatmul.mubr.f32.gmra.mxu0 %v1909_v42  ;;  %1394 = vmatmul.mubr.f32.gmra.mxu1 %v1941_v13 }
 0x113   : > { %1384 = vmatprep.mubr.f32.mxu0 %v1927_v62  ;;  %1396 = vmatprep.mubr.f32.mxu1 %v1947_v17 }
 0x114   : > { %944 = vadd.xlane.f32.xlu1 %v1909_v42  ;;  %940 = vadd.xlane.f32.xlu0 %v1913_v45  ;;  %v925_v42 = vld [vmem:[#allocation3 + $0x18] sm:$0xff] }
 0x116   : > { %1385 = vmatmul.mubr.f32.gmra.mxu0 %v1923_v59  ;;  %1397 = vmatmul.mubr.f32.gmra.mxu1 %v1945_v15 }
 0x117   : > { %1387 = vmatprep.mubr.f32.mxu0 %v1935_v7  ;;  %1399 = vmatprep.mubr.f32.mxu1 %v1951_v19 }
 0x118   : > { %948 = vadd.xlane.f32.xlu1 %v1923_v59  ;;  %946 = vadd.xlane.f32.xlu0 %v1927_v62  ;;  %v930_v62 = vld [vmem:[#allocation3 + $0x40] sm:$0xff] }
 0x11a   : > { %1388 = vmatmul.mubr.f32.gmra.mxu0 %v1931_v4  ;;  %1400 = vmatmul.mubr.f32.gmra.mxu1 %v1949_v18 }
 0x11c   : > { %952 = vadd.xlane.f32.xlu1 %v1931_v4  ;;  %950 = vadd.xlane.f32.xlu0 %v1935_v7 }
 0x120   : > { %956 = vadd.xlane.f32.xlu1 %v1937_v11  ;;  %954 = vadd.xlane.f32.xlu0 %v1939_v12 }
 0x124   : > { %960 = vadd.xlane.f32.xlu1 %v1941_v13  ;;  %958 = vadd.xlane.f32.xlu0 %v1943_v14  ;;  %v937_v14 = vld [vmem:[#allocation3 + $0x78] sm:$0xff] }
 0x128   : > { %964 = vadd.xlane.f32.xlu1 %v1945_v15  ;;  %962 = vadd.xlane.f32.xlu0 %v1947_v17  ;;  %v936_v15 = vld [vmem:[#allocation3 + $0x70] sm:$0xff] }
 0x12c   : > { %968 = vadd.xlane.f32.xlu1 %v1949_v18  ;;  %966 = vadd.xlane.f32.xlu0 %v1951_v19 }
 0x199   : > { %v943_v16 = vpop.xlane.xlu1 %942  ;;  %v939_v39 = vpop.xlane.xlu0 %938 }
 0x19a   : > { %v972_v40 = vadd.f32 %v943_v16, %v924_v25  ;;  %v970_v41 = vadd.f32 %v939_v39, %v922_v29  ;;  %v715_v25 = vld [vmem:[#allocation2 + $0x58] sm:$0xff]  ;;  %v723_v29 = vld [vmem:[#allocation2 + $0x10] sm:$0xff] }
 0x19c   : > { %989 = vst.msk [vmem:[#allocation3 + $0x10] sm:$0xff] %vm986_vm2, %v972_v40  ;;  %987 = vst.msk [vmem:[#allocation3] sm:$0xff] %vm986_vm2, %v970_v41 }
 0x19d   : > { %v945_v44 = vpop.xlane.xlu1 %944  ;;  %v941_v45 = vpop.xlane.xlu0 %940 }
 0x19e   : > { %v973_v46 = vadd.f32 %v945_v44, %v925_v42  ;;  %v971_v47 = vadd.f32 %v941_v45, %v923_v43  ;;  %v718_v42 = vld [vmem:[#allocation2 + $0x68] sm:$0xff]  ;;  %v726_v43 = vld [vmem:[#allocation2 + $0x70] sm:$0xff] }
 0x1a0   : > { %990 = vst.msk [vmem:[#allocation3 + $0x18] sm:$0xff] %vm986_vm2, %v973_v46  ;;  %988 = vst.msk [vmem:[#allocation3 + $0x8] sm:$0xff] %vm986_vm2, %v971_v47 }
 0x1a1   : > { %v949_v50 = vpop.xlane.xlu1 %948  ;;  %v947_v52 = vpop.xlane.xlu0 %946 }
 0x1a2   : > { %v975_v53 = vadd.f32 %v949_v50, %v927_v48  ;;  %v974_v54 = vadd.f32 %v947_v52, %v926_v49  ;;  %v717_v48 = vld [vmem:[#allocation2 + $0x50] sm:$0xff]  ;;  %v725_v49 = vld [vmem:[#allocation2 + $0x60] sm:$0xff] }
 0x1a4   : > { %992 = vst.msk [vmem:[#allocation3 + $0x28] sm:$0xff] %vm986_vm2, %v975_v53  ;;  %991 = vst.msk [vmem:[#allocation3 + $0x20] sm:$0xff] %vm986_vm2, %v974_v54 }
 0x1a5   : > { %v953_v57 = vpop.xlane.xlu1 %952  ;;  %v951_v58 = vpop.xlane.xlu0 %950 }
 0x1a6   : > { %v977_v59 = vadd.f32 %v953_v57, %v929_v55  ;;  %v976_v60 = vadd.f32 %v951_v58, %v928_v56  ;;  %v720_v55 = vld [vmem:[#allocation2 + $0x48] sm:$0xff] }
 0x1a7   : > { %v728_v56 = vld [vmem:[#allocation2 + $0x28] sm:$0xff] }
 0x1a8   : > { %994 = vst.msk [vmem:[#allocation3 + $0x38] sm:$0xff] %vm986_vm2, %v977_v59  ;;  %993 = vst.msk [vmem:[#allocation3 + $0x30] sm:$0xff] %vm986_vm2, %v976_v60 }
 0x1a9   : > { %v957_v63 = vpop.xlane.xlu1 %956  ;;  %v955_v0 = vpop.xlane.xlu0 %954 }
 0x1aa   : > { %v979_v1 = vadd.f32 %v957_v63, %v931_v61  ;;  %v978_v2 = vadd.f32 %v955_v0, %v930_v62  ;;  %v719_v61 = vld [vmem:[#allocation2 + $0x8] sm:$0xff]  ;;  %v727_v62 = vld [vmem:[#allocation2 + $0x78] sm:$0xff] }
 0x1ac   : > { %996 = vst.msk [vmem:[#allocation3 + $0x48] sm:$0xff] %vm986_vm2, %v979_v1  ;;  %995 = vst.msk [vmem:[#allocation3 + $0x40] sm:$0xff] %vm986_vm2, %v978_v2 }
 0x1ad   : > { %v961_v4 = vpop.xlane.xlu1 %960  ;;  %v959_v5 = vpop.xlane.xlu0 %958 }
 0x1ae   : > { %v981_v6 = vadd.f32 %v961_v4, %v933_v3  ;;  %v980_v7 = vadd.f32 %v959_v5, %v932_v51 }
 0x1b0   : > { %998 = vst.msk [vmem:[#allocation3 + $0x58] sm:$0xff] %vm986_vm2, %v981_v6  ;;  %997 = vst.msk [vmem:[#allocation3 + $0x50] sm:$0xff] %vm986_vm2, %v980_v7 }
 0x1b1   : > { %v965_v10 = vpop.xlane.xlu1 %964  ;;  %v963_v11 = vpop.xlane.xlu0 %962 }
 0x1b2   : > { %v983_v12 = vadd.f32 %v965_v10, %v935_v8  ;;  %v982_v13 = vadd.f32 %v963_v11, %v934_v9 }
 0x1b4   : > { %1000 = vst.msk [vmem:[#allocation3 + $0x68] sm:$0xff] %vm986_vm2, %v983_v12  ;;  %999 = vst.msk [vmem:[#allocation3 + $0x60] sm:$0xff] %vm986_vm2, %v982_v13 }
 0x1b5   : > { %v969_v17 = vpop.xlane.xlu1 %968  ;;  %v967_v18 = vpop.xlane.xlu0 %966 }
 0x1b6   : > { %v985_v19 = vadd.f32 %v969_v17, %v937_v14  ;;  %v984_v20 = vadd.f32 %v967_v18, %v936_v15 }
 0x1b8   : > { %1002 = vst.msk [vmem:[#allocation3 + $0x78] sm:$0xff] %vm986_vm2, %v985_v19  ;;  %1001 = vst.msk [vmem:[#allocation3 + $0x70] sm:$0xff] %vm986_vm2, %v984_v20 }
 0x1ce   : > { %v1380_v23 = vpop.f32.mrf.mxu0  ;;  %v1392_v24 = vpop.f32.mrf.mxu1 }
 0x1cf   : > { %v891_v28 = vadd.f32 %v1380_v23, %v714_v21  ;;  %v899_v30 = vadd.f32 %v1392_v24, %v722_v22 }
 0x1d0   : > { %v811_v31 = vpop.f32.mrf.mxu0  ;;  %v851_v32 = vpop.f32.mrf.mxu1 }
 0x1d1   : > { %907 = vst [vmem:[#allocation2] sm:$0xff] %v891_v28  ;;  %915 = vst [vmem:[#allocation2 + $0x20] sm:$0xff] %v899_v30  ;;  %v890_v35 = vadd.f32 %v811_v31, %v713_v26  ;;  %v898_v36 = vadd.f32 %v851_v32, %v721_v27 }
 0x1d2   : > { %v1383_v37 = vpop.f32.mrf.mxu0  ;;  %v1395_v38 = vpop.f32.mrf.mxu1 }
 0x1d3   : > { %906 = vst [vmem:[#allocation2 + $0x30] sm:$0xff] %v890_v35  ;;  %914 = vst [vmem:[#allocation2 + $0x40] sm:$0xff] %v898_v36  ;;  %v893_v16 = vadd.f32 %v1383_v37, %v716_v33  ;;  %v901_v39 = vadd.f32 %v1395_v38, %v724_v34 }
 0x1d4   : > { %v821_v40 = vpop.f32.mrf.mxu0  ;;  %v861_v41 = vpop.f32.mrf.mxu1 }
 0x1d5   : > { %909 = vst [vmem:[#allocation2 + $0x18] sm:$0xff] %v893_v16  ;;  %917 = vst [vmem:[#allocation2 + $0x38] sm:$0xff] %v901_v39  ;;  %v892_v44 = vadd.f32 %v821_v40, %v715_v25  ;;  %v900_v45 = vadd.f32 %v861_v41, %v723_v29 }
 0x1d6   : > { %v1386_v46 = vpop.f32.mrf.mxu0  ;;  %v1398_v47 = vpop.f32.mrf.mxu1 }
 0x1d7   : > { %908 = vst [vmem:[#allocation2 + $0x58] sm:$0xff] %v892_v44  ;;  %916 = vst [vmem:[#allocation2 + $0x10] sm:$0xff] %v900_v45  ;;  %v895_v50 = vadd.f32 %v1386_v46, %v718_v42  ;;  %v903_v52 = vadd.f32 %v1398_v47, %v726_v43 }
 0x1d8   : > { %v831_v53 = vpop.f32.mrf.mxu0  ;;  %v871_v54 = vpop.f32.mrf.mxu1 }
 0x1d9   : > { %911 = vst [vmem:[#allocation2 + $0x68] sm:$0xff] %v895_v50  ;;  %919 = vst [vmem:[#allocation2 + $0x70] sm:$0xff] %v903_v52  ;;  %v894_v57 = vadd.f32 %v831_v53, %v717_v48  ;;  %v902_v58 = vadd.f32 %v871_v54, %v725_v49 }
 0x1da   : > { %v1389_v59 = vpop.f32.mrf.mxu0  ;;  %v1401_v60 = vpop.f32.mrf.mxu1 }
 0x1db   : > { %910 = vst [vmem:[#allocation2 + $0x50] sm:$0xff] %v894_v57  ;;  %918 = vst [vmem:[#allocation2 + $0x60] sm:$0xff] %v902_v58  ;;  %v897_v63 = vadd.f32 %v1389_v59, %v720_v55  ;;  %v905_v0 = vadd.f32 %v1401_v60, %v728_v56  ;;  %1006 = sbr.rel (%p1310_p0) target bundleno = 653 (0x28d), region = 85 }
 0x1dc   : > { %v841_v1 = vpop.f32.mrf.mxu0  ;;  %v881_v2 = vpop.f32.mrf.mxu1 }
 0x1dd   : > { %913 = vst [vmem:[#allocation2 + $0x48] sm:$0xff] %v897_v63  ;;  %921 = vst [vmem:[#allocation2 + $0x28] sm:$0xff] %v905_v0  ;;  %v896_v3 = vadd.f32 %v841_v1, %v719_v61  ;;  %v904_v51 = vadd.f32 %v881_v2, %v727_v62 }
 0x1df   : > { %912 = vst [vmem:[#allocation2 + $0x8] sm:$0xff] %v896_v3  ;;  %920 = vst [vmem:[#allocation2 + $0x78] sm:$0xff] %v904_v51 }
 0x1e0   : > { %v1009_v4 = vld [vmem:[#allocation3 + $0x10] sm:$0xff]  ;;  %v1007_v5 = vld [vmem:[#allocation3] sm:$0xff]  ;;  %v1010_v6 = vld [vmem:[#allocation3 + $0x18] sm:$0xff]  ;;  %v1619_v7 = vmov 0  }
 0x1e1   : > { %1528 = vset.pattern.permute.xlu1 %v1619_v7  ;;  %1527 = vset.pattern.permute.xlu0 %v1619_v7  ;;  %1529 = vrcp.f32 %v1009_v4  ;;  %v1008_v8 = vld [vmem:[#allocation3 + $0x8] sm:$0xff]  ;;  %v1011_v10 = vld [vmem:[#allocation3 + $0x20] sm:$0xff]  ;;  %v1014_v11 = vld [vmem:[#allocation3 + $0x38] sm:$0xff] }
 0x1e2   : > { %1531 = vrcp.f32 %v1007_v5  ;;  %v1012_v9 = vld [vmem:[#allocation3 + $0x28] sm:$0xff]  ;;  %v1013_v12 = vld [vmem:[#allocation3 + $0x30] sm:$0xff]  ;;  %v1015_v14 = vld [vmem:[#allocation3 + $0x40] sm:$0xff] }
 0x1e3   : > { %1533 = vrcp.f32 %v1010_v6  ;;  %v1016_v13 = vld [vmem:[#allocation3 + $0x48] sm:$0xff]  ;;  %v1018_v19 = vld [vmem:[#allocation3 + $0x58] sm:$0xff]  ;;  %v1017_v21 = vld [vmem:[#allocation3 + $0x50] sm:$0xff] }
 0x1e4   : > { %1535 = vrcp.f32 %v1008_v8  ;;  %v1020_v23 = vld [vmem:[#allocation3 + $0x68] sm:$0xff]  ;;  %v1019_v26 = vld [vmem:[#allocation3 + $0x60] sm:$0xff]  ;;  %v1022_v28 = vld [vmem:[#allocation3 + $0x78] sm:$0xff] }
 0x1e5   : > { %1537 = vrcp.f32 %v1012_v9  ;;  %v1021_v31 = vld [vmem:[#allocation3 + $0x70] sm:$0xff]  ;;  %v1041_v29 = vld [vmem:[#allocation2 + $0x58] sm:$0xff]  ;;  %v1040_v45 = vld [vmem:[#allocation2] sm:$0xff] }
 0x1e6   : > { %1539 = vrcp.f32 %v1011_v10  ;;  %v1039_v16 = vld [vmem:[#allocation2 + $0x30] sm:$0xff]  ;;  %v1042_v43 = vld [vmem:[#allocation2 + $0x18] sm:$0xff]  ;;  %v1044_v52 = vld [vmem:[#allocation2 + $0x68] sm:$0xff] }
 0x1e7   : > { %1541 = vrcp.f32 %v1014_v11  ;;  %v1043_v54 = vld [vmem:[#allocation2 + $0x50] sm:$0xff]  ;;  %v1046_v60 = vld [vmem:[#allocation2 + $0x48] sm:$0xff]  ;;  %v1048_v51 = vld [vmem:[#allocation2 + $0x20] sm:$0xff] }
 0x1e8   : > { %1543 = vrcp.f32 %v1013_v12  ;;  %v1045_v62 = vld [vmem:[#allocation2 + $0x8] sm:$0xff]  ;;  %v1047_v5 = vld [vmem:[#allocation2 + $0x40] sm:$0xff]  ;;  %v1050_v11 = vld [vmem:[#allocation2 + $0x38] sm:$0xff] }
 0x1e9   : > { %1545 = vrcp.f32 %v1016_v13  ;;  %v1049_v13 = vld [vmem:[#allocation2 + $0x10] sm:$0xff] }
 0x1ea   : > { %1547 = vrcp.f32 %v1015_v14 }
 0x1eb   : > { %1549 = vrcp.f32 %v1018_v19 }
 0x1ec   : > { %1551 = vrcp.f32 %v1017_v21 }
 0x1ed   : > { %1553 = vrcp.f32 %v1020_v23 }
 0x1ee   : > { %v1530_v15 = vpop.eup %1529  ;;  %1555 = vrcp.f32 %v1019_v26 }
 0x1ef   : > { %v1532_v17 = vpop.eup %1531  ;;  %1067 = vperm.xlu1 %1528, %v1530_v15   ;;  %1557 = vrcp.f32 %v1022_v28 }
 0x1f0   : > { %v1534_v18 = vpop.eup %1533  ;;  %1057 = vperm.xlu0 %1527, %v1532_v17   ;;  %1559 = vrcp.f32 %v1021_v31 }
 0x1f1   : > { %v1536_v20 = vpop.eup %1535 }
 0x1f2   : > { %v1538_v22 = vpop.eup %1537 }
 0x1f3   : > { %1072 = vperm.xlu1 %1528, %v1534_v18   ;;  %v1540_v24 = vpop.eup %1539 }
 0x1f4   : > { %1062 = vperm.xlu0 %1527, %v1536_v20   ;;  %v1542_v27 = vpop.eup %1541  ;;  %v1052_v20 = vld [vmem:[#allocation2 + $0x70] sm:$0xff] }
 0x1f5   : > { %v1544_v30 = vpop.eup %1543 }
 0x1f6   : > { %v1546_v32 = vpop.eup %1545 }
 0x1f7   : > { %1082 = vperm.xlu1 %1528, %v1538_v22   ;;  %v1548_v33 = vpop.eup %1547  ;;  %v1051_v22 = vld [vmem:[#allocation2 + $0x60] sm:$0xff] }
 0x1f8   : > { %1077 = vperm.xlu0 %1527, %v1540_v24   ;;  %v1550_v34 = vpop.eup %1549 }
 0x1f9   : > { %v1552_v35 = vpop.eup %1551 }
 0x1fa   : > { %v1554_v36 = vpop.eup %1553 }
 0x1fb   : > { %1092 = vperm.xlu1 %1528, %v1542_v27   ;;  %v1556_v37 = vpop.eup %1555 }
 0x1fc   : > { %1087 = vperm.xlu0 %1527, %v1544_v30   ;;  %v1558_v38 = vpop.eup %1557  ;;  %v1054_v30 = vld [vmem:[#allocation2 + $0x28] sm:$0xff] }
 0x1fd   : > { %v1560_v25 = vpop.eup %1559 }
 0x1ff   : > { %1102 = vperm.xlu1 %1528, %v1546_v32   ;;  %v1053_v32 = vld [vmem:[#allocation2 + $0x78] sm:$0xff] }
 0x200   : > { %1097 = vperm.xlu0 %1527, %v1548_v33  }
 0x203   : > { %1112 = vperm.xlu1 %1528, %v1550_v34  }
 0x204   : > { %1107 = vperm.xlu0 %1527, %v1552_v35  }
 0x207   : > { %1122 = vperm.xlu1 %1528, %v1554_v36  }
 0x208   : > { %1117 = vperm.xlu0 %1527, %v1556_v37  }
 0x20b   : > { %1132 = vperm.xlu1 %1528, %v1558_v38  }
 0x20c   : > { %1127 = vperm.xlu0 %1527, %v1560_v25  }
 0x26a   : > { %v1068_v39 = vpop.permute.xlu1 %1067 }
 0x26b   : > { %v1137_v40 = vmul.f32 %v1068_v39, %v1041_v29  ;;  %v1058_v41 = vpop.permute.xlu0 %1057 }
 0x26c   : > { %v1135_v42 = vmul.f32 %v1058_v41, %v1039_v16 }
 0x26d   : > { %v1153_v44 = vmax.f32 %v1137_v40, 0.0 }
 0x26e   : > { %v1151_v46 = vmax.f32 %v1135_v42, 0.0  ;;  %v1073_v47 = vpop.permute.xlu1 %1072 }
 0x26f   : > { %1169 = vst [vmem:[%s1736_s18 + $0x10] sm:$0xff] %v1153_v44  ;;  %v1138_v48 = vmul.f32 %v1073_v47, %v1042_v43  ;;  %v1063_v49 = vpop.permute.xlu0 %1062 }
 0x270   : > { %1167 = vst [vmem:[%s1736_s18] sm:$0xff] %v1151_v46  ;;  %v1136_v50 = vmul.f32 %v1063_v49, %v1040_v45 }
 0x271   : > { %v1154_v53 = vmax.f32 %v1138_v48, 0.0 }
 0x272   : > { %v1152_v55 = vmax.f32 %v1136_v50, 0.0  ;;  %v1083_v56 = vpop.permute.xlu1 %1082 }
 0x273   : > { %1170 = vst [vmem:[%s1736_s18 + $0x18] sm:$0xff] %v1154_v53  ;;  %v1140_v57 = vmul.f32 %v1083_v56, %v1044_v52  ;;  %v1078_v58 = vpop.permute.xlu0 %1077 }
 0x274   : > { %1168 = vst [vmem:[%s1736_s18 + $0x8] sm:$0xff] %v1152_v55  ;;  %v1139_v59 = vmul.f32 %v1078_v58, %v1043_v54 }
 0x275   : > { %v1156_v61 = vmax.f32 %v1140_v57, 0.0 }
 0x276   : > { %v1155_v63 = vmax.f32 %v1139_v59, 0.0  ;;  %v1093_v0 = vpop.permute.xlu1 %1092 }
 0x277   : > { %1172 = vst [vmem:[%s1736_s18 + $0x28] sm:$0xff] %v1156_v61  ;;  %v1142_v1 = vmul.f32 %v1093_v0, %v1046_v60  ;;  %v1088_v2 = vpop.permute.xlu0 %1087 }
 0x278   : > { %1171 = vst [vmem:[%s1736_s18 + $0x20] sm:$0xff] %v1155_v63  ;;  %v1141_v3 = vmul.f32 %v1088_v2, %v1045_v62 }
 0x279   : > { %v1158_v4 = vmax.f32 %v1142_v1, 0.0 }
 0x27a   : > { %v1157_v6 = vmax.f32 %v1141_v3, 0.0  ;;  %v1103_v7 = vpop.permute.xlu1 %1102 }
 0x27b   : > { %1174 = vst [vmem:[%s1736_s18 + $0x38] sm:$0xff] %v1158_v4  ;;  %v1144_v8 = vmul.f32 %v1103_v7, %v1048_v51  ;;  %v1098_v9 = vpop.permute.xlu0 %1097 }
 0x27c   : > { %1173 = vst [vmem:[%s1736_s18 + $0x30] sm:$0xff] %v1157_v6  ;;  %v1143_v10 = vmul.f32 %v1098_v9, %v1047_v5 }
 0x27d   : > { %v1160_v12 = vmax.f32 %v1144_v8, 0.0 }
 0x27e   : > { %v1159_v14 = vmax.f32 %v1143_v10, 0.0  ;;  %v1113_v15 = vpop.permute.xlu1 %1112 }
 0x27f   : > { %1176 = vst [vmem:[%s1736_s18 + $0x48] sm:$0xff] %v1160_v12  ;;  %v1146_v17 = vmul.f32 %v1113_v15, %v1050_v11  ;;  %v1108_v18 = vpop.permute.xlu0 %1107 }
 0x280   : > { %1175 = vst [vmem:[%s1736_s18 + $0x40] sm:$0xff] %v1159_v14  ;;  %v1145_v19 = vmul.f32 %v1108_v18, %v1049_v13 }
 0x281   : > { %v1162_v21 = vmax.f32 %v1146_v17, 0.0 }
 0x282   : > { %v1161_v23 = vmax.f32 %v1145_v19, 0.0  ;;  %v1123_v24 = vpop.permute.xlu1 %1122 }
 0x283   : > { %1178 = vst [vmem:[%s1736_s18 + $0x58] sm:$0xff] %v1162_v21  ;;  %v1148_v26 = vmul.f32 %v1123_v24, %v1052_v20  ;;  %v1118_v27 = vpop.permute.xlu0 %1117 }
 0x284   : > { %1177 = vst [vmem:[%s1736_s18 + $0x50] sm:$0xff] %v1161_v23  ;;  %v1147_v28 = vmul.f32 %v1118_v27, %v1051_v22 }
 0x285   : > { %v1164_v31 = vmax.f32 %v1148_v26, 0.0 }
 0x286   : > { %v1163_v33 = vmax.f32 %v1147_v28, 0.0  ;;  %v1133_v34 = vpop.permute.xlu1 %1132 }
 0x287   : > { %1180 = vst [vmem:[%s1736_s18 + $0x68] sm:$0xff] %v1164_v31  ;;  %v1150_v35 = vmul.f32 %v1133_v34, %v1054_v30  ;;  %v1128_v36 = vpop.permute.xlu0 %1127 }
 0x288   : > { %1179 = vst [vmem:[%s1736_s18 + $0x60] sm:$0xff] %v1163_v33  ;;  %v1149_v37 = vmul.f32 %v1128_v36, %v1053_v32 }
 0x289   : > { %v1166_v38 = vmax.f32 %v1150_v35, 0.0 }
 0x28a   : > { %v1165_v25 = vmax.f32 %v1149_v37, 0.0 }
 0x28b   : > { %1182 = vst [vmem:[%s1736_s18 + $0x78] sm:$0xff] %v1166_v38 }
 0x28c   : > { %1181 = vst [vmem:[%s1736_s18 + $0x70] sm:$0xff] %v1165_v25 }
 0x28d PF: > { %s14_s21 = sadd.s32 1, %s1615_s21   ;;  %s2107_s15 = smov %s1595_s16 }
 0x28e   : > { %p11_p1 = scmp.ge.s32.totalorder %s14_s21, 6   ;;  %s2108_s16 = smov %s1696_s28 }
 0x28f   : > { %s2109_s17 = smov %s1607_s19  ;;  %s2110_s18 = smov %s1611_s20 }
 0x290   : > { %s2111_s19 = smov %s2114_s22  ;;  %s2112_s20 = smov %s2118_s23 }
 0x291   :  { %13 = sbr.rel (!%p11_p1) target bundleno = 4 (0x4), region = 129 }

// kernel: gnn_forward.8
= control target key start
LH: loop header
LB: loop body
LE: loop exit
PB: predicated region body
PF: predicated region fallthrough
CT: control target
= control target key end

     0   :  { %s2647_s0 = inlined_call_operand.vmem [shape: f32[256,1], index: 0, kind: input, shape index: {}]   ;;  %s2648_s1 = inlined_call_operand.vmem [shape: f32[1,256], index: 1, kind: input, shape index: {}]   ;;  %s2649_s2 = inlined_call_operand.vmem [shape: f32[256,128], index: 2, kind: input, shape index: {}]   ;;  %s2650_s3 = inlined_call_operand.vmem [shape: bf16[256,256], index: 3, kind: input, shape index: {}]   ;;  %s2651_s4 = inlined_call_operand.vmem [shape: f32[256,128], index: 4, kind: output, shape index: {0}]   ;;  %s2652_s5 = inlined_call_operand.vmem [shape: f32[256,256], index: 5, kind: output, shape index: {1}]  }
   0x1   :  { %2655 = sst [smem:[#allocation8_spill]] %s2647_s0 }
   0x2   :  { %2656 = sst [smem:[#allocation9_spill]] %s2652_s5 }
   0x3   :  { %s2099_s18 = smov 0   ;;  %s2101_s19 = smov 0  }
   0x4   :  { %s2103_s20 = smov 0   ;;  %s2105_s21 = smov 0  }
   0x5   :  { %s2107_s22 = smov 0   ;;  %s2109_s23 = smov 0  }
   0x6   :  { %s2111_s24 = smov 0   ;;  %s2113_s25 = smov 0  }
   0x7   :  { %s2115_s26 = smov 0   ;;  %s2117_s27 = smov 0  }
   0x8   :  { %s2119_s28 = smov 0  }
   0x9 LB: > { %2657 = sst [smem:[#allocation6_spill]] %s2055_s26  ;;  %s28_s29 = sadd.s32 1, %s2051_s25  ;;  %s2063_s28 = sphi %s2119_s28, %s16_s28   ;;  %s2059_s27 = sphi %s2117_s27, %s2702_s27   ;;  %s2055_s26 = sphi %s2115_s26, %s2694_s26   ;;  %s2051_s25 = sphi %s2113_s25, %s2701_s25   ;;  %s2047_s24 = sphi %s2111_s24, %s2700_s24   ;;  %s2043_s23 = sphi %s2109_s23, %s2693_s23   ;;  %s2039_s22 = sphi %s2107_s22, %s2699_s22   ;;  %s2035_s21 = sphi %s2105_s21, %s2698_s21   ;;  %s2031_s20 = sphi %s2103_s20, %s2697_s20   ;;  %s2027_s19 = sphi %s2101_s19, %s2696_s19   ;;  %s2023_s18 = sphi %s2099_s18, %s2695_s18  }
   0xa   : > { %p29_p0 = scmp.ge.s32.totalorder %s28_s29, 2  ;;  %s31_s30 = sadd.s32 1, %s2055_s26 }
   0xb   : > { %s1633_s6 = sadd.s32 4294967295, %s2063_s28   ;;  %s35_s7 = sadd.s32 1, %s2059_s27 }
   0xc   : > { %s2704_s29 = smov (%p29_p0, %s28_s29), 0  ;;  %s2706_s30 = smov (!%p29_p0, %s31_s30), %s2055_s26 }
   0xd   : > { %p129_p1 = scmp.ne.s32.totalorder %s2035_s21, %s2031_s20  ;;  %p33_p2 = scmp.ge.s32.totalorder %s2706_s30, 2 }
   0xe   : > { %p130_p3 = scmp.eq.s32.totalorder %s2063_s28, 0  ;;  %s118_s8 = ssub.s32 %s2051_s25, %s2704_s29 }
   0xf   : > { %s171_s9 = smul.u32 %s2051_s25, %s2055_s26  ;;  %s2708_s30 = smov (%p33_p2, %s2706_s30), 0 }
  0x10   : > { %2658 = sst [smem:[#allocation7_spill]] %s2708_s30  ;;  %s2710_s7 = smov (!%p33_p2, %s35_s7), %s2059_s27 }
  0x11   : > { %p2171_p4 = por %p130_p3, %p129_p1  ;;  %s172_s11 = smul.u32 %s2708_s30, %s2704_s29 }
  0x12   : > { %p37_p5 = scmp.ge.s32.totalorder %s2710_s7, 2  ;;  %p188_p6 = scmp.ne.s32.totalorder %s2027_s19, %s2023_s18 }
  0x13   : > { %s174_s12 = ssub.s32 %s171_s9, %s172_s11  ;;  %p189_p7 = scmp.eq.s32.totalorder %s1633_s6, 7 }
  0x14   : > { %s2712_s7 = smov (%p37_p5, %s2710_s7), 0  ;;  %s122_s13 = sadd.s32 1, %s2035_s21 }
  0x15   : > { %p2182_p8 = por %p189_p7, %p188_p6  ;;  %s117_s15 = ssub.s32 %s2059_s27, %s2712_s7 }
  0x16   : > { %s178_s16 = sadd.s32 1, %s2027_s19  ;;  %s119_s17 = sor.u32 %s118_s8, %s117_s15 }
  0x17   : > { %s175_s26 = sor.u32 %s174_s12, %s117_s15  ;;  %p120_p9 = scmp.eq.s32.totalorder %s119_s17, 0 }
  0x18   : > { %p176_p10 = scmp.eq.s32.totalorder %s175_s26, 0  ;;  %p1636_p11 = scmp.ge.s32.totalorder %s2063_s28, 8 }
  0x19   : > { %s2190_s5 = scalar_select %p120_p9, %s2035_s21, %s122_s13  }
  0x1a   : > { %s2193_s30 = scalar_select %p176_p10, %s2027_s19, %s178_s16  }
  0x1b   : > { %211 = sbr.rel (%p1636_p11) target bundleno = 48 (0x30), region = 16 }
  0x20   : > { %238 = sbr.rel (!%p2171_p4) target bundleno = 48 (0x30), region = 32  ;;  %s240_s6 = sand.u32 (%p2171_p4), 1, %s2035_s21  }
  0x21   : > { %s1661_s9 = sshll.u32 (%p2171_p4), %s2059_s27, 5  ;;  %s1637_s11 = sshll.u32 (%p2171_p4), %s240_s6, 6 }
  0x22   : > { %s245_s8 = sadd.s32 (%p2171_p4), %s2051_s25, %s1661_s9  ;;  %s242_s10 = scalar_lea.vmem (%p2171_p4), [#allocation4], %s1637_s11 }
  0x23   : > { %s1640_s12 = sshll.u32 (%p2171_p4), %s245_s8, 2 }
  0x24   : > { %s2204_s13 = scalar_lea.vmem (%p2171_p4), %s2650_s3, %s1640_s12 }
  0x25   : > { %v264_v0 = vld [vmem:[%s2204_s13] sm:$0xf]  ;;  %v266_v1 = vld [vmem:[%s2204_s13 + $0x8] sm:$0xf]  ;;  %v268_v2 = vld [vmem:[%s2204_s13 + $0x10] sm:$0xf] }
  0x26   : > { %265 = vst [vmem:[%s242_s10] sm:$0xf] %v264_v0  ;;  %267 = vst [vmem:[%s242_s10 + $0x4] sm:$0xf] %v266_v1  ;;  %v270_v3 = vld [vmem:[%s2204_s13 + $0x18] sm:$0xf] }
  0x27   : > { %269 = vst [vmem:[%s242_s10 + $0x8] sm:$0xf] %v268_v2  ;;  %v272_v4 = vld [vmem:[%s2204_s13 + $0x20] sm:$0xf]  ;;  %v274_v5 = vld [vmem:[%s2204_s13 + $0x28] sm:$0xf] }
  0x28   : > { %271 = vst [vmem:[%s242_s10 + $0xc] sm:$0xf] %v270_v3  ;;  %273 = vst [vmem:[%s242_s10 + $0x10] sm:$0xf] %v272_v4  ;;  %v276_v6 = vld [vmem:[%s2204_s13 + $0x30] sm:$0xf] }
  0x29   : > { %275 = vst [vmem:[%s242_s10 + $0x14] sm:$0xf] %v274_v5  ;;  %v278_v7 = vld [vmem:[%s2204_s13 + $0x38] sm:$0xf]  ;;  %v280_v8 = vld [vmem:[%s2204_s13 + $0x40] sm:$0xf] }
  0x2a   : > { %277 = vst [vmem:[%s242_s10 + $0x18] sm:$0xf] %v276_v6  ;;  %279 = vst [vmem:[%s242_s10 + $0x1c] sm:$0xf] %v278_v7  ;;  %v282_v9 = vld [vmem:[%s2204_s13 + $0x48] sm:$0xf] }
  0x2b   : > { %281 = vst [vmem:[%s242_s10 + $0x20] sm:$0xf] %v280_v8  ;;  %v284_v10 = vld [vmem:[%s2204_s13 + $0x50] sm:$0xf]  ;;  %v286_v11 = vld [vmem:[%s2204_s13 + $0x58] sm:$0xf] }
  0x2c   : > { %283 = vst [vmem:[%s242_s10 + $0x24] sm:$0xf] %v282_v9  ;;  %285 = vst [vmem:[%s242_s10 + $0x28] sm:$0xf] %v284_v10  ;;  %v288_v12 = vld [vmem:[%s2204_s13 + $0x60] sm:$0xf] }
  0x2d   : > { %287 = vst [vmem:[%s242_s10 + $0x2c] sm:$0xf] %v286_v11  ;;  %v290_v13 = vld [vmem:[%s2204_s13 + $0x68] sm:$0xf]  ;;  %v292_v14 = vld [vmem:[%s2204_s13 + $0x70] sm:$0xf] }
  0x2e   : > { %289 = vst [vmem:[%s242_s10 + $0x30] sm:$0xf] %v288_v12  ;;  %291 = vst [vmem:[%s242_s10 + $0x34] sm:$0xf] %v290_v13  ;;  %v294_v15 = vld [vmem:[%s2204_s13 + $0x78] sm:$0xf] }
  0x2f   : > { %293 = vst [vmem:[%s242_s10 + $0x38] sm:$0xf] %v292_v14  ;;  %295 = vst [vmem:[%s242_s10 + $0x3c] sm:$0xf] %v294_v15 }
  0x30 PF: > { %p1641_p12 = scmp.ge.s32.totalorder %s2063_s28, 1  ;;  %p350_p13 = scmp.lt.s32.totalorder %s2063_s28, 9 }
  0x32   : > { %p351_p0 = pnand %p1641_p12, %p350_p13 }
  0x33   : > { %s1644_s16 = sshll.u32 (!%p351_p0), %s2047_s24, 4  ;;  %s2661_s0 = sld [smem:[#allocation8_spill]] (!%p351_p0) }
  0x34   : > { %354 = sbr.rel (%p351_p0) target bundleno = 868 (0x364), region = 73  ;;  %p402_p1 = scmp.lt.s32.totalorder (!%p351_p0), %s1644_s16, 31 }
  0x35   : > { %s1646_s26 = sshll.u32 (!%p351_p0), %s2039_s22, 4  ;;  %s398_s13 = sand.u32 (!%p351_p0), 1, %s2023_s18  }
  0x36   : > { %p411_p2 = scmp.lt.s32.totalorder (!%p351_p0), %s1646_s26, 31  ;;  %s2255_s10 = sshll.u32 (!%p351_p0), %s398_s13, 7 }
  0x37   : > { %s357_s8 = sand.u32 (!%p351_p0), 1, %s2031_s20   ;;  %p407_p3 = scmp.lt.s32.totalorder (!%p351_p0), %s2039_s22, 1 }
  0x38   : > { %s1642_s12 = sshll.u32 (!%p351_p0), %s357_s8, 6  ;;  %p1651_p4 = scmp.ne.s32.totalorder (!%p351_p0), %s2043_s23, 0 }
  0x39   : > { %v2065_v16 = vmov 0   ;;  %s2714_s16 = smov (!%p402_p1, %s1644_s16), 31  ;;  %s2716_s26 = smov (!%p411_p2, %s1646_s26), 31 }
  0x3a   : > { %1876 = vset.pattern.permute.xlu1 %v2065_v16  ;;  %1875 = vset.pattern.permute.xlu0 %v2065_v16  ;;  %s1645_s17 = sshll.u32 %s2714_s16, 3  ;;  %s1647_s16 = sshll.u32 %s2716_s26, 3 }
  0x3b   : > { %s2230_s11 = scalar_lea.vmem %s2661_s0, %s1645_s17  ;;  %s2235_s15 = scalar_lea.vmem %s2651_s4, %s1645_s17 }
  0x3c   : > { %v430_v17 = vld [vmem:[%s2230_s11 + $0x10] sm:$0xff]  ;;  %v428_v18 = vld [vmem:[%s2230_s11] sm:$0xff]  ;;  %v431_v19 = vld [vmem:[%s2230_s11 + $0x18] sm:$0xff]  ;;  %s2260_s9 = scalar_lea.vmem %s2649_s2, %s1647_s16  ;;  %s2263_s0 = scalar_lea.vmem [#allocation4], %s1642_s12 }
  0x3d   : > { %457 = vperm.xlu1 %1876, %v430_v17   ;;  %447 = vperm.xlu0 %1875, %v428_v18   ;;  %v429_v20 = vld [vmem:[%s2230_s11 + $0x8] sm:$0xff]  ;;  %v432_v22 = vld [vmem:[%s2230_s11 + $0x20] sm:$0xff]  ;;  %v435_v23 = vld [vmem:[%s2230_s11 + $0x38] sm:$0xff]  ;;  %s408_s18 = scalar_select %p407_p3, %s2039_s22, 1 }
  0x3e   : > { %v433_v21 = vld [vmem:[%s2230_s11 + $0x28] sm:$0xff]  ;;  %v434_v24 = vld [vmem:[%s2230_s11 + $0x30] sm:$0xff]  ;;  %v436_v26 = vld [vmem:[%s2230_s11 + $0x40] sm:$0xff]  ;;  %p1652_p5 = scmp.ne.s32.totalorder (!%p1651_p4), %s2039_s22, 0 }
  0x3f   : > { %v437_v25 = vld [vmem:[%s2230_s11 + $0x48] sm:$0xff]  ;;  %v439_v27 = vld [vmem:[%s2230_s11 + $0x58] sm:$0xff]  ;;  %v438_v28 = vld [vmem:[%s2230_s11 + $0x50] sm:$0xff]  ;;  %s409_s26 = scalar_lea.vmem %s2648_s1, %s408_s18 }
  0x40   : > { %v441_v29 = vld [vmem:[%s2230_s11 + $0x68] sm:$0xff]  ;;  %v440_v30 = vld [vmem:[%s2230_s11 + $0x60] sm:$0xff]  ;;  %v443_v31 = vld [vmem:[%s2230_s11 + $0x78] sm:$0xff] }
  0x41   : > { %462 = vperm.xlu1 %1876, %v431_v19   ;;  %452 = vperm.xlu0 %1875, %v429_v20   ;;  %v442_v32 = vld [vmem:[%s2230_s11 + $0x70] sm:$0xff]  ;;  %v597_v33 = vld [vmem:[%s2263_s0 + $0x8] sm:$0xf]  ;;  %v595_v34 = vld [vmem:[%s2263_s0] sm:$0xf] }
  0x42   : > { %vm613_vm0 = vcmp.gt.bf16.partialorder %v597_v33, 0  ;;  %v598_v35 = vld [vmem:[%s2263_s0 + $0xc] sm:$0xf]  ;;  %v596_v36 = vld [vmem:[%s2263_s0 + $0x4] sm:$0xf]  ;;  %vm611_vm1 = vcmp.gt.bf16.partialorder %v595_v34, 0 }
  0x43   : > { %v600_v37 = vld [vmem:[%s2263_s0 + $0x14] sm:$0xf]  ;;  %v599_v38 = vld [vmem:[%s2263_s0 + $0x10] sm:$0xf]  ;;  %v629_v39 = vsel %vm613_vm0, 65537, %v2065_v16  ;;  %vm614_vm2 = vcmp.gt.bf16.partialorder %v598_v35, 0 }
  0x44   : > { %vm612_vm3 = vcmp.gt.bf16.partialorder %v596_v36, 0  ;;  %v627_v40 = vsel %vm611_vm1, 65537, %v2065_v16  ;;  %v602_v41 = vld [vmem:[%s2263_s0 + $0x1c] sm:$0xf]  ;;  %v601_v42 = vld [vmem:[%s2263_s0 + $0x18] sm:$0xf]  ;;  %v645_v44 = vunpack.c.l.b16 %v629_v39 }
  0x45   : > { %472 = vperm.xlu1 %1876, %v433_v21   ;;  %467 = vperm.xlu0 %1875, %v432_v22   ;;  %vm616_vm4 = vcmp.gt.bf16.partialorder %v600_v37, 0  ;;  %vm615_vm5 = vcmp.gt.bf16.partialorder %v599_v38, 0  ;;  %v604_v43 = vld [vmem:[%s2263_s0 + $0x24] sm:$0xf]  ;;  %v630_v45 = vsel %vm614_vm2, 65537, %v2065_v16  ;;  %v628_v46 = vsel %vm612_vm3, 65537, %v2065_v16 }
  0x46   : > { %v603_v47 = vld [vmem:[%s2263_s0 + $0x20] sm:$0xf]  ;;  %v643_v48 = vunpack.c.l.b16 %v627_v40  ;;  %vm618_vm6 = vcmp.gt.bf16.partialorder %v602_v41, 0  ;;  %vm617_vm7 = vcmp.gt.bf16.partialorder %v601_v42, 0  ;;  %v632_v49 = vsel %vm616_vm4, 65537, %v2065_v16 }
  0x47   : > { %v631_v50 = vsel %vm615_vm5, 65537, %v2065_v16  ;;  %vm620_vm8 = vcmp.gt.bf16.partialorder %v604_v43, 0  ;;  %v2286_v51 = vld [vmem:[%s409_s26] ss:$0 sm:$0xff]  ;;  %v646_v52 = vunpack.c.l.b16 %v630_v45  ;;  %v644_v53 = vunpack.c.l.b16 %v628_v46  ;;  %v606_v54 = vld [vmem:[%s2263_s0 + $0x2c] sm:$0xf] }
  0x48   : > { %vm619_vm9 = vcmp.gt.bf16.partialorder %v603_v47, 0  ;;  %vm2289_vm10 = vcmp.ne.s32.totalorder %v645_v44, 0  ;;  %v634_v56 = vsel %vm618_vm6, 65537, %v2065_v16  ;;  %v633_v57 = vsel %vm617_vm7, 65537, %v2065_v16  ;;  %v605_v3 = vld [vmem:[%s2263_s0 + $0x28] sm:$0xf] }
  0x49   : > { %482 = vperm.xlu1 %1876, %v435_v23   ;;  %477 = vperm.xlu0 %1875, %v434_v24   ;;  %vm2295_vm11 = vcmp.ne.s32.totalorder %v643_v48, 0  ;;  %v648_v61 = vunpack.c.l.b16 %v632_v49  ;;  %v647_v62 = vunpack.c.l.b16 %v631_v50  ;;  %v2300_v63 = vsel %vm620_vm8, 65537, %v2065_v16  ;;  %v608_v8 = vld [vmem:[%s2263_s0 + $0x34] sm:$0xf]  ;;  %v607_v9 = vld [vmem:[%s2263_s0 + $0x30] sm:$0xf] }
  0x4a   : > { %v2305_v2 = vsel %vm619_vm9, 65537, %v2065_v16  ;;  %vm622_vm12 = vcmp.gt.bf16.partialorder %v606_v54, 0  ;;  %vm2308_vm13 = vcmp.ne.s32.totalorder %v646_v52, 0  ;;  %vm2312_vm14 = vcmp.ne.s32.totalorder %v644_v53, 0  ;;  %v610_v42 = vld [vmem:[%s2263_s0 + $0x3c] sm:$0xf] }
  0x4b   : > { %v650_v6 = vunpack.c.l.b16 %v634_v56  ;;  %v649_v7 = vunpack.c.l.b16 %v633_v57  ;;  %vm2318_vm1 = vcmp.ne.s32.totalorder %v648_v61, 0  ;;  %v652_v15 = vunpack.c.l.b16 %v2300_v63  ;;  %v609_v43 = vld [vmem:[%s2263_s0 + $0x38] sm:$0xf]  ;;  %s2456_s0 = scalar_lea.vmem [#allocation5], %s2255_s10 }
  0x4c   : > { %v651_v17 = vunpack.c.l.b16 %v2305_v2  ;;  %v638_v18 = vsel %vm622_vm12, 65537, %v2065_v16  ;;  %vm621_vm2 = vcmp.gt.bf16.partialorder %v605_v3, 0  ;;  %vm2328_vm3 = vcmp.ne.s32.totalorder %v647_v62, 0 }
  0x4d   : > { %492 = vperm.xlu1 %1876, %v437_v25   ;;  %487 = vperm.xlu0 %1875, %v436_v26   ;;  %vm624_vm4 = vcmp.gt.bf16.partialorder %v608_v8, 0  ;;  %vm623_vm5 = vcmp.gt.bf16.partialorder %v607_v9, 0  ;;  %vm2336_vm8 = vcmp.ne.s32.totalorder %v650_v6, 0  ;;  %v654_v33 = vunpack.c.l.b16 %v638_v18 }
  0x4e   : > { %v637_v34 = vsel %vm621_vm2, 65537, %v2065_v16  ;;  %vm2344_vm9 = vcmp.ne.s32.totalorder %v649_v7, 0  ;;  %v640_v38 = vsel %vm624_vm4, 65537, %v2065_v16  ;;  %v639_v41 = vsel %vm623_vm5, 65537, %v2065_v16 }
  0x4f   : > { %vm2358_vm12 = vcmp.ne.s32.totalorder %v652_v15, 0  ;;  %v653_v53 = vunpack.c.l.b16 %v637_v34  ;;  %vm2373_vm2 = vcmp.ne.s32.totalorder %v654_v33, 0  ;;  %v655_v4 = vunpack.c.l.b16 %v639_v41 }
  0x51   : > { %502 = vperm.xlu1 %1876, %v439_v27   ;;  %497 = vperm.xlu0 %1875, %v438_v28  }
  0x55   : > { %512 = vperm.xlu1 %1876, %v441_v29   ;;  %507 = vperm.xlu0 %1875, %v440_v30  }
  0x59   : > { %522 = vperm.xlu1 %1876, %v443_v31   ;;  %517 = vperm.xlu0 %1875, %v442_v32  }
  0xb8   : > { %v458_v58 = vpop.permute.xlu1 %457  ;;  %v448_v59 = vpop.permute.xlu0 %447 }
  0xb9   : > { %v533_v0 = vadd.f32 %v2286_v51, %v458_v58  ;;  %v531_v1 = vadd.f32 %v2286_v51, %v448_v59  ;;  %v656_v58 = vunpack.c.l.b16 %v640_v38 }
  0xbb   : > { %vm549_vm15 = vcmp.gt.f32.partialorder %v533_v0, 0.0  ;;  %v565_v10 = vmul.f32 0.05, %v533_v0  ;;  %vm547_vm0 = vcmp.gt.f32.partialorder %v531_v1, 0.0  ;;  %v563_v11 = vmul.f32 0.05, %v531_v1 }
  0xbc   : > { %v463_v12 = vpop.permute.xlu1 %462  ;;  %v453_v13 = vpop.permute.xlu0 %452  ;;  %vm2389_vm5 = vcmp.ne.s32.totalorder %v656_v58, 0 }
  0xbd   : > { %v581_v19 = vsel %vm549_vm15, %v533_v0, %v565_v10  ;;  %v579_v20 = vsel %vm547_vm0, %v531_v1, %v563_v11  ;;  %v534_v21 = vadd.f32 %v2286_v51, %v463_v12  ;;  %v532_v22 = vadd.f32 %v2286_v51, %v453_v13 }
  0xbe   : > { %v677_v24 = vsel %vm2289_vm10, %v581_v19, -1e+30  ;;  %v675_v25 = vsel %vm2295_vm11, %v579_v20, -1e+30  ;;  %vm625_vm15 = vcmp.gt.bf16.partialorder %v609_v43, 0 }
  0xbf   : > { %v695_v26 = vmul.f32 1.442695, %v677_v24  ;;  %v691_v27 = vmul.f32 1.442695, %v675_v25  ;;  %vm550_vm6 = vcmp.gt.f32.partialorder %v534_v21, 0.0  ;;  %vm548_vm7 = vcmp.gt.f32.partialorder %v532_v22, 0.0 }
  0xc0   : > { %v566_v28 = vmul.f32 0.05, %v534_v21  ;;  %v564_v29 = vmul.f32 0.05, %v532_v22  ;;  %v473_v30 = vpop.permute.xlu1 %472  ;;  %v468_v31 = vpop.permute.xlu0 %467 }
  0xc1   : > { %1877 = vpow2.f32 %v695_v26  ;;  %v536_v35 = vadd.f32 %v2286_v51, %v473_v30  ;;  %v535_v36 = vadd.f32 %v2286_v51, %v468_v31 }
  0xc2   : > { %1879 = vpow2.f32 %v691_v27  ;;  %v582_v39 = vsel %vm550_vm6, %v534_v21, %v566_v28  ;;  %v580_v40 = vsel %vm548_vm7, %v532_v22, %v564_v29  ;;  %vm2394_vm7 = vcmp.ne.s32.totalorder %v655_v4, 0 }
  0xc3   : > { %v678_v44 = vsel %vm2308_vm13, %v582_v39, -1e+30  ;;  %v676_v45 = vsel %vm2312_vm14, %v580_v40, -1e+30  ;;  %vm552_vm10 = vcmp.gt.f32.partialorder %v536_v35, 0.0  ;;  %vm551_vm11 = vcmp.gt.f32.partialorder %v535_v36, 0.0 }
  0xc4   : > { %v697_v46 = vmul.f32 1.442695, %v678_v44  ;;  %v693_v47 = vmul.f32 1.442695, %v676_v45  ;;  %v568_v48 = vmul.f32 0.05, %v536_v35  ;;  %v483_v49 = vpop.permute.xlu1 %482  ;;  %v478_v50 = vpop.permute.xlu0 %477 }
  0xc5   : > { %v567_v54 = vmul.f32 0.05, %v535_v36  ;;  %v538_v55 = vadd.f32 %v2286_v51, %v483_v49  ;;  %v537_v56 = vadd.f32 %v2286_v51, %v478_v50  ;;  %vm2364_vm13 = vcmp.ne.s32.totalorder %v651_v17, 0 }
  0xc6   : > { %1881 = vpow2.f32 %v697_v46  ;;  %v584_v59 = vsel %vm552_vm10, %v536_v35, %v568_v48  ;;  %vm626_vm14 = vcmp.gt.bf16.partialorder %v610_v42, 0  ;;  %v641_v28 = vsel %vm625_vm15, 65537, %v2065_v16 }
  0xc7   : > { %1883 = vpow2.f32 %v693_v47  ;;  %v680_v60 = vsel %vm2318_vm1, %v584_v59, -1e+30  ;;  %v583_v61 = vsel %vm551_vm11, %v535_v36, %v567_v54  ;;  %vm554_vm0 = vcmp.gt.f32.partialorder %v538_v55, 0.0 }
  0xc8   : > { %v701_v62 = vmul.f32 1.442695, %v680_v60  ;;  %v679_v63 = vsel %vm2328_vm3, %v583_v61, -1e+30  ;;  %v570_v0 = vmul.f32 0.05, %v538_v55  ;;  %v493_v1 = vpop.permute.xlu1 %492  ;;  %v488_v2 = vpop.permute.xlu0 %487  ;;  %v657_v52 = vunpack.c.l.b16 %v641_v28 }
  0xc9   : > { %v699_v5 = vmul.f32 1.442695, %v679_v63  ;;  %vm553_vm4 = vcmp.gt.f32.partialorder %v537_v56, 0.0  ;;  %v569_v6 = vmul.f32 0.05, %v537_v56  ;;  %v540_v7 = vadd.f32 %v2286_v51, %v493_v1 }
  0xca   : > { %vm2378_vm1 = vcmp.ne.s32.totalorder %v653_v53, 0  ;;  %1885 = vpow2.f32 %v701_v62  ;;  %v586_v9 = vsel %vm554_vm0, %v538_v55, %v570_v0  ;;  %v539_v10 = vadd.f32 %v2286_v51, %v488_v2 }
  0xcb   : > { %v642_v11 = vsel %vm626_vm14, 65537, %v2065_v16  ;;  %1887 = vpow2.f32 %v699_v5  ;;  %v682_v12 = vsel %vm2336_vm8, %v586_v9, -1e+30  ;;  %v585_v13 = vsel %vm553_vm4, %v537_v56, %v569_v6 }
  0xcc   : > { %vm556_vm3 = vcmp.gt.f32.partialorder %v540_v7, 0.0  ;;  %v705_v14 = vmul.f32 1.442695, %v682_v12  ;;  %v681_v15 = vsel %vm2344_vm9, %v585_v13, -1e+30  ;;  %v503_v18 = vpop.permute.xlu1 %502  ;;  %v498_v19 = vpop.permute.xlu0 %497  ;;  %vm555_vm6 = vcmp.gt.f32.partialorder %v539_v10, 0.0 }
  0xcd   : > { %v572_v17 = vmul.f32 0.05, %v540_v7  ;;  %v703_v21 = vmul.f32 1.442695, %v681_v15  ;;  %v571_v22 = vmul.f32 0.05, %v539_v10  ;;  %v542_v23 = vadd.f32 %v2286_v51, %v503_v18 }
  0xce   : > { %v2398_v25 = vpop.eup %1877  ;;  %1889 = vpow2.f32 %v705_v14  ;;  %v541_v27 = vadd.f32 %v2286_v51, %v498_v19  ;;  %v658_v41 = vunpack.c.l.b16 %v642_v11  ;;  %vm673_vm15 = vcmp.ne.s32.totalorder %v657_v52, 0 }
  0xcf   : > { %v588_v26 = vsel %vm556_vm3, %v540_v7, %v572_v17  ;;  %v2403_v29 = vpop.eup %1879  ;;  %1891 = vpow2.f32 %v703_v21  ;;  %v587_v31 = vsel %vm555_vm6, %v539_v10, %v571_v22  ;;  %vm558_vm8 = vcmp.gt.f32.partialorder %v542_v23, 0.0 }
  0xd0   : > { %v684_v30 = vsel %vm2358_vm12, %v588_v26, -1e+30  ;;  %v683_v33 = vsel %vm2364_vm13, %v587_v31, -1e+30  ;;  %v574_v34 = vmul.f32 0.05, %v542_v23  ;;  %v513_v35 = vpop.permute.xlu1 %512  ;;  %v508_v36 = vpop.permute.xlu0 %507 }
  0xd1   : > { %v709_v32 = vmul.f32 1.442695, %v684_v30  ;;  %v707_v37 = vmul.f32 1.442695, %v683_v33  ;;  %vm557_vm9 = vcmp.gt.f32.partialorder %v541_v27, 0.0  ;;  %v544_v16 = vadd.f32 %v2286_v51, %v513_v35 }
  0xd2   : > { %v573_v38 = vmul.f32 0.05, %v541_v27  ;;  %v590_v39 = vsel %vm558_vm8, %v542_v23, %v574_v34  ;;  %v543_v40 = vadd.f32 %v2286_v51, %v508_v36  ;;  %vm2420_vm12 = vcmp.ne.s32.totalorder %v658_v41, 0 }
  0xd3   : > { %1893 = vpow2.f32 %v709_v32  ;;  %v2411_v42 = vpop.eup %1881  ;;  %v686_v43 = vsel %vm2373_vm2, %v590_v39, -1e+30  ;;  %vm560_vm10 = vcmp.gt.f32.partialorder %v544_v16, 0.0  ;;  %v576_v48 = vmul.f32 0.05, %v544_v16 }
  0xd4   : > { %1895 = vpow2.f32 %v707_v37  ;;  %v589_v44 = vsel %vm557_vm9, %v541_v27, %v573_v38  ;;  %v2415_v45 = vpop.eup %1883  ;;  %v713_v46 = vmul.f32 1.442695, %v686_v43  ;;  %v523_v49 = vpop.permute.xlu1 %522  ;;  %vm559_vm11 = vcmp.gt.f32.partialorder %v543_v40, 0.0 }
  0xd5   : > { %v685_v47 = vsel %vm2378_vm1, %v589_v44, -1e+30  ;;  %v518_v50 = vpop.permute.xlu0 %517  ;;  %v575_v54 = vmul.f32 0.05, %v543_v40  ;;  %v546_v55 = vadd.f32 %v2286_v51, %v523_v49  ;;  %v592_v56 = vsel %vm560_vm10, %v544_v16, %v576_v48 }
  0xd6   : > { %v711_v53 = vmul.f32 1.442695, %v685_v47  ;;  %1897 = vpow2.f32 %v713_v46  ;;  %v545_v58 = vadd.f32 %v2286_v51, %v518_v50  ;;  %v688_v60 = vsel %vm2389_vm5, %v592_v56, -1e+30 }
  0xd7   : > { %v2425_v59 = vpop.eup %1885  ;;  %v591_v61 = vsel %vm559_vm11, %v543_v40, %v575_v54  ;;  %vm562_vm13 = vcmp.gt.f32.partialorder %v546_v55, 0.0  ;;  %v717_v63 = vmul.f32 1.442695, %v688_v60  ;;  %v578_v1 = vmul.f32 0.05, %v546_v55 }
  0xd8   : > { %1899 = vpow2.f32 %v711_v53  ;;  %v2429_v62 = vpop.eup %1887  ;;  %v687_v0 = vsel %vm2394_vm7, %v591_v61, -1e+30  ;;  %vm561_vm14 = vcmp.gt.f32.partialorder %v545_v58, 0.0  ;;  %v577_v3 = vmul.f32 0.05, %v545_v58 }
  0xd9   : > { %v715_v2 = vmul.f32 1.442695, %v687_v0  ;;  %1901 = vpow2.f32 %v717_v63  ;;  %v594_v51 = vsel %vm562_vm13, %v546_v55, %v578_v1 }
  0xda   : > { %v690_v5 = vsel %vm2420_vm12, %v594_v51, -1e+30  ;;  %v593_v6 = vsel %vm561_vm14, %v545_v58, %v577_v3 }
  0xdb   : > { %v2433_v4 = vpop.eup %1889  ;;  %1903 = vpow2.f32 %v715_v2  ;;  %v721_v8 = vmul.f32 1.442695, %v690_v5  ;;  %v689_v9 = vsel %vm673_vm15, %v593_v6, -1e+30 }
  0xdc   : > { %v2437_v7 = vpop.eup %1891  ;;  %v719_v10 = vmul.f32 1.442695, %v689_v9 }
  0xdd   : > { %1905 = vpow2.f32 %v721_v8 }
  0xde   : > { %1907 = vpow2.f32 %v719_v10 }
  0xe0   : > { %v2439_v11 = vpop.eup %1893 }
  0xe1   : > { %v2441_v12 = vpop.eup %1895 }
  0xe3   : > { %v2443_v13 = vpop.eup %1897 }
  0xe5   : > { %v2445_v14 = vpop.eup %1899 }
  0xe6   : > { %v2447_v15 = vpop.eup %1901 }
  0xe7   : > { %726 = sbr.rel (%p1651_p4) target bundleno = 674 (0x2a2), region = 81 }
  0xe8   : > { %v2449_v17 = vpop.eup %1903 }
  0xea   : > { %v2451_v18 = vpop.eup %1905 }
  0xeb   : > { %v2453_v19 = vpop.eup %1907 }
  0xec   : > { %730 = sbr.rel (%p1652_p5) target bundleno = 258 (0x102), region = 85 }
  0xf1   : > { %vm747_vm0 = vcmask 7168   ;;  %v2066_v20 = vmov 0.0  }
  0xf2   : > { %731 = vst [vmem:[#allocation2 + $0x30] sm:$0xff] %v2066_v20  ;;  %732 = vst [vmem:[#allocation2] sm:$0xff] %v2066_v20 }
  0xf3   : > { %733 = vst [vmem:[#allocation2 + $0x58] sm:$0xff] %v2066_v20  ;;  %734 = vst [vmem:[#allocation2 + $0x18] sm:$0xff] %v2066_v20 }
  0xf4   : > { %735 = vst [vmem:[#allocation2 + $0x50] sm:$0xff] %v2066_v20  ;;  %736 = vst [vmem:[#allocation2 + $0x68] sm:$0xff] %v2066_v20 }
  0xf5   : > { %737 = vst [vmem:[#allocation2 + $0x8] sm:$0xff] %v2066_v20  ;;  %738 = vst [vmem:[#allocation2 + $0x48] sm:$0xff] %v2066_v20 }
  0xf6   : > { %739 = vst [vmem:[#allocation2 + $0x40] sm:$0xff] %v2066_v20  ;;  %740 = vst [vmem:[#allocation2 + $0x20] sm:$0xff] %v2066_v20 }
  0xf7   : > { %741 = vst [vmem:[#allocation2 + $0x10] sm:$0xff] %v2066_v20  ;;  %742 = vst [vmem:[#allocation2 + $0x38] sm:$0xff] %v2066_v20 }
  0xf8   : > { %743 = vst [vmem:[#allocation2 + $0x60] sm:$0xff] %v2066_v20  ;;  %744 = vst [vmem:[#allocation2 + $0x70] sm:$0xff] %v2066_v20 }
  0xf9   : > { %745 = vst [vmem:[#allocation2 + $0x78] sm:$0xff] %v2066_v20  ;;  %746 = vst [vmem:[#allocation2 + $0x28] sm:$0xff] %v2066_v20 }
  0xfa   : > { %748 = vst.msk [vmem:[#allocation3] sm:$0xff] %vm747_vm0, %v2066_v20  ;;  %749 = vst.msk [vmem:[#allocation3 + $0x8] sm:$0xff] %vm747_vm0, %v2066_v20 }
  0xfb   : > { %750 = vst.msk [vmem:[#allocation3 + $0x10] sm:$0xff] %vm747_vm0, %v2066_v20  ;;  %751 = vst.msk [vmem:[#allocation3 + $0x18] sm:$0xff] %vm747_vm0, %v2066_v20 }
  0xfc   : > { %752 = vst.msk [vmem:[#allocation3 + $0x20] sm:$0xff] %vm747_vm0, %v2066_v20  ;;  %753 = vst.msk [vmem:[#allocation3 + $0x28] sm:$0xff] %vm747_vm0, %v2066_v20 }
  0xfd   : > { %754 = vst.msk [vmem:[#allocation3 + $0x30] sm:$0xff] %vm747_vm0, %v2066_v20  ;;  %755 = vst.msk [vmem:[#allocation3 + $0x38] sm:$0xff] %vm747_vm0, %v2066_v20 }
  0xfe   : > { %756 = vst.msk [vmem:[#allocation3 + $0x40] sm:$0xff] %vm747_vm0, %v2066_v20  ;;  %757 = vst.msk [vmem:[#allocation3 + $0x48] sm:$0xff] %vm747_vm0, %v2066_v20 }
  0xff   : > { %758 = vst.msk [vmem:[#allocation3 + $0x50] sm:$0xff] %vm747_vm0, %v2066_v20  ;;  %759 = vst.msk [vmem:[#allocation3 + $0x58] sm:$0xff] %vm747_vm0, %v2066_v20 }
 0x100   : > { %760 = vst.msk [vmem:[#allocation3 + $0x60] sm:$0xff] %vm747_vm0, %v2066_v20  ;;  %761 = vst.msk [vmem:[#allocation3 + $0x68] sm:$0xff] %vm747_vm0, %v2066_v20 }
 0x101   : > { %762 = vst.msk [vmem:[#allocation3 + $0x70] sm:$0xff] %vm747_vm0, %v2066_v20  ;;  %763 = vst.msk [vmem:[#allocation3 + $0x78] sm:$0xff] %vm747_vm0, %v2066_v20 }
 0x102 PF: > { %v795_v21 = vld [vmem:[%s2260_s9 + $0x78] sm:$0xff]  ;;  %v794_v22 = vld [vmem:[%s2260_s9 + $0x70] sm:$0xff]  ;;  %1727 = vmatprep.mubr.f32.mxu0 %v2403_v29  ;;  %1739 = vmatprep.mubr.f32.mxu1 %v2441_v12  ;;  %v793_v23 = vld [vmem:[%s2260_s9 + $0x68] sm:$0xff]  ;;  %vm1037_vm2 = vcmask 7168   ;;  %p1653_p6 = scmp.ne.s32.totalorder %s2039_s22, 1 }
 0x103   : > { %1695 = vmatprep.subr.mxu0 %v795_v21  ;;  %1751 = vmatprep.subr.mxu1 %v795_v21  ;;  %v792_v24 = vld [vmem:[%s2260_s9 + $0x60] sm:$0xff]  ;;  %v791_v26 = vld [vmem:[%s2260_s9 + $0x58] sm:$0xff]  ;;  %v790_v27 = vld [vmem:[%s2260_s9 + $0x50] sm:$0xff] }
 0x104   : > { %1696 = vmatpush3.msra.mxu0 %v795_v21  ;;  %1767 = vmatpush3.msra.mxu1 %v795_v21  ;;  %v789_v28 = vld [vmem:[%s2260_s9 + $0x48] sm:$0xff]  ;;  %v788_v30 = vld [vmem:[%s2260_s9 + $0x40] sm:$0xff]  ;;  %v787_v31 = vld [vmem:[%s2260_s9 + $0x38] sm:$0xff] }
 0x105   : > { %1697 = vmatprep.subr.mxu0 %v794_v22  ;;  %1752 = vmatprep.subr.mxu1 %v794_v22  ;;  %v786_v32 = vld [vmem:[%s2260_s9 + $0x30] sm:$0xff]  ;;  %v785_v33 = vld [vmem:[%s2260_s9 + $0x28] sm:$0xff]  ;;  %v784_v34 = vld [vmem:[%s2260_s9 + $0x20] sm:$0xff] }
 0x106   : > { %1698 = vmatpush3.msra.mxu0 %v794_v22  ;;  %1768 = vmatpush3.msra.mxu1 %v794_v22  ;;  %v783_v35 = vld [vmem:[%s2260_s9 + $0x18] sm:$0xff]  ;;  %v782_v36 = vld [vmem:[%s2260_s9 + $0x10] sm:$0xff]  ;;  %v781_v37 = vld [vmem:[%s2260_s9 + $0x8] sm:$0xff] }
 0x107   : > { %1699 = vmatprep.subr.mxu0 %v793_v23  ;;  %1753 = vmatprep.subr.mxu1 %v793_v23  ;;  %v780_v38 = vld [vmem:[%s2260_s9] sm:$0xff]  ;;  %v975_v16 = vld [vmem:[#allocation3 + $0x10] sm:$0xff]  ;;  %v976_v46 = vld [vmem:[#allocation3 + $0x18] sm:$0xff] }
 0x108   : > { %1700 = vmatpush3.msra.mxu0 %v793_v23  ;;  %1769 = vmatpush3.msra.mxu1 %v793_v23  ;;  %v973_v39 = vld [vmem:[#allocation3] sm:$0xff]  ;;  %v974_v47 = vld [vmem:[#allocation3 + $0x8] sm:$0xff]  ;;  %v980_v60 = vld [vmem:[#allocation3 + $0x38] sm:$0xff] }
 0x109   : > { %1701 = vmatprep.subr.mxu0 %v792_v24  ;;  %1754 = vmatprep.subr.mxu1 %v792_v24  ;;  %v978_v53 = vld [vmem:[#allocation3 + $0x28] sm:$0xff]  ;;  %v977_v54 = vld [vmem:[#allocation3 + $0x20] sm:$0xff]  ;;  %v979_v61 = vld [vmem:[#allocation3 + $0x30] sm:$0xff] }
 0x10a   : > { %1702 = vmatpush3.msra.mxu0 %v792_v24  ;;  %1770 = vmatpush3.msra.mxu1 %v792_v24  ;;  %v982_v3 = vld [vmem:[#allocation3 + $0x48] sm:$0xff]  ;;  %v981_v51 = vld [vmem:[#allocation3 + $0x40] sm:$0xff]  ;;  %v984_v10 = vld [vmem:[#allocation3 + $0x58] sm:$0xff] }
 0x10b   : > { %1703 = vmatprep.subr.mxu0 %v791_v26  ;;  %1755 = vmatprep.subr.mxu1 %v791_v26  ;;  %v983_v20 = vld [vmem:[#allocation3 + $0x50] sm:$0xff] }
 0x10c   : > { %1704 = vmatpush3.msra.mxu0 %v791_v26  ;;  %1771 = vmatpush3.msra.mxu1 %v791_v26  ;;  %v986_v26 = vld [vmem:[#allocation3 + $0x68] sm:$0xff] }
 0x10d   : > { %1705 = vmatprep.subr.mxu0 %v790_v27  ;;  %1756 = vmatprep.subr.mxu1 %v790_v27 }
 0x10e   : > { %1706 = vmatpush3.msra.mxu0 %v790_v27  ;;  %1772 = vmatpush3.msra.mxu1 %v790_v27  ;;  %v985_v27 = vld [vmem:[#allocation3 + $0x60] sm:$0xff] }
 0x10f   : > { %1707 = vmatprep.subr.mxu0 %v789_v28  ;;  %1757 = vmatprep.subr.mxu1 %v789_v28 }
 0x110   : > { %1708 = vmatpush3.msra.mxu0 %v789_v28  ;;  %1773 = vmatpush3.msra.mxu1 %v789_v28 }
 0x111   : > { %1709 = vmatprep.subr.mxu0 %v788_v30  ;;  %1758 = vmatprep.subr.mxu1 %v788_v30 }
 0x112   : > { %1710 = vmatpush3.msra.mxu0 %v788_v30  ;;  %1774 = vmatpush3.msra.mxu1 %v788_v30 }
 0x113   : > { %1711 = vmatprep.subr.mxu0 %v787_v31  ;;  %1759 = vmatprep.subr.mxu1 %v787_v31 }
 0x114   : > { %1712 = vmatpush3.msra.mxu0 %v787_v31  ;;  %1775 = vmatpush3.msra.mxu1 %v787_v31 }
 0x115   : > { %1713 = vmatprep.subr.mxu0 %v786_v32  ;;  %1760 = vmatprep.subr.mxu1 %v786_v32 }
 0x116   : > { %1714 = vmatpush3.msra.mxu0 %v786_v32  ;;  %1776 = vmatpush3.msra.mxu1 %v786_v32 }
 0x117   : > { %1715 = vmatprep.subr.mxu0 %v785_v33  ;;  %1761 = vmatprep.subr.mxu1 %v785_v33 }
 0x118   : > { %1716 = vmatpush3.msra.mxu0 %v785_v33  ;;  %1777 = vmatpush3.msra.mxu1 %v785_v33  ;;  %v988_v33 = vld [vmem:[#allocation3 + $0x78] sm:$0xff] }
 0x119   : > { %1717 = vmatprep.subr.mxu0 %v784_v34  ;;  %1762 = vmatprep.subr.mxu1 %v784_v34 }
 0x11a   : > { %1718 = vmatpush3.msra.mxu0 %v784_v34  ;;  %1778 = vmatpush3.msra.mxu1 %v784_v34  ;;  %v987_v34 = vld [vmem:[#allocation3 + $0x70] sm:$0xff] }
 0x11b   : > { %1719 = vmatprep.subr.mxu0 %v783_v35  ;;  %1763 = vmatprep.subr.mxu1 %v783_v35 }
 0x11c   : > { %1720 = vmatpush3.msra.mxu0 %v783_v35  ;;  %1779 = vmatpush3.msra.mxu1 %v783_v35 }
 0x11d   : > { %1721 = vmatprep.subr.mxu0 %v782_v36  ;;  %1764 = vmatprep.subr.mxu1 %v782_v36 }
 0x11e   : > { %1722 = vmatpush3.msra.mxu0 %v782_v36  ;;  %1780 = vmatpush3.msra.mxu1 %v782_v36 }
 0x11f   : > { %1723 = vmatprep.subr.mxu0 %v781_v37  ;;  %1765 = vmatprep.subr.mxu1 %v781_v37 }
 0x120   : > { %1724 = vmatpush3.msra.mxu0 %v781_v37  ;;  %1781 = vmatpush3.msra.mxu1 %v781_v37 }
 0x121   : > { %1725 = vmatprep.subr.mxu0 %v780_v38  ;;  %1766 = vmatprep.subr.mxu1 %v780_v38 }
 0x122   : > { %1726 = vmatpush3.msra.mxu0 %v780_v38  ;;  %1782 = vmatpush3.msra.mxu1 %v780_v38 }
 0x123   : > { %1728 = vmatmul.mubr.f32.vlgmr.msra.gmra.mxu0 %v2415_v45  ;;  %1740 = vmatmul.mubr.f32.vlgmr.msra.gmra.mxu1 %v2439_v11 }
 0x124   : > { %1730 = vmatprep.mubr.f32.mxu0 %v2398_v25  ;;  %1742 = vmatprep.mubr.f32.mxu1 %v2445_v14 }
 0x125   : > { %993 = vadd.xlane.f32.xlu1 %v2398_v25  ;;  %989 = vadd.xlane.f32.xlu0 %v2403_v29 }
 0x127   : > { %1731 = vmatmul.mubr.f32.gmra.mxu0 %v2411_v42  ;;  %1743 = vmatmul.mubr.f32.gmra.mxu1 %v2443_v13 }
 0x128   : > { %1733 = vmatprep.mubr.f32.mxu0 %v2429_v62  ;;  %1745 = vmatprep.mubr.f32.mxu1 %v2449_v17 }
 0x129   : > { %995 = vadd.xlane.f32.xlu1 %v2411_v42  ;;  %991 = vadd.xlane.f32.xlu0 %v2415_v45 }
 0x12b   : > { %1734 = vmatmul.mubr.f32.gmra.mxu0 %v2425_v59  ;;  %1746 = vmatmul.mubr.f32.gmra.mxu1 %v2447_v15 }
 0x12c   : > { %1736 = vmatprep.mubr.f32.mxu0 %v2437_v7  ;;  %1748 = vmatprep.mubr.f32.mxu1 %v2453_v19 }
 0x12d   : > { %999 = vadd.xlane.f32.xlu1 %v2425_v59  ;;  %997 = vadd.xlane.f32.xlu0 %v2429_v62 }
 0x12f   : > { %1737 = vmatmul.mubr.f32.gmra.mxu0 %v2433_v4  ;;  %1749 = vmatmul.mubr.f32.gmra.mxu1 %v2451_v18 }
 0x131   : > { %1003 = vadd.xlane.f32.xlu1 %v2433_v4  ;;  %1001 = vadd.xlane.f32.xlu0 %v2437_v7 }
 0x135   : > { %1007 = vadd.xlane.f32.xlu1 %v2439_v11  ;;  %1005 = vadd.xlane.f32.xlu0 %v2441_v12 }
 0x139   : > { %1011 = vadd.xlane.f32.xlu1 %v2443_v13  ;;  %1009 = vadd.xlane.f32.xlu0 %v2445_v14 }
 0x13d   : > { %1015 = vadd.xlane.f32.xlu1 %v2447_v15  ;;  %1013 = vadd.xlane.f32.xlu0 %v2449_v17 }
 0x141   : > { %1019 = vadd.xlane.f32.xlu1 %v2451_v18  ;;  %1017 = vadd.xlane.f32.xlu0 %v2453_v19 }
 0x1ae   : > { %v994_v40 = vpop.xlane.xlu1 %993  ;;  %v990_v41 = vpop.xlane.xlu0 %989 }
 0x1af   : > { %v1023_v43 = vadd.f32 %v994_v40, %v975_v16  ;;  %v1021_v44 = vadd.f32 %v990_v41, %v973_v39  ;;  %v765_v16 = vld [vmem:[#allocation2] sm:$0xff] }
 0x1b0   : > { %v773_v39 = vld [vmem:[#allocation2 + $0x20] sm:$0xff] }
 0x1b1   : > { %1040 = vst.msk [vmem:[#allocation3 + $0x10] sm:$0xff] %vm1037_vm2, %v1023_v43  ;;  %1038 = vst.msk [vmem:[#allocation3] sm:$0xff] %vm1037_vm2, %v1021_v44  ;;  %v764_v43 = vld [vmem:[#allocation2 + $0x30] sm:$0xff]  ;;  %v772_v44 = vld [vmem:[#allocation2 + $0x40] sm:$0xff] }
 0x1b2   : > { %v996_v48 = vpop.xlane.xlu1 %995  ;;  %v992_v49 = vpop.xlane.xlu0 %991 }
 0x1b3   : > { %v1024_v50 = vadd.f32 %v996_v48, %v976_v46  ;;  %v1022_v52 = vadd.f32 %v992_v49, %v974_v47 }
 0x1b5   : > { %1041 = vst.msk [vmem:[#allocation3 + $0x18] sm:$0xff] %vm1037_vm2, %v1024_v50  ;;  %1039 = vst.msk [vmem:[#allocation3 + $0x8] sm:$0xff] %vm1037_vm2, %v1022_v52  ;;  %v767_v50 = vld [vmem:[#allocation2 + $0x18] sm:$0xff] }
 0x1b6   : > { %v1000_v55 = vpop.xlane.xlu1 %999  ;;  %v998_v56 = vpop.xlane.xlu0 %997  ;;  %v775_v52 = vld [vmem:[#allocation2 + $0x38] sm:$0xff] }
 0x1b7   : > { %v1026_v57 = vadd.f32 %v1000_v55, %v978_v53  ;;  %v1025_v58 = vadd.f32 %v998_v56, %v977_v54 }
 0x1b9   : > { %1043 = vst.msk [vmem:[#allocation3 + $0x28] sm:$0xff] %vm1037_vm2, %v1026_v57  ;;  %1042 = vst.msk [vmem:[#allocation3 + $0x20] sm:$0xff] %vm1037_vm2, %v1025_v58  ;;  %v766_v57 = vld [vmem:[#allocation2 + $0x58] sm:$0xff]  ;;  %v774_v58 = vld [vmem:[#allocation2 + $0x10] sm:$0xff] }
 0x1ba   : > { %v1004_v63 = vpop.xlane.xlu1 %1003  ;;  %v1002_v0 = vpop.xlane.xlu0 %1001 }
 0x1bb   : > { %v1028_v1 = vadd.f32 %v1004_v63, %v980_v60  ;;  %v1027_v2 = vadd.f32 %v1002_v0, %v979_v61 }
 0x1bd   : > { %1045 = vst.msk [vmem:[#allocation3 + $0x38] sm:$0xff] %vm1037_vm2, %v1028_v1  ;;  %1044 = vst.msk [vmem:[#allocation3 + $0x30] sm:$0xff] %vm1037_vm2, %v1027_v2  ;;  %v769_v1 = vld [vmem:[#allocation2 + $0x68] sm:$0xff]  ;;  %v777_v2 = vld [vmem:[#allocation2 + $0x70] sm:$0xff] }
 0x1be   : > { %v1008_v5 = vpop.xlane.xlu1 %1007  ;;  %v1006_v6 = vpop.xlane.xlu0 %1005 }
 0x1bf   : > { %v1030_v8 = vadd.f32 %v1008_v5, %v982_v3  ;;  %v1029_v9 = vadd.f32 %v1006_v6, %v981_v51 }
 0x1c1   : > { %1047 = vst.msk [vmem:[#allocation3 + $0x48] sm:$0xff] %vm1037_vm2, %v1030_v8  ;;  %1046 = vst.msk [vmem:[#allocation3 + $0x40] sm:$0xff] %vm1037_vm2, %v1029_v9  ;;  %v768_v8 = vld [vmem:[#allocation2 + $0x50] sm:$0xff]  ;;  %v776_v9 = vld [vmem:[#allocation2 + $0x60] sm:$0xff] }
 0x1c2   : > { %v1012_v21 = vpop.xlane.xlu1 %1011  ;;  %v1010_v22 = vpop.xlane.xlu0 %1009 }
 0x1c3   : > { %v1032_v23 = vadd.f32 %v1012_v21, %v984_v10  ;;  %v1031_v24 = vadd.f32 %v1010_v22, %v983_v20 }
 0x1c5   : > { %1049 = vst.msk [vmem:[#allocation3 + $0x58] sm:$0xff] %vm1037_vm2, %v1032_v23  ;;  %1048 = vst.msk [vmem:[#allocation3 + $0x50] sm:$0xff] %vm1037_vm2, %v1031_v24  ;;  %v771_v23 = vld [vmem:[#allocation2 + $0x48] sm:$0xff] }
 0x1c6   : > { %v1016_v28 = vpop.xlane.xlu1 %1015  ;;  %v1014_v30 = vpop.xlane.xlu0 %1013  ;;  %v779_v24 = vld [vmem:[#allocation2 + $0x28] sm:$0xff] }
 0x1c7   : > { %v1034_v31 = vadd.f32 %v1016_v28, %v986_v26  ;;  %v1033_v32 = vadd.f32 %v1014_v30, %v985_v27 }
 0x1c9   : > { %1051 = vst.msk [vmem:[#allocation3 + $0x68] sm:$0xff] %vm1037_vm2, %v1034_v31  ;;  %1050 = vst.msk [vmem:[#allocation3 + $0x60] sm:$0xff] %vm1037_vm2, %v1033_v32  ;;  %v770_v31 = vld [vmem:[#allocation2 + $0x8] sm:$0xff]  ;;  %v778_v32 = vld [vmem:[#allocation2 + $0x78] sm:$0xff] }
 0x1ca   : > { %v1020_v35 = vpop.xlane.xlu1 %1019  ;;  %v1018_v36 = vpop.xlane.xlu0 %1017 }
 0x1cb   : > { %v1036_v37 = vadd.f32 %v1020_v35, %v988_v33  ;;  %v1035_v38 = vadd.f32 %v1018_v36, %v987_v34 }
 0x1cd   : > { %1053 = vst.msk [vmem:[#allocation3 + $0x78] sm:$0xff] %vm1037_vm2, %v1036_v37  ;;  %1052 = vst.msk [vmem:[#allocation3 + $0x70] sm:$0xff] %vm1037_vm2, %v1035_v38 }
 0x1e3   : > { %v1729_v40 = vpop.f32.mrf.mxu0  ;;  %v1741_v41 = vpop.f32.mrf.mxu1 }
 0x1e4   : > { %v942_v46 = vadd.f32 %v1729_v40, %v765_v16  ;;  %v950_v47 = vadd.f32 %v1741_v41, %v773_v39 }
 0x1e5   : > { %v862_v48 = vpop.f32.mrf.mxu0  ;;  %v902_v49 = vpop.f32.mrf.mxu1 }
 0x1e6   : > { %958 = vst [vmem:[#allocation2] sm:$0xff] %v942_v46  ;;  %966 = vst [vmem:[#allocation2 + $0x20] sm:$0xff] %v950_v47  ;;  %v941_v53 = vadd.f32 %v862_v48, %v764_v43  ;;  %v949_v54 = vadd.f32 %v902_v49, %v772_v44 }
 0x1e7   : > { %v1732_v55 = vpop.f32.mrf.mxu0  ;;  %v1744_v56 = vpop.f32.mrf.mxu1 }
 0x1e8   : > { %957 = vst [vmem:[#allocation2 + $0x30] sm:$0xff] %v941_v53  ;;  %965 = vst [vmem:[#allocation2 + $0x40] sm:$0xff] %v949_v54  ;;  %v944_v60 = vadd.f32 %v1732_v55, %v767_v50  ;;  %v952_v61 = vadd.f32 %v1744_v56, %v775_v52 }
 0x1e9   : > { %v872_v63 = vpop.f32.mrf.mxu0  ;;  %v912_v0 = vpop.f32.mrf.mxu1 }
 0x1ea   : > { %960 = vst [vmem:[#allocation2 + $0x18] sm:$0xff] %v944_v60  ;;  %968 = vst [vmem:[#allocation2 + $0x38] sm:$0xff] %v952_v61  ;;  %v943_v3 = vadd.f32 %v872_v63, %v766_v57  ;;  %v951_v51 = vadd.f32 %v912_v0, %v774_v58 }
 0x1eb   : > { %v1735_v5 = vpop.f32.mrf.mxu0  ;;  %v1747_v6 = vpop.f32.mrf.mxu1 }
 0x1ec   : > { %959 = vst [vmem:[#allocation2 + $0x58] sm:$0xff] %v943_v3  ;;  %967 = vst [vmem:[#allocation2 + $0x10] sm:$0xff] %v951_v51  ;;  %v946_v10 = vadd.f32 %v1735_v5, %v769_v1  ;;  %v954_v20 = vadd.f32 %v1747_v6, %v777_v2 }
 0x1ed   : > { %v882_v21 = vpop.f32.mrf.mxu0  ;;  %v922_v22 = vpop.f32.mrf.mxu1 }
 0x1ee   : > { %962 = vst [vmem:[#allocation2 + $0x68] sm:$0xff] %v946_v10  ;;  %970 = vst [vmem:[#allocation2 + $0x70] sm:$0xff] %v954_v20  ;;  %v945_v26 = vadd.f32 %v882_v21, %v768_v8  ;;  %v953_v27 = vadd.f32 %v922_v22, %v776_v9 }
 0x1ef   : > { %v1738_v28 = vpop.f32.mrf.mxu0  ;;  %v1750_v30 = vpop.f32.mrf.mxu1 }
 0x1f0   : > { %961 = vst [vmem:[#allocation2 + $0x50] sm:$0xff] %v945_v26  ;;  %969 = vst [vmem:[#allocation2 + $0x60] sm:$0xff] %v953_v27  ;;  %v948_v33 = vadd.f32 %v1738_v28, %v771_v23  ;;  %v956_v34 = vadd.f32 %v1750_v30, %v779_v24  ;;  %1057 = sbr.rel (%p1653_p6) target bundleno = 674 (0x2a2), region = 89 }
 0x1f1   : > { %v892_v35 = vpop.f32.mrf.mxu0  ;;  %v932_v36 = vpop.f32.mrf.mxu1 }
 0x1f2   : > { %964 = vst [vmem:[#allocation2 + $0x48] sm:$0xff] %v948_v33  ;;  %972 = vst [vmem:[#allocation2 + $0x28] sm:$0xff] %v956_v34  ;;  %v947_v37 = vadd.f32 %v892_v35, %v770_v31  ;;  %v955_v38 = vadd.f32 %v932_v36, %v778_v32 }
 0x1f4   : > { %963 = vst [vmem:[#allocation2 + $0x8] sm:$0xff] %v947_v37  ;;  %971 = vst [vmem:[#allocation2 + $0x78] sm:$0xff] %v955_v38 }
 0x1f5   : > { %v1060_v16 = vld [vmem:[#allocation3 + $0x10] sm:$0xff]  ;;  %v1058_v39 = vld [vmem:[#allocation3] sm:$0xff]  ;;  %v1061_v40 = vld [vmem:[#allocation3 + $0x18] sm:$0xff]  ;;  %v2067_v41 = vmov 0  }
 0x1f6   : > { %1910 = vset.pattern.permute.xlu1 %v2067_v41  ;;  %1909 = vset.pattern.permute.xlu0 %v2067_v41  ;;  %1911 = vrcp.f32 %v1060_v16  ;;  %v1059_v43 = vld [vmem:[#allocation3 + $0x8] sm:$0xff]  ;;  %v1062_v46 = vld [vmem:[#allocation3 + $0x20] sm:$0xff]  ;;  %v1065_v47 = vld [vmem:[#allocation3 + $0x38] sm:$0xff] }
 0x1f7   : > { %1913 = vrcp.f32 %v1058_v39  ;;  %v1063_v44 = vld [vmem:[#allocation3 + $0x28] sm:$0xff]  ;;  %v1064_v48 = vld [vmem:[#allocation3 + $0x30] sm:$0xff]  ;;  %v1066_v50 = vld [vmem:[#allocation3 + $0x40] sm:$0xff] }
 0x1f8   : > { %1915 = vrcp.f32 %v1061_v40  ;;  %v1067_v49 = vld [vmem:[#allocation3 + $0x48] sm:$0xff]  ;;  %v1069_v55 = vld [vmem:[#allocation3 + $0x58] sm:$0xff]  ;;  %v1068_v57 = vld [vmem:[#allocation3 + $0x50] sm:$0xff] }
 0x1f9   : > { %1917 = vrcp.f32 %v1059_v43  ;;  %v1071_v60 = vld [vmem:[#allocation3 + $0x68] sm:$0xff]  ;;  %v1070_v63 = vld [vmem:[#allocation3 + $0x60] sm:$0xff]  ;;  %v1073_v1 = vld [vmem:[#allocation3 + $0x78] sm:$0xff] }
 0x1fa   : > { %1919 = vrcp.f32 %v1063_v44  ;;  %v1072_v3 = vld [vmem:[#allocation3 + $0x70] sm:$0xff]  ;;  %v1092_v22 = vld [vmem:[#allocation2 + $0x58] sm:$0xff]  ;;  %v1091_v32 = vld [vmem:[#allocation2] sm:$0xff] }
 0x1fb   : > { %1921 = vrcp.f32 %v1062_v46  ;;  %v1090_v23 = vld [vmem:[#allocation2 + $0x30] sm:$0xff]  ;;  %v1093_v30 = vld [vmem:[#allocation2 + $0x18] sm:$0xff]  ;;  %v1095_v38 = vld [vmem:[#allocation2 + $0x68] sm:$0xff] }
 0x1fc   : > { %1923 = vrcp.f32 %v1065_v47  ;;  %v1094_v39 = vld [vmem:[#allocation2 + $0x50] sm:$0xff]  ;;  %v1097_v47 = vld [vmem:[#allocation2 + $0x48] sm:$0xff] }
 0x1fd   : > { %1925 = vrcp.f32 %v1064_v48 }
 0x1fe   : > { %1927 = vrcp.f32 %v1067_v49  ;;  %v1096_v49 = vld [vmem:[#allocation2 + $0x8] sm:$0xff] }
 0x1ff   : > { %1929 = vrcp.f32 %v1066_v50 }
 0x200   : > { %1931 = vrcp.f32 %v1069_v55 }
 0x201   : > { %1933 = vrcp.f32 %v1068_v57 }
 0x202   : > { %1935 = vrcp.f32 %v1071_v60 }
 0x203   : > { %v1912_v52 = vpop.eup %1911  ;;  %1937 = vrcp.f32 %v1070_v63 }
 0x204   : > { %v1914_v53 = vpop.eup %1913  ;;  %1118 = vperm.xlu1 %1910, %v1912_v52   ;;  %1939 = vrcp.f32 %v1073_v1 }
 0x205   : > { %v1916_v54 = vpop.eup %1915  ;;  %1108 = vperm.xlu0 %1909, %v1914_v53   ;;  %1941 = vrcp.f32 %v1072_v3 }
 0x206   : > { %v1918_v56 = vpop.eup %1917 }
 0x207   : > { %v1920_v58 = vpop.eup %1919 }
 0x208   : > { %1123 = vperm.xlu1 %1910, %v1916_v54   ;;  %v1922_v61 = vpop.eup %1921 }
 0x209   : > { %1113 = vperm.xlu0 %1909, %v1918_v56   ;;  %v1924_v0 = vpop.eup %1923  ;;  %v1099_v56 = vld [vmem:[#allocation2 + $0x20] sm:$0xff] }
 0x20a   : > { %v1926_v2 = vpop.eup %1925 }
 0x20b   : > { %v1928_v51 = vpop.eup %1927 }
 0x20c   : > { %1133 = vperm.xlu1 %1910, %v1920_v58   ;;  %v1930_v5 = vpop.eup %1929  ;;  %v1098_v58 = vld [vmem:[#allocation2 + $0x40] sm:$0xff] }
 0x20d   : > { %1128 = vperm.xlu0 %1909, %v1922_v61   ;;  %v1932_v6 = vpop.eup %1931 }
 0x20e   : > { %v1934_v8 = vpop.eup %1933 }
 0x20f   : > { %v1936_v9 = vpop.eup %1935 }
 0x210   : > { %1143 = vperm.xlu1 %1910, %v1924_v0   ;;  %v1938_v10 = vpop.eup %1937 }
 0x211   : > { %1138 = vperm.xlu0 %1909, %v1926_v2   ;;  %v1940_v20 = vpop.eup %1939  ;;  %v1101_v2 = vld [vmem:[#allocation2 + $0x38] sm:$0xff] }
 0x212   : > { %v1942_v21 = vpop.eup %1941 }
 0x214   : > { %1153 = vperm.xlu1 %1910, %v1928_v51   ;;  %v1100_v51 = vld [vmem:[#allocation2 + $0x10] sm:$0xff] }
 0x215   : > { %1148 = vperm.xlu0 %1909, %v1930_v5  }
 0x218   : > { %1163 = vperm.xlu1 %1910, %v1932_v6  }
 0x219   : > { %1158 = vperm.xlu0 %1909, %v1934_v8  }
 0x21c   : > { %1173 = vperm.xlu1 %1910, %v1936_v9  }
 0x21d   : > { %1168 = vperm.xlu0 %1909, %v1938_v10  }
 0x220   : > { %1183 = vperm.xlu1 %1910, %v1940_v20   ;;  %v1103_v20 = vld [vmem:[#allocation2 + $0x70] sm:$0xff] }
 0x221   : > { %1178 = vperm.xlu0 %1909, %v1942_v21  }
 0x27f   : > { %v1119_v24 = vpop.permute.xlu1 %1118 }
 0x280   : > { %v1188_v26 = vmul.f32 %v1119_v24, %v1092_v22  ;;  %v1109_v27 = vpop.permute.xlu0 %1108  ;;  %v1102_v22 = vld [vmem:[#allocation2 + $0x60] sm:$0xff] }
 0x281   : > { %v1186_v28 = vmul.f32 %v1109_v27, %v1090_v23 }
 0x282   : > { %v1204_v31 = vmax.f32 %v1188_v26, 0.0 }
 0x283   : > { %v1202_v33 = vmax.f32 %v1186_v28, 0.0  ;;  %v1124_v34 = vpop.permute.xlu1 %1123 }
 0x284   : > { %1220 = vst [vmem:[%s2235_s15 + $0x10] sm:$0xff] %v1204_v31  ;;  %v1189_v35 = vmul.f32 %v1124_v34, %v1093_v30  ;;  %v1114_v36 = vpop.permute.xlu0 %1113  ;;  %v1105_v30 = vld [vmem:[#allocation2 + $0x28] sm:$0xff] }
 0x285   : > { %1218 = vst [vmem:[%s2235_s15] sm:$0xff] %v1202_v33  ;;  %v1187_v37 = vmul.f32 %v1114_v36, %v1091_v32  ;;  %v1104_v32 = vld [vmem:[#allocation2 + $0x78] sm:$0xff] }
 0x286   : > { %v1205_v16 = vmax.f32 %v1189_v35, 0.0 }
 0x287   : > { %v1203_v40 = vmax.f32 %v1187_v37, 0.0  ;;  %v1134_v41 = vpop.permute.xlu1 %1133 }
 0x288   : > { %1221 = vst [vmem:[%s2235_s15 + $0x18] sm:$0xff] %v1205_v16  ;;  %v1191_v43 = vmul.f32 %v1134_v41, %v1095_v38  ;;  %v1129_v44 = vpop.permute.xlu0 %1128 }
 0x289   : > { %1219 = vst [vmem:[%s2235_s15 + $0x8] sm:$0xff] %v1203_v40  ;;  %v1190_v46 = vmul.f32 %v1129_v44, %v1094_v39 }
 0x28a   : > { %v1207_v48 = vmax.f32 %v1191_v43, 0.0 }
 0x28b   : > { %v1206_v50 = vmax.f32 %v1190_v46, 0.0  ;;  %v1144_v52 = vpop.permute.xlu1 %1143 }
 0x28c   : > { %1223 = vst [vmem:[%s2235_s15 + $0x28] sm:$0xff] %v1207_v48  ;;  %v1193_v53 = vmul.f32 %v1144_v52, %v1097_v47  ;;  %v1139_v54 = vpop.permute.xlu0 %1138 }
 0x28d   : > { %1222 = vst [vmem:[%s2235_s15 + $0x20] sm:$0xff] %v1206_v50  ;;  %v1192_v55 = vmul.f32 %v1139_v54, %v1096_v49 }
 0x28e   : > { %v1209_v57 = vmax.f32 %v1193_v53, 0.0 }
 0x28f   : > { %v1208_v60 = vmax.f32 %v1192_v55, 0.0  ;;  %v1154_v61 = vpop.permute.xlu1 %1153 }
 0x290   : > { %1225 = vst [vmem:[%s2235_s15 + $0x38] sm:$0xff] %v1209_v57  ;;  %v1195_v63 = vmul.f32 %v1154_v61, %v1099_v56  ;;  %v1149_v0 = vpop.permute.xlu0 %1148 }
 0x291   : > { %1224 = vst [vmem:[%s2235_s15 + $0x30] sm:$0xff] %v1208_v60  ;;  %v1194_v1 = vmul.f32 %v1149_v0, %v1098_v58 }
 0x292   : > { %v1211_v3 = vmax.f32 %v1195_v63, 0.0 }
 0x293   : > { %v1210_v5 = vmax.f32 %v1194_v1, 0.0  ;;  %v1164_v6 = vpop.permute.xlu1 %1163 }
 0x294   : > { %1227 = vst [vmem:[%s2235_s15 + $0x48] sm:$0xff] %v1211_v3  ;;  %v1197_v8 = vmul.f32 %v1164_v6, %v1101_v2  ;;  %v1159_v9 = vpop.permute.xlu0 %1158 }
 0x295   : > { %1226 = vst [vmem:[%s2235_s15 + $0x40] sm:$0xff] %v1210_v5  ;;  %v1196_v10 = vmul.f32 %v1159_v9, %v1100_v51 }
 0x296   : > { %v1213_v21 = vmax.f32 %v1197_v8, 0.0 }
 0x297   : > { %v1212_v23 = vmax.f32 %v1196_v10, 0.0  ;;  %v1174_v24 = vpop.permute.xlu1 %1173 }
 0x298   : > { %1229 = vst [vmem:[%s2235_s15 + $0x58] sm:$0xff] %v1213_v21  ;;  %v1199_v26 = vmul.f32 %v1174_v24, %v1103_v20  ;;  %v1169_v27 = vpop.permute.xlu0 %1168 }
 0x299   : > { %1228 = vst [vmem:[%s2235_s15 + $0x50] sm:$0xff] %v1212_v23  ;;  %v1198_v28 = vmul.f32 %v1169_v27, %v1102_v22 }
 0x29a   : > { %v1215_v31 = vmax.f32 %v1199_v26, 0.0 }
 0x29b   : > { %v1214_v33 = vmax.f32 %v1198_v28, 0.0  ;;  %v1184_v34 = vpop.permute.xlu1 %1183 }
 0x29c   : > { %1231 = vst [vmem:[%s2235_s15 + $0x68] sm:$0xff] %v1215_v31  ;;  %v1201_v35 = vmul.f32 %v1184_v34, %v1105_v30  ;;  %v1179_v36 = vpop.permute.xlu0 %1178 }
 0x29d   : > { %1230 = vst [vmem:[%s2235_s15 + $0x60] sm:$0xff] %v1214_v33  ;;  %v1200_v37 = vmul.f32 %v1179_v36, %v1104_v32 }
 0x29e   : > { %v1217_v38 = vmax.f32 %v1201_v35, 0.0 }
 0x29f   : > { %v1216_v16 = vmax.f32 %v1200_v37, 0.0 }
 0x2a0   : > { %1233 = vst [vmem:[%s2235_s15 + $0x78] sm:$0xff] %v1217_v38 }
 0x2a1   : > { %1232 = vst [vmem:[%s2235_s15 + $0x70] sm:$0xff] %v1216_v16 }
 0x2a2 PF: > { %p1654_p7 = scmp.ne.s32.totalorder %s2043_s23, 1 }
 0x2a4   : > { %1237 = sbr.rel (%p1654_p7) target bundleno = 852 (0x354), region = 93 }
 0x2a9   : > { %v1240_v39 = vld [vmem:[#allocation3 + $0x10] sm:$0xff]  ;;  %v1238_v40 = vld [vmem:[#allocation3] sm:$0xff]  ;;  %v1241_v41 = vld [vmem:[#allocation3 + $0x18] sm:$0xff]  ;;  %v2068_v43 = vmov 0  }
 0x2aa   : > { %1944 = vset.pattern.permute.xlu1 %v2068_v43  ;;  %1943 = vset.pattern.permute.xlu0 %v2068_v43  ;;  %1945 = vrcp.f32 %v1240_v39  ;;  %v1239_v44 = vld [vmem:[#allocation3 + $0x8] sm:$0xff]  ;;  %v1242_v47 = vld [vmem:[#allocation3 + $0x20] sm:$0xff]  ;;  %v1245_v48 = vld [vmem:[#allocation3 + $0x38] sm:$0xff] }
 0x2ab   : > { %1947 = vrcp.f32 %v1238_v40  ;;  %v1243_v46 = vld [vmem:[#allocation3 + $0x28] sm:$0xff]  ;;  %v1244_v49 = vld [vmem:[#allocation3 + $0x30] sm:$0xff]  ;;  %v1246_v52 = vld [vmem:[#allocation3 + $0x40] sm:$0xff] }
 0x2ac   : > { %1949 = vrcp.f32 %v1241_v41  ;;  %v1247_v50 = vld [vmem:[#allocation3 + $0x48] sm:$0xff]  ;;  %v1249_v56 = vld [vmem:[#allocation3 + $0x58] sm:$0xff]  ;;  %v1248_v58 = vld [vmem:[#allocation3 + $0x50] sm:$0xff] }
 0x2ad   : > { %1951 = vrcp.f32 %v1239_v44  ;;  %v1251_v61 = vld [vmem:[#allocation3 + $0x68] sm:$0xff]  ;;  %v1250_v0 = vld [vmem:[#allocation3 + $0x60] sm:$0xff]  ;;  %v1253_v2 = vld [vmem:[#allocation3 + $0x78] sm:$0xff] }
 0x2ae   : > { %1953 = vrcp.f32 %v1243_v46  ;;  %v1252_v51 = vld [vmem:[#allocation3 + $0x70] sm:$0xff] }
 0x2af   : > { %1955 = vrcp.f32 %v1242_v47 }
 0x2b0   : > { %1957 = vrcp.f32 %v1245_v48 }
 0x2b1   : > { %1959 = vrcp.f32 %v1244_v49 }
 0x2b2   : > { %1961 = vrcp.f32 %v1247_v50 }
 0x2b3   : > { %1963 = vrcp.f32 %v1246_v52 }
 0x2b4   : > { %1965 = vrcp.f32 %v1249_v56 }
 0x2b5   : > { %1967 = vrcp.f32 %v1248_v58 }
 0x2b6   : > { %1969 = vrcp.f32 %v1251_v61 }
 0x2b7   : > { %v1946_v53 = vpop.eup %1945  ;;  %1971 = vrcp.f32 %v1250_v0 }
 0x2b8   : > { %v1948_v54 = vpop.eup %1947  ;;  %1282 = vperm.xlu1 %1944, %v1946_v53   ;;  %1973 = vrcp.f32 %v1253_v2 }
 0x2b9   : > { %v1950_v55 = vpop.eup %1949  ;;  %1272 = vperm.xlu0 %1943, %v1948_v54   ;;  %1975 = vrcp.f32 %v1252_v51 }
 0x2ba   : > { %v1952_v57 = vpop.eup %1951 }
 0x2bb   : > { %v1954_v60 = vpop.eup %1953 }
 0x2bc   : > { %1287 = vperm.xlu1 %1944, %v1950_v55   ;;  %v1956_v63 = vpop.eup %1955 }
 0x2bd   : > { %1277 = vperm.xlu0 %1943, %v1952_v57   ;;  %v1958_v1 = vpop.eup %1957 }
 0x2be   : > { %v1960_v3 = vpop.eup %1959 }
 0x2bf   : > { %v1962_v5 = vpop.eup %1961 }
 0x2c0   : > { %1297 = vperm.xlu1 %1944, %v1954_v60   ;;  %v1964_v6 = vpop.eup %1963 }
 0x2c1   : > { %1292 = vperm.xlu0 %1943, %v1956_v63   ;;  %v1966_v8 = vpop.eup %1965 }
 0x2c2   : > { %v1968_v9 = vpop.eup %1967 }
 0x2c3   : > { %v1970_v10 = vpop.eup %1969 }
 0x2c4   : > { %1307 = vperm.xlu1 %1944, %v1958_v1   ;;  %v1972_v20 = vpop.eup %1971 }
 0x2c5   : > { %1302 = vperm.xlu0 %1943, %v1960_v3   ;;  %v1974_v21 = vpop.eup %1973 }
 0x2c6   : > { %v1976_v22 = vpop.eup %1975 }
 0x2c8   : > { %1317 = vperm.xlu1 %1944, %v1962_v5  }
 0x2c9   : > { %1312 = vperm.xlu0 %1943, %v1964_v6  }
 0x2cc   : > { %1327 = vperm.xlu1 %1944, %v1966_v8  }
 0x2cd   : > { %1322 = vperm.xlu0 %1943, %v1968_v9  }
 0x2d0   : > { %1337 = vperm.xlu1 %1944, %v1970_v10  }
 0x2d1   : > { %1332 = vperm.xlu0 %1943, %v1972_v20  }
 0x2d4   : > { %1347 = vperm.xlu1 %1944, %v1974_v21  }
 0x2d5   : > { %1342 = vperm.xlu0 %1943, %v1976_v22  }
 0x333   : > { %v1283_v23 = vpop.permute.xlu1 %1282 }
 0x334   : > { %v1352_v24 = vmul.f32 %v2398_v25, %v1283_v23  ;;  %v1273_v26 = vpop.permute.xlu0 %1272 }
 0x335   : > { %v1350_v27 = vmul.f32 %v2403_v29, %v1273_v26 }
 0x336   : > { %1368 = vst [vmem:[%s2456_s0 + $0x10] sm:$0xff] %v1352_v24 }
 0x337   : > { %1366 = vst [vmem:[%s2456_s0] sm:$0xff] %v1350_v27  ;;  %v1288_v28 = vpop.permute.xlu1 %1287 }
 0x338   : > { %v1353_v30 = vmul.f32 %v2411_v42, %v1288_v28  ;;  %v1278_v31 = vpop.permute.xlu0 %1277 }
 0x339   : > { %v1351_v32 = vmul.f32 %v2415_v45, %v1278_v31 }
 0x33a   : > { %1369 = vst [vmem:[%s2456_s0 + $0x18] sm:$0xff] %v1353_v30 }
 0x33b   : > { %1367 = vst [vmem:[%s2456_s0 + $0x8] sm:$0xff] %v1351_v32  ;;  %v1298_v33 = vpop.permute.xlu1 %1297 }
 0x33c   : > { %v1355_v25 = vmul.f32 %v2425_v59, %v1298_v33  ;;  %v1293_v34 = vpop.permute.xlu0 %1292 }
 0x33d   : > { %v1354_v29 = vmul.f32 %v2429_v62, %v1293_v34 }
 0x33e   : > { %1371 = vst [vmem:[%s2456_s0 + $0x28] sm:$0xff] %v1355_v25 }
 0x33f   : > { %1370 = vst [vmem:[%s2456_s0 + $0x20] sm:$0xff] %v1354_v29  ;;  %v1308_v35 = vpop.permute.xlu1 %1307 }
 0x340   : > { %v1357_v42 = vmul.f32 %v2433_v4, %v1308_v35  ;;  %v1303_v36 = vpop.permute.xlu0 %1302 }
 0x341   : > { %v1356_v45 = vmul.f32 %v2437_v7, %v1303_v36 }
 0x342   : > { %1373 = vst [vmem:[%s2456_s0 + $0x38] sm:$0xff] %v1357_v42 }
 0x343   : > { %1372 = vst [vmem:[%s2456_s0 + $0x30] sm:$0xff] %v1356_v45  ;;  %v1318_v37 = vpop.permute.xlu1 %1317 }
 0x344   : > { %v1359_v59 = vmul.f32 %v2439_v11, %v1318_v37  ;;  %v1313_v38 = vpop.permute.xlu0 %1312 }
 0x345   : > { %v1358_v62 = vmul.f32 %v2441_v12, %v1313_v38 }
 0x346   : > { %1375 = vst [vmem:[%s2456_s0 + $0x48] sm:$0xff] %v1359_v59 }
 0x347   : > { %1374 = vst [vmem:[%s2456_s0 + $0x40] sm:$0xff] %v1358_v62  ;;  %v1328_v16 = vpop.permute.xlu1 %1327 }
 0x348   : > { %v1361_v4 = vmul.f32 %v2443_v13, %v1328_v16  ;;  %v1323_v39 = vpop.permute.xlu0 %1322 }
 0x349   : > { %v1360_v7 = vmul.f32 %v2445_v14, %v1323_v39 }
 0x34a   : > { %1377 = vst [vmem:[%s2456_s0 + $0x58] sm:$0xff] %v1361_v4 }
 0x34b   : > { %1376 = vst [vmem:[%s2456_s0 + $0x50] sm:$0xff] %v1360_v7  ;;  %v1338_v40 = vpop.permute.xlu1 %1337 }
 0x34c   : > { %v1363_v41 = vmul.f32 %v2447_v15, %v1338_v40  ;;  %v1333_v11 = vpop.permute.xlu0 %1332 }
 0x34d   : > { %v1362_v43 = vmul.f32 %v2449_v17, %v1333_v11 }
 0x34e   : > { %1379 = vst [vmem:[%s2456_s0 + $0x68] sm:$0xff] %v1363_v41 }
 0x34f   : > { %1378 = vst [vmem:[%s2456_s0 + $0x60] sm:$0xff] %v1362_v43  ;;  %v1348_v12 = vpop.permute.xlu1 %1347 }
 0x350   : > { %v1365_v44 = vmul.f32 %v2451_v18, %v1348_v12  ;;  %v1343_v46 = vpop.permute.xlu0 %1342 }
 0x351   : > { %v1364_v13 = vmul.f32 %v2453_v19, %v1343_v46 }
 0x352   : > { %1381 = vst [vmem:[%s2456_s0 + $0x78] sm:$0xff] %v1365_v44 }
 0x353   : > { %1380 = vst [vmem:[%s2456_s0 + $0x70] sm:$0xff] %v1364_v13 }
 0x354 PF: > { %1397 = sbr.rel (!%p2182_p8) target bundleno = 868 (0x364), region = 101  ;;  %s1662_s13 = sshll.u32 (%p2182_p8), %s2047_s24, 5  ;;  %v1462_v14 = vld [vmem:[%s2456_s0] sm:$0xff] (%p2182_p8)  ;;  %v1464_v15 = vld [vmem:[%s2456_s0 + $0x8] sm:$0xff] (%p2182_p8)  ;;  %v1466_v17 = vld [vmem:[%s2456_s0 + $0x10] sm:$0xff] (%p2182_p8) }
 0x355   : > { %s1398_s15 = smul.u32 (%p2182_p8), %s2039_s22, %s2043_s23  ;;  %v1468_v18 = vld [vmem:[%s2456_s0 + $0x18] sm:$0xff] (%p2182_p8)  ;;  %v1470_v19 = vld [vmem:[%s2456_s0 + $0x20] sm:$0xff] (%p2182_p8)  ;;  %v1472_v47 = vld [vmem:[%s2456_s0 + $0x28] sm:$0xff] (%p2182_p8)  ;;  %s2692_s23 = sld [smem:[#allocation9_spill]] (%p2182_p8) }
 0x356   : > { %v1474_v48 = vld [vmem:[%s2456_s0 + $0x30] sm:$0xff] (%p2182_p8)  ;;  %v1476_v49 = vld [vmem:[%s2456_s0 + $0x38] sm:$0xff] (%p2182_p8)  ;;  %v1478_v50 = vld [vmem:[%s2456_s0 + $0x40] sm:$0xff] (%p2182_p8) }
 0x357   : > { %s1401_s14 = sadd.s32 (%p2182_p8), %s1662_s13, %s1398_s15  ;;  %v1480_v52 = vld [vmem:[%s2456_s0 + $0x48] sm:$0xff] (%p2182_p8)  ;;  %v1482_v53 = vld [vmem:[%s2456_s0 + $0x50] sm:$0xff] (%p2182_p8)  ;;  %v1484_v54 = vld [vmem:[%s2456_s0 + $0x58] sm:$0xff] (%p2182_p8) }
 0x358   : > { %s1658_s10 = sshll.u32 (%p2182_p8), %s1401_s14, 3  ;;  %v1486_v55 = vld [vmem:[%s2456_s0 + $0x60] sm:$0xff] (%p2182_p8)  ;;  %v1488_v56 = vld [vmem:[%s2456_s0 + $0x68] sm:$0xff] (%p2182_p8) }
 0x359   : > { %v1492_v58 = vld [vmem:[%s2456_s0 + $0x78] sm:$0xff] }
 0x35a   : > { %v1490_v57 = vld [vmem:[%s2456_s0 + $0x70] sm:$0xff] }
 0x35b   : > { %s1403_s24 = scalar_lea.vmem %s2692_s23, %s1658_s10 }
 0x35c   : > { %1463 = vst [vmem:[%s1403_s24] sm:$0xff] %v1462_v14  ;;  %1465 = vst [vmem:[%s1403_s24 + $0x10] sm:$0xff] %v1464_v15 }
 0x35d   : > { %1467 = vst [vmem:[%s1403_s24 + $0x20] sm:$0xff] %v1466_v17  ;;  %1469 = vst [vmem:[%s1403_s24 + $0x30] sm:$0xff] %v1468_v18 }
 0x35e   : > { %1471 = vst [vmem:[%s1403_s24 + $0x40] sm:$0xff] %v1470_v19  ;;  %1473 = vst [vmem:[%s1403_s24 + $0x50] sm:$0xff] %v1472_v47 }
 0x35f   : > { %1475 = vst [vmem:[%s1403_s24 + $0x60] sm:$0xff] %v1474_v48  ;;  %1477 = vst [vmem:[%s1403_s24 + $0x70] sm:$0xff] %v1476_v49 }
 0x360   : > { %1479 = vst [vmem:[%s1403_s24 + $0x80] sm:$0xff] %v1478_v50  ;;  %1481 = vst [vmem:[%s1403_s24 + $0x90] sm:$0xff] %v1480_v52 }
 0x361   : > { %1483 = vst [vmem:[%s1403_s24 + $0xa0] sm:$0xff] %v1482_v53  ;;  %1485 = vst [vmem:[%s1403_s24 + $0xb0] sm:$0xff] %v1484_v54 }
 0x362   : > { %1487 = vst [vmem:[%s1403_s24 + $0xc0] sm:$0xff] %v1486_v55  ;;  %1489 = vst [vmem:[%s1403_s24 + $0xd0] sm:$0xff] %v1488_v56 }
 0x363   : > { %1491 = vst [vmem:[%s1403_s24 + $0xe0] sm:$0xff] %v1490_v57  ;;  %1493 = vst [vmem:[%s1403_s24 + $0xf0] sm:$0xff] %v1492_v58 }
 0x364 PF: > { %s16_s28 = sadd.s32 1, %s2063_s28   ;;  %s2693_s23 = sld [smem:[#allocation6_spill]] }
 0x365   : > { %p13_p8 = scmp.ge.s32.totalorder %s16_s28, 10   ;;  %s2694_s26 = sld [smem:[#allocation7_spill]] }
 0x366   : > { %s2695_s18 = smov %s2027_s19  ;;  %s2696_s19 = smov %s2193_s30 }
 0x367   : > { %s2697_s20 = smov %s2035_s21  ;;  %s2698_s21 = smov %s2190_s5 }
 0x368   : > { %s2699_s22 = smov %s2051_s25  ;;  %s2700_s24 = smov %s2059_s27 }
 0x369   : > { %s2701_s25 = smov %s2704_s29  ;;  %s2702_s27 = smov %s2712_s7 }
 0x36a   :  { %15 = sbr.rel (!%p13_p8) target bundleno = 9 (0x9), region = 187 }

// kernel: gnn_forward.9
= control target key start
LH: loop header
LB: loop body
LE: loop exit
PB: predicated region body
PF: predicated region fallthrough
CT: control target
= control target key end

     0   :  { %s841_s12 = smov 0   ;;  %s1065_s0 = inlined_call_operand.vmem [shape: f32[256,128], index: 0, kind: input, shape index: {}]   ;;  %s1066_s1 = inlined_call_operand.vmem [shape: f32[128,128], index: 1, kind: input, shape index: {}]   ;;  %s1067_s2 = inlined_call_operand.vmem [shape: f32[1,128], index: 2, kind: input, shape index: {}]   ;;  %s1068_s3 = inlined_call_operand.vmem [shape: f32[256,128], index: 3, kind: output, shape index: {}]  }
   0x1 LB: > { %s609_s13 = sadd.s32 4294967295, %s819_s12   ;;  %p613_p0 = scmp.ge.s32.totalorder %s819_s12, 1  ;;  %s819_s12 = sphi %s841_s12, %s13_s12  }
   0x2   : > { %p138_p1 = scmp.lt.s32.totalorder %s819_s12, 3 }
   0x4   : > { %p139_p2 = pnand %p613_p0, %p138_p1 }
   0x5   : > { %s614_s30 = sshll.u32 (!%p139_p2), %s609_s13, 4 }
   0x6   : > { %142 = sbr.rel (%p139_p2) target bundleno = 587 (0x24b), region = 32  ;;  %p163_p3 = scmp.lt.s32.totalorder (!%p139_p2), %s614_s30, 31 }
   0xb   : > { %v205_v0 = vld [vmem:[%s1066_s1 + $0x78] sm:$0xff]  ;;  %v204_v1 = vld [vmem:[%s1066_s1 + $0x70] sm:$0xff]  ;;  %v203_v2 = vld [vmem:[%s1066_s1 + $0x68] sm:$0xff]  ;;  %s1070_s30 = smov (!%p163_p3, %s614_s30), 31  ;;  %v358_v32 = vlaneseq }
   0xc   : > { %653 = vmatprep.subr.mxu0 %v205_v0  ;;  %709 = vmatprep.subr.mxu1 %v205_v0  ;;  %v202_v3 = vld [vmem:[%s1066_s1 + $0x60] sm:$0xff]  ;;  %v201_v4 = vld [vmem:[%s1066_s1 + $0x58] sm:$0xff]  ;;  %v200_v5 = vld [vmem:[%s1066_s1 + $0x50] sm:$0xff]  ;;  %s615_s17 = sshll.u32 %s1070_s30, 3 }
   0xd   : > { %654 = vmatpush3.msra.mxu0 %v205_v0  ;;  %725 = vmatpush3.msra.mxu1 %v205_v0  ;;  %v199_v6 = vld [vmem:[%s1066_s1 + $0x48] sm:$0xff]  ;;  %v198_v7 = vld [vmem:[%s1066_s1 + $0x40] sm:$0xff]  ;;  %v197_v8 = vld [vmem:[%s1066_s1 + $0x38] sm:$0xff]  ;;  %s904_s22 = scalar_lea.vmem %s1065_s0, %s615_s17  ;;  %v925_v33 = vand.u32 127, %v358_v32  ;;  %s1028_s29 = scalar_lea.vmem %s1068_s3, %s615_s17 }
   0xe   : > { %655 = vmatprep.subr.mxu0 %v204_v1  ;;  %710 = vmatprep.subr.mxu1 %v204_v1  ;;  %v196_v9 = vld [vmem:[%s1066_s1 + $0x30] sm:$0xff]  ;;  %v195_v10 = vld [vmem:[%s1066_s1 + $0x28] sm:$0xff]  ;;  %v194_v11 = vld [vmem:[%s1066_s1 + $0x20] sm:$0xff] }
   0xf   : > { %656 = vmatpush3.msra.mxu0 %v204_v1  ;;  %726 = vmatpush3.msra.mxu1 %v204_v1  ;;  %v193_v12 = vld [vmem:[%s1066_s1 + $0x18] sm:$0xff]  ;;  %v192_v13 = vld [vmem:[%s1066_s1 + $0x10] sm:$0xff]  ;;  %v191_v14 = vld [vmem:[%s1066_s1 + $0x8] sm:$0xff]  ;;  %vm360_vm0 = vcmp.lt.s32.totalorder %v925_v33, 4 }
  0x10   : > { %657 = vmatprep.subr.mxu0 %v203_v2  ;;  %711 = vmatprep.subr.mxu1 %v203_v2  ;;  %v190_v15 = vld [vmem:[%s1066_s1] sm:$0xff]  ;;  %v175_v18 = vld [vmem:[%s904_s22 + $0x8] sm:$0xff]  ;;  %v176_v20 = vld [vmem:[%s904_s22 + $0x10] sm:$0xff] }
  0x11   : > { %658 = vmatpush3.msra.mxu0 %v203_v2  ;;  %727 = vmatpush3.msra.mxu1 %v203_v2  ;;  %v174_v16 = vld [vmem:[%s904_s22] sm:$0xff]  ;;  %v183_v19 = vld [vmem:[%s904_s22 + $0x48] sm:$0xff]  ;;  %v184_v21 = vld [vmem:[%s904_s22 + $0x50] sm:$0xff] }
  0x12   : > { %659 = vmatprep.subr.mxu0 %v202_v3  ;;  %712 = vmatprep.subr.mxu1 %v202_v3  ;;  %v182_v17 = vld [vmem:[%s904_s22 + $0x40] sm:$0xff]  ;;  %v177_v22 = vld [vmem:[%s904_s22 + $0x18] sm:$0xff]  ;;  %v179_v26 = vld [vmem:[%s904_s22 + $0x28] sm:$0xff] }
  0x13   : > { %660 = vmatpush3.msra.mxu0 %v202_v3  ;;  %728 = vmatpush3.msra.mxu1 %v202_v3  ;;  %v185_v23 = vld [vmem:[%s904_s22 + $0x58] sm:$0xff]  ;;  %v178_v24 = vld [vmem:[%s904_s22 + $0x20] sm:$0xff]  ;;  %v187_v27 = vld [vmem:[%s904_s22 + $0x68] sm:$0xff] }
  0x14   : > { %661 = vmatprep.subr.mxu0 %v201_v4  ;;  %713 = vmatprep.subr.mxu1 %v201_v4  ;;  %v186_v25 = vld [vmem:[%s904_s22 + $0x60] sm:$0xff]  ;;  %v180_v28 = vld [vmem:[%s904_s22 + $0x30] sm:$0xff]  ;;  %v181_v30 = vld [vmem:[%s904_s22 + $0x38] sm:$0xff] }
  0x15   : > { %662 = vmatpush3.msra.mxu0 %v201_v4  ;;  %729 = vmatpush3.msra.mxu1 %v201_v4  ;;  %v188_v29 = vld [vmem:[%s904_s22 + $0x70] sm:$0xff]  ;;  %v189_v31 = vld [vmem:[%s904_s22 + $0x78] sm:$0xff]  ;;  %v618_v34 = vld [vmem:[%s1067_s2] ss:$0 sm:$0xff] }
  0x16   : > { %663 = vmatprep.subr.mxu0 %v200_v5  ;;  %714 = vmatprep.subr.mxu1 %v200_v5 }
  0x17   : > { %664 = vmatpush3.msra.mxu0 %v200_v5  ;;  %730 = vmatpush3.msra.mxu1 %v200_v5 }
  0x18   : > { %665 = vmatprep.subr.mxu0 %v199_v6  ;;  %715 = vmatprep.subr.mxu1 %v199_v6 }
  0x19   : > { %666 = vmatpush3.msra.mxu0 %v199_v6  ;;  %731 = vmatpush3.msra.mxu1 %v199_v6 }
  0x1a   : > { %667 = vmatprep.subr.mxu0 %v198_v7  ;;  %716 = vmatprep.subr.mxu1 %v198_v7 }
  0x1b   : > { %668 = vmatpush3.msra.mxu0 %v198_v7  ;;  %732 = vmatpush3.msra.mxu1 %v198_v7 }
  0x1c   : > { %669 = vmatprep.subr.mxu0 %v197_v8  ;;  %717 = vmatprep.subr.mxu1 %v197_v8 }
  0x1d   : > { %670 = vmatpush3.msra.mxu0 %v197_v8  ;;  %733 = vmatpush3.msra.mxu1 %v197_v8 }
  0x1e   : > { %671 = vmatprep.subr.mxu0 %v196_v9  ;;  %718 = vmatprep.subr.mxu1 %v196_v9 }
  0x1f   : > { %672 = vmatpush3.msra.mxu0 %v196_v9  ;;  %734 = vmatpush3.msra.mxu1 %v196_v9 }
  0x20   : > { %673 = vmatprep.subr.mxu0 %v195_v10  ;;  %719 = vmatprep.subr.mxu1 %v195_v10 }
  0x21   : > { %674 = vmatpush3.msra.mxu0 %v195_v10  ;;  %735 = vmatpush3.msra.mxu1 %v195_v10 }
  0x22   : > { %675 = vmatprep.subr.mxu0 %v194_v11  ;;  %720 = vmatprep.subr.mxu1 %v194_v11 }
  0x23   : > { %676 = vmatpush3.msra.mxu0 %v194_v11  ;;  %736 = vmatpush3.msra.mxu1 %v194_v11 }
  0x24   : > { %677 = vmatprep.subr.mxu0 %v193_v12  ;;  %721 = vmatprep.subr.mxu1 %v193_v12 }
  0x25   : > { %678 = vmatpush3.msra.mxu0 %v193_v12  ;;  %737 = vmatpush3.msra.mxu1 %v193_v12 }
  0x26   : > { %679 = vmatprep.subr.mxu0 %v192_v13  ;;  %722 = vmatprep.subr.mxu1 %v192_v13 }
  0x27   : > { %680 = vmatpush3.msra.mxu0 %v192_v13  ;;  %738 = vmatpush3.msra.mxu1 %v192_v13 }
  0x28   : > { %681 = vmatprep.subr.mxu0 %v191_v14  ;;  %723 = vmatprep.subr.mxu1 %v191_v14 }
  0x29   : > { %682 = vmatpush3.msra.mxu0 %v191_v14  ;;  %739 = vmatpush3.msra.mxu1 %v191_v14 }
  0x2a   : > { %683 = vmatprep.subr.mxu0 %v190_v15  ;;  %724 = vmatprep.subr.mxu1 %v190_v15 }
  0x2b   : > { %684 = vmatpush3.msra.mxu0 %v190_v15  ;;  %740 = vmatpush3.msra.mxu1 %v190_v15 }
  0x2c   : > { %685 = vmatprep.mubr.f32.mxu0 %v174_v16  ;;  %697 = vmatprep.mubr.f32.mxu1 %v182_v17 }
  0x2d   : > { %686 = vmatmul.mubr.f32.vlgmr.msra.gmra.mxu0 %v175_v18  ;;  %698 = vmatmul.mubr.f32.vlgmr.msra.gmra.mxu1 %v183_v19 }
  0x2e   : > { %688 = vmatprep.mubr.f32.mxu0 %v176_v20  ;;  %700 = vmatprep.mubr.f32.mxu1 %v184_v21 }
  0x31   : > { %689 = vmatmul.mubr.f32.gmra.mxu0 %v177_v22  ;;  %701 = vmatmul.mubr.f32.gmra.mxu1 %v185_v23 }
  0x32   : > { %691 = vmatprep.mubr.f32.mxu0 %v178_v24  ;;  %703 = vmatprep.mubr.f32.mxu1 %v186_v25 }
  0x35   : > { %692 = vmatmul.mubr.f32.gmra.mxu0 %v179_v26  ;;  %704 = vmatmul.mubr.f32.gmra.mxu1 %v187_v27 }
  0x36   : > { %694 = vmatprep.mubr.f32.mxu0 %v180_v28  ;;  %706 = vmatprep.mubr.f32.mxu1 %v188_v29 }
  0x39   : > { %695 = vmatmul.mubr.f32.gmra.mxu0 %v181_v30  ;;  %707 = vmatmul.mubr.f32.gmra.mxu1 %v189_v31 }
  0xed   : > { %v687_v35 = vpop.f32.mrf.mxu0  ;;  %v699_v36 = vpop.f32.mrf.mxu1 }
  0xee   : > { %v285_v37 = vadd.f32 %v687_v35, %v618_v34  ;;  %v325_v38 = vadd.f32 %v699_v36, %v618_v34 }
  0xef   : > { %v279_v39 = vpop.f32.mrf.mxu0  ;;  %v319_v40 = vpop.f32.mrf.mxu1 }
  0xf0   : > { %v280_v41 = vadd.f32 %v618_v34, %v279_v39  ;;  %v370_v42 = vsel %vm360_vm0, %v325_v38, -1e+30  ;;  %v362_v43 = vsel %vm360_vm0, %v285_v37, -1e+30  ;;  %v320_v49 = vadd.f32 %v618_v34, %v319_v40 }
  0xf1   : > { %395 = vmax.xlane.f32.xlu1 %v370_v42  ;;  %379 = vmax.xlane.f32.xlu0 %v362_v43  ;;  %v690_v44 = vpop.f32.mrf.mxu0  ;;  %v702_v45 = vpop.f32.mrf.mxu1 }
  0xf2   : > { %v295_v46 = vadd.f32 %v690_v44, %v618_v34  ;;  %v335_v47 = vadd.f32 %v702_v45, %v618_v34  ;;  %v361_v51 = vsel %vm360_vm0, %v280_v41, -1e+30  ;;  %v369_v59 = vsel %vm360_vm0, %v320_v49, -1e+30 }
  0xf3   : > { %v289_v48 = vpop.f32.mrf.mxu0  ;;  %v329_v52 = vpop.f32.mrf.mxu1 }
  0xf4   : > { %v364_v50 = vsel %vm360_vm0, %v295_v46, -1e+30  ;;  %v372_v54 = vsel %vm360_vm0, %v335_v47, -1e+30  ;;  %v290_v57 = vadd.f32 %v618_v34, %v289_v48  ;;  %v330_v58 = vadd.f32 %v618_v34, %v329_v52 }
  0xf5   : > { %383 = vmax.xlane.f32.xlu1 %v364_v50  ;;  %377 = vmax.xlane.f32.xlu0 %v361_v51  ;;  %v693_v53 = vpop.f32.mrf.mxu0  ;;  %v705_v56 = vpop.f32.mrf.mxu1 }
  0xf6   : > { %v305_v60 = vadd.f32 %v693_v53, %v618_v34  ;;  %v363_v0 = vsel %vm360_vm0, %v290_v57, -1e+30  ;;  %v371_v1 = vsel %vm360_vm0, %v330_v58, -1e+30  ;;  %v345_v2 = vadd.f32 %v705_v56, %v618_v34 }
  0xf7   : > { %v299_v55 = vpop.f32.mrf.mxu0  ;;  %v339_v62 = vpop.f32.mrf.mxu1 }
  0xf8   : > { %v300_v61 = vadd.f32 %v618_v34, %v299_v55  ;;  %v340_v3 = vadd.f32 %v618_v34, %v339_v62  ;;  %v366_v4 = vsel %vm360_vm0, %v305_v60, -1e+30  ;;  %v374_v10 = vsel %vm360_vm0, %v345_v2, -1e+30 }
  0xf9   : > { %399 = vmax.xlane.f32.xlu1 %v372_v54  ;;  %393 = vmax.xlane.f32.xlu0 %v369_v59  ;;  %v696_v63 = vpop.f32.mrf.mxu0  ;;  %v708_v7 = vpop.f32.mrf.mxu1 }
  0xfa   : > { %v365_v5 = vsel %vm360_vm0, %v300_v61, -1e+30  ;;  %v315_v8 = vadd.f32 %v696_v63, %v618_v34  ;;  %v373_v11 = vsel %vm360_vm0, %v340_v3, -1e+30  ;;  %v355_v13 = vadd.f32 %v708_v7, %v618_v34 }
  0xfb   : > { %v309_v6 = vpop.f32.mrf.mxu0  ;;  %v349_v12 = vpop.f32.mrf.mxu1 }
  0xfc   : > { %v310_v9 = vadd.f32 %v618_v34, %v309_v6  ;;  %v350_v14 = vadd.f32 %v618_v34, %v349_v12  ;;  %v368_v15 = vsel %vm360_vm0, %v315_v8, -1e+30  ;;  %v964_v17 = vsel %vm360_vm0, %v355_v13, -1e+30 }
  0xfd   : > { %381 = vmax.xlane.f32.xlu1 %v363_v0  ;;  %397 = vmax.xlane.f32.xlu0 %v371_v1 }
  0xfe   : > { %v959_v16 = vsel %vm360_vm0, %v310_v9, -1e+30  ;;  %v968_v18 = vsel %vm360_vm0, %v350_v14, -1e+30 }
 0x101   : > { %387 = vmax.xlane.f32.xlu1 %v366_v4  ;;  %385 = vmax.xlane.f32.xlu0 %v365_v5 }
 0x105   : > { %403 = vmax.xlane.f32.xlu1 %v374_v10  ;;  %401 = vmax.xlane.f32.xlu0 %v373_v11 }
 0x109   : > { %391 = vmax.xlane.f32.xlu1 %v368_v15  ;;  %389 = vmax.xlane.f32.xlu0 %v959_v16 }
 0x10d   : > { %407 = vmax.xlane.f32.xlu1 %v964_v17  ;;  %405 = vmax.xlane.f32.xlu0 %v968_v18 }
 0x17a   : > { %v396_v19 = vpop.xlane.xlu1 %395  ;;  %v380_v20 = vpop.xlane.xlu0 %379 }
 0x17b   : > { %v972_v21 = vsub.f32 %v370_v42, %v396_v19  ;;  %v974_v22 = vsub.f32 %v362_v43, %v380_v20 }
 0x17d   : > { %v427_v23 = vmul.f32 1.442695, %v974_v22  ;;  %v443_v26 = vmul.f32 1.442695, %v972_v21 }
 0x17e   : > { %v384_v24 = vpop.xlane.xlu1 %383  ;;  %v378_v25 = vpop.xlane.xlu0 %377 }
 0x17f   : > { %v978_v27 = vsub.f32 %v364_v50, %v384_v24  ;;  %v980_v28 = vsub.f32 %v361_v51, %v378_v25  ;;  %749 = vpow2.f32 %v427_v23 }
 0x180   : > { %751 = vpow2.f32 %v443_v26 }
 0x181   : > { %v425_v29 = vmul.f32 1.442695, %v980_v28  ;;  %v431_v32 = vmul.f32 1.442695, %v978_v27 }
 0x182   : > { %v400_v30 = vpop.xlane.xlu1 %399  ;;  %v394_v31 = vpop.xlane.xlu0 %393 }
 0x183   : > { %v984_v33 = vsub.f32 %v369_v59, %v394_v31  ;;  %753 = vpow2.f32 %v425_v29  ;;  %v986_v34 = vsub.f32 %v372_v54, %v400_v30 }
 0x184   : > { %755 = vpow2.f32 %v431_v32 }
 0x185   : > { %v441_v35 = vmul.f32 1.442695, %v984_v33  ;;  %v447_v39 = vmul.f32 1.442695, %v986_v34 }
 0x186   : > { %v382_v36 = vpop.xlane.xlu1 %381  ;;  %v398_v37 = vpop.xlane.xlu0 %397 }
 0x187   : > { %v989_v38 = vsub.f32 %v363_v0, %v382_v36  ;;  %757 = vpow2.f32 %v441_v35  ;;  %v992_v40 = vsub.f32 %v371_v1, %v398_v37 }
 0x189   : > { %v429_v41 = vmul.f32 1.442695, %v989_v38  ;;  %v445_v45 = vmul.f32 1.442695, %v992_v40 }
 0x18a   : > { %v388_v42 = vpop.xlane.xlu1 %387  ;;  %v386_v43 = vpop.xlane.xlu0 %385 }
 0x18b   : > { %759 = vpow2.f32 %v429_v41  ;;  %v995_v44 = vsub.f32 %v366_v4, %v388_v42  ;;  %v998_v46 = vsub.f32 %v365_v5, %v386_v43 }
 0x18c   : > { %761 = vpow2.f32 %v447_v39  ;;  %v750_v47 = vpop.eup %749 }
 0x18d   : > { %v435_v48 = vmul.f32 1.442695, %v995_v44  ;;  %459 = vadd.xlane.f32.xlu1 %v750_v47  ;;  %v752_v52 = vpop.eup %751  ;;  %v433_v53 = vmul.f32 1.442695, %v998_v46 }
 0x18e   : > { %v404_v49 = vpop.xlane.xlu1 %403  ;;  %v402_v50 = vpop.xlane.xlu0 %401 }
 0x18f   : > { %763 = vpow2.f32 %v435_v48  ;;  %v1001_v51 = vsub.f32 %v374_v10, %v404_v49  ;;  %v1004_v54 = vsub.f32 %v373_v11, %v402_v50 }
 0x190   : > { %765 = vpow2.f32 %v445_v45  ;;  %v754_v55 = vpop.eup %753 }
 0x191   : > { %v451_v56 = vmul.f32 1.442695, %v1001_v51  ;;  %475 = vadd.xlane.f32.xlu1 %v752_v52  ;;  %457 = vadd.xlane.f32.xlu0 %v754_v55  ;;  %v756_v60 = vpop.eup %755  ;;  %v449_v61 = vmul.f32 1.442695, %v1004_v54 }
 0x192   : > { %v392_v57 = vpop.xlane.xlu1 %391  ;;  %v390_v58 = vpop.xlane.xlu0 %389 }
 0x193   : > { %767 = vpow2.f32 %v451_v56  ;;  %v1007_v59 = vsub.f32 %v368_v15, %v392_v57  ;;  %v1011_v62 = vsub.f32 %v959_v16, %v390_v58 }
 0x194   : > { %769 = vpow2.f32 %v433_v53  ;;  %v758_v63 = vpop.eup %757 }
 0x195   : > { %v439_v0 = vmul.f32 1.442695, %v1007_v59  ;;  %463 = vadd.xlane.f32.xlu1 %v756_v60  ;;  %473 = vadd.xlane.f32.xlu0 %v758_v63  ;;  %v437_v5 = vmul.f32 1.442695, %v1011_v62 }
 0x196   : > { %v408_v1 = vpop.xlane.xlu1 %407  ;;  %v406_v2 = vpop.xlane.xlu0 %405 }
 0x197   : > { %771 = vpow2.f32 %v439_v0  ;;  %v1015_v3 = vsub.f32 %v964_v17, %v408_v1  ;;  %v1019_v6 = vsub.f32 %v968_v18, %v406_v2 }
 0x198   : > { %v760_v4 = vpop.eup %759  ;;  %773 = vpow2.f32 %v449_v61 }
 0x199   : > { %v762_v7 = vpop.eup %761  ;;  %v455_v8 = vmul.f32 1.442695, %v1015_v3  ;;  %461 = vadd.xlane.f32.xlu0 %v760_v4  ;;  %v453_v10 = vmul.f32 1.442695, %v1019_v6 }
 0x19a   : > { %479 = vadd.xlane.f32.xlu1 %v762_v7 }
 0x19b   : > { %775 = vpow2.f32 %v455_v8 }
 0x19c   : > { %v764_v9 = vpop.eup %763  ;;  %777 = vpow2.f32 %v437_v5 }
 0x19d   : > { %v766_v11 = vpop.eup %765  ;;  %779 = vpow2.f32 %v453_v10 }
 0x19e   : > { %467 = vadd.xlane.f32.xlu1 %v764_v9  ;;  %477 = vadd.xlane.f32.xlu0 %v766_v11 }
 0x1a0   : > { %v768_v12 = vpop.eup %767 }
 0x1a1   : > { %v770_v13 = vpop.eup %769 }
 0x1a2   : > { %483 = vadd.xlane.f32.xlu1 %v768_v12  ;;  %465 = vadd.xlane.f32.xlu0 %v770_v13 }
 0x1a4   : > { %v772_v14 = vpop.eup %771 }
 0x1a5   : > { %v774_v15 = vpop.eup %773 }
 0x1a6   : > { %471 = vadd.xlane.f32.xlu1 %v772_v14  ;;  %481 = vadd.xlane.f32.xlu0 %v774_v15 }
 0x1a8   : > { %v776_v16 = vpop.eup %775 }
 0x1a9   : > { %v778_v17 = vpop.eup %777 }
 0x1aa   : > { %487 = vadd.xlane.f32.xlu1 %v776_v16  ;;  %469 = vadd.xlane.f32.xlu0 %v778_v17  ;;  %v780_v18 = vpop.eup %779 }
 0x1ae   : > { %485 = vadd.xlane.f32.xlu0 %v780_v18 }
 0x216   : > { %v460_v19 = vpop.xlane.xlu1 %459 }
 0x217   : > { %781 = vlog2.f32 %v460_v19 }
 0x21a   : > { %v476_v20 = vpop.xlane.xlu1 %475  ;;  %v458_v23 = vpop.xlane.xlu0 %457 }
 0x21b   : > { %783 = vlog2.f32 %v476_v20 }
 0x21c   : > { %785 = vlog2.f32 %v458_v23 }
 0x21e   : > { %v464_v24 = vpop.xlane.xlu1 %463  ;;  %v474_v25 = vpop.xlane.xlu0 %473 }
 0x21f   : > { %787 = vlog2.f32 %v464_v24 }
 0x220   : > { %789 = vlog2.f32 %v474_v25 }
 0x222   : > { %v462_v29 = vpop.xlane.xlu0 %461 }
 0x223   : > { %v480_v26 = vpop.xlane.xlu1 %479 }
 0x224   : > { %791 = vlog2.f32 %v480_v26  ;;  %v782_v30 = vpop.eup %781 }
 0x225   : > { %793 = vlog2.f32 %v462_v29  ;;  %v492_v31 = vmul.f32 0.6931472, %v782_v30 }
 0x227   : > { %v468_v32 = vpop.xlane.xlu1 %467  ;;  %v478_v35 = vpop.xlane.xlu0 %477  ;;  %v522_v36 = vsub.f32 %v974_v22, %v492_v31 }
 0x228   : > { %795 = vlog2.f32 %v468_v32  ;;  %v784_v37 = vpop.eup %783 }
 0x229   : > { %797 = vlog2.f32 %v478_v35  ;;  %v786_v39 = vpop.eup %785  ;;  %538 = vst [vmem:[%s1028_s29 + $0x8] sm:$0xff] %v522_v36  ;;  %v508_v41 = vmul.f32 0.6931472, %v784_v37 }
 0x22a   : > { %v490_v42 = vmul.f32 0.6931472, %v786_v39 }
 0x22b   : > { %v484_v43 = vpop.xlane.xlu1 %483  ;;  %v466_v45 = vpop.xlane.xlu0 %465  ;;  %v530_v47 = vsub.f32 %v972_v21, %v508_v41 }
 0x22c   : > { %799 = vlog2.f32 %v484_v43  ;;  %v788_v48 = vpop.eup %787  ;;  %v521_v49 = vsub.f32 %v980_v28, %v490_v42 }
 0x22d   : > { %801 = vlog2.f32 %v466_v45  ;;  %v790_v22 = vpop.eup %789  ;;  %546 = vst [vmem:[%s1028_s29 + $0x48] sm:$0xff] %v530_v47  ;;  %v496_v50 = vmul.f32 0.6931472, %v788_v48 }
 0x22e   : > { %537 = vst [vmem:[%s1028_s29] sm:$0xff] %v521_v49  ;;  %v506_v52 = vmul.f32 0.6931472, %v790_v22 }
 0x22f   : > { %v472_v53 = vpop.xlane.xlu1 %471  ;;  %v482_v55 = vpop.xlane.xlu0 %481  ;;  %v524_v56 = vsub.f32 %v978_v27, %v496_v50 }
 0x230   : > { %803 = vlog2.f32 %v472_v53  ;;  %v529_v21 = vsub.f32 %v984_v33, %v506_v52 }
 0x231   : > { %v792_v57 = vpop.eup %791  ;;  %805 = vlog2.f32 %v482_v55  ;;  %540 = vst [vmem:[%s1028_s29 + $0x18] sm:$0xff] %v524_v56 }
 0x232   : > { %v794_v58 = vpop.eup %793  ;;  %v512_v28 = vmul.f32 0.6931472, %v792_v57  ;;  %545 = vst [vmem:[%s1028_s29 + $0x40] sm:$0xff] %v529_v21 }
 0x233   : > { %v494_v60 = vmul.f32 0.6931472, %v794_v58  ;;  %v488_v61 = vpop.xlane.xlu1 %487  ;;  %v470_v63 = vpop.xlane.xlu0 %469 }
 0x234   : > { %v532_v0 = vsub.f32 %v986_v34, %v512_v28  ;;  %807 = vlog2.f32 %v488_v61 }
 0x235   : > { %v796_v1 = vpop.eup %795  ;;  %v523_v27 = vsub.f32 %v989_v38, %v494_v60  ;;  %809 = vlog2.f32 %v470_v63 }
 0x236   : > { %v798_v2 = vpop.eup %797  ;;  %548 = vst [vmem:[%s1028_s29 + $0x58] sm:$0xff] %v532_v0  ;;  %v500_v33 = vmul.f32 0.6931472, %v796_v1 }
 0x237   : > { %539 = vst [vmem:[%s1028_s29 + $0x10] sm:$0xff] %v523_v27  ;;  %v510_v4 = vmul.f32 0.6931472, %v798_v2  ;;  %v486_v5 = vpop.xlane.xlu0 %485 }
 0x238   : > { %v526_v7 = vsub.f32 %v995_v44, %v500_v33  ;;  %811 = vlog2.f32 %v486_v5 }
 0x239   : > { %v800_v8 = vpop.eup %799  ;;  %v531_v34 = vsub.f32 %v992_v40, %v510_v4 }
 0x23a   : > { %v802_v9 = vpop.eup %801  ;;  %542 = vst [vmem:[%s1028_s29 + $0x28] sm:$0xff] %v526_v7  ;;  %v516_v10 = vmul.f32 0.6931472, %v800_v8 }
 0x23b   : > { %547 = vst [vmem:[%s1028_s29 + $0x50] sm:$0xff] %v531_v34  ;;  %v498_v38 = vmul.f32 0.6931472, %v802_v9 }
 0x23c   : > { %v534_v11 = vsub.f32 %v1001_v51, %v516_v10 }
 0x23d   : > { %v804_v12 = vpop.eup %803  ;;  %v525_v13 = vsub.f32 %v998_v46, %v498_v38 }
 0x23e   : > { %v806_v14 = vpop.eup %805  ;;  %550 = vst [vmem:[%s1028_s29 + $0x68] sm:$0xff] %v534_v11  ;;  %v504_v44 = vmul.f32 0.6931472, %v804_v12 }
 0x23f   : > { %541 = vst [vmem:[%s1028_s29 + $0x20] sm:$0xff] %v525_v13  ;;  %v514_v15 = vmul.f32 0.6931472, %v806_v14 }
 0x240   : > { %v528_v40 = vsub.f32 %v1007_v59, %v504_v44 }
 0x241   : > { %v808_v16 = vpop.eup %807  ;;  %v533_v17 = vsub.f32 %v1004_v54, %v514_v15 }
 0x242   : > { %v810_v18 = vpop.eup %809  ;;  %544 = vst [vmem:[%s1028_s29 + $0x38] sm:$0xff] %v528_v40  ;;  %v520_v19 = vmul.f32 0.6931472, %v808_v16 }
 0x243   : > { %549 = vst [vmem:[%s1028_s29 + $0x60] sm:$0xff] %v533_v17  ;;  %v502_v51 = vmul.f32 0.6931472, %v810_v18 }
 0x244   : > { %v536_v46 = vsub.f32 %v1015_v3, %v520_v19 }
 0x245   : > { %v812_v20 = vpop.eup %811  ;;  %v527_v23 = vsub.f32 %v1011_v62, %v502_v51 }
 0x246   : > { %552 = vst [vmem:[%s1028_s29 + $0x78] sm:$0xff] %v536_v46  ;;  %v518_v24 = vmul.f32 0.6931472, %v812_v20 }
 0x247   : > { %543 = vst [vmem:[%s1028_s29 + $0x30] sm:$0xff] %v527_v23 }
 0x248   : > { %v535_v25 = vsub.f32 %v1019_v6, %v518_v24 }
 0x24a   : > { %551 = vst [vmem:[%s1028_s29 + $0x70] sm:$0xff] %v535_v25 }
 0x24b PF: > { %s13_s12 = sadd.s32 1, %s819_s12  }
 0x24c   : > { %p10_p4 = scmp.ge.s32.totalorder %s13_s12, 4  }
 0x24e   :  { %12 = sbr.rel (!%p10_p4) target bundleno = 1 (0x1), region = 62 }

</bundles_post_ra>
